<compile_context>
chip_gen: v6e
topology: v6e:2x2x1
jax: 0.10.0
libtpu: 0.0.40
codegen_flags: <defaults>
</compile_context>

<pallas_src>
import numpy as np
import jax
import jax.numpy as jnp
from jax import lax
from jax.experimental import pallas as pl
from jax.experimental.pallas import tpu as pltpu

N = 16            # number of graph nodes
D = 32            # in_dim == out_dim (residual connections require equality)
H = 4             # num_heads
DK = D // H       # per-head dim
EPS = 1e-5        # BatchNorm1d eps
G_BLK_DEFAULT = 8 # graphs per grid step (128 MXU rows)


def graph_transformer_kernel(h_ref, mqk_ref, wvo_ref, w1_ref, w2_ref, vec_ref,
                             o_ref):
    hb = h_ref[...]                                   # [GB, N, D]
    GB = hb.shape[0]
    R = GB * N
    h_flat = hb.reshape(R, D)                         # row-flattened view

    # Packed 1-D parameters: [8, 2D] buffer, static sublane/lane slices.
    vec = vec_ref[...]
    g1  = vec[0:1, :D]
    be1 = vec[1:2, :D]
    b1  = vec[2:3, :]                                 # [1, 2D]
    g2  = vec[3:4, :D]
    be2 = vec[4:5, :D]

    # --- Multi-head attention (folded weights, no lane slicing) -----------
    # scores_h = h @ M_h @ h^T   with   M_h = (Wq_h / sqrt(dk)) @ Wk_h^T
    scores = []
    for hd in range(H):                               # static unroll over heads
        t = jnp.dot(h_flat, mqk_ref[hd],
                    preferred_element_type=jnp.float32)            # [R, D]
        scores.append(jnp.einsum('gnd,gmd->gnm', t.reshape(GB, N, D), hb,
                                 preferred_element_type=jnp.float32))  # [GB, N, N]
    # One consolidated softmax pass over all heads.
    s_all = jnp.stack(scores, axis=0)                               # [H, GB, N, N]
    s_all = s_all - jnp.max(s_all, axis=-1, keepdims=True)
    p_all = jnp.exp(s_all)
    p_all = p_all / jnp.sum(p_all, axis=-1, keepdims=True)

    # attn @ Wo = sum_h P_h @ (h @ Wvo_h); residual added by starting from hb.
    # O-bias bo is cancelled by the training-mode BatchNorm below -> dropped.
    h1 = hb
    for hd in range(H):
        u = jnp.dot(h_flat, wvo_ref[hd],
                    preferred_element_type=jnp.float32)             # [R, D]
        h1 = h1 + jnp.einsum('gnm,gmd->gnd', p_all[hd], u.reshape(GB, N, D),
                             preferred_element_type=jnp.float32)    # [GB, N, D]

    # dropout(p=0.0) is identity — skipped.

    # --- BatchNorm1d #1 (per-graph batch stats, biased var, two-pass) -----
    mu1 = jnp.mean(h1, axis=1, keepdims=True)
    d1 = h1 - mu1
    var1 = jnp.mean(d1 * d1, axis=1, keepdims=True)
    h1n = d1 * lax.rsqrt(var1 + EPS) * g1 + be1

    # --- FFN (row-flattened; graph-independent) ----------------------------
    f = jnp.dot(h1n.reshape(R, D), w1_ref[...],
                preferred_element_type=jnp.float32) + b1
    f = jnp.maximum(f, 0.0)
    f = jnp.dot(f, w2_ref[...], preferred_element_type=jnp.float32)  # b2 cancels in BN2

    # --- second residual + BatchNorm1d #2 ----------------------------------
    h2 = h1n + f.reshape(GB, N, D)
    mu2 = jnp.mean(h2, axis=1, keepdims=True)
    d2 = h2 - mu2
    var2 = jnp.mean(d2 * d2, axis=1, keepdims=True)
    o_ref[...] = d2 * lax.rsqrt(var2 + EPS) * g2 + be2


def _pack_params(params):
    """Glue (plain JAX): fold Q/K, V/O and the softmax scale into per-head
    [D, D] weights, and pack all 1-D params into a single buffer."""
    scale = np.float32(1.0 / np.sqrt(DK))
    wq, wk, wv, wo = params["wq"], params["wk"], params["wv"], params["wo"]
    mqk, wvo = [], []
    for hd in range(H):
        sl = slice(hd * DK, (hd + 1) * DK)
        mqk.append((wq[:, sl] * scale) @ wk[:, sl].T)   # [D, D]
        wvo.append(wv[:, sl] @ wo[sl, :])               # [D, D]
    mqk = jnp.stack(mqk, axis=0)                        # [H, D, D]
    wvo = jnp.stack(wvo, axis=0)                        # [H, D, D]
    vec = jnp.zeros((8, 2 * D), jnp.float32)
    vec = vec.at[0, :D].set(params["g1"])
    vec = vec.at[1, :D].set(params["be1"])
    vec = vec.at[2, :].set(params["b1"])
    vec = vec.at[3, :D].set(params["g2"])
    vec = vec.at[4, :D].set(params["be2"])
    # bo / b2 intentionally NOT packed: exactly cancelled by training-mode BN.
    return mqk, wvo, params["w1"], params["w2"], vec


def graph_transformer_layer(h, params, g_blk=G_BLK_DEFAULT):
    """h: [N, D] (single graph) or [G, N, D] (batch of independent graphs)."""
    squeeze = (h.ndim == 2)
    if squeeze:
        h = h[None]
    g = h.shape[0]
    gb = int(min(g_blk, g))
    n_blocks = -(-g // gb)
    g_pad = n_blocks * gb
    if g_pad != g:                       # zero-pad to a whole number of blocks
        h = jnp.concatenate([h, jnp.zeros((g_pad - g, N, D), h.dtype)], axis=0)

    mqk, wvo, w1, w2, vec = _pack_params(params)

    flops_per_graph = (H * (2 * (2 * N * D * D)      # t / u projections
                            + 2 * (2 * N * N * D))   # scores + P@u
                       + 2 * N * D * 2 * D           # FFN layer 1
                       + 2 * N * 2 * D * D)          # FFN layer 2
    cost = pl.CostEstimate(
        flops=g_pad * flops_per_graph,
        transcendentals=g_pad * (H * N * N + 4 * D),
        bytes_accessed=(2 * g_pad * N * D * 4
                        + 4 * (2 * H * D * D + 2 * (D * 2 * D) + 8 * 2 * D)))

    out = pl.pallas_call(
        graph_transformer_kernel,
        out_shape=jax.ShapeDtypeStruct((g_pad, N, D), jnp.float32),
        grid_spec=pltpu.PrefetchScalarGridSpec(
            num_scalar_prefetch=0,
            grid=(n_blocks,),
            in_specs=[
                pl.BlockSpec((gb, N, D), lambda i: (i, 0, 0)),     # G_BLK graphs / step
                pl.BlockSpec((H, D, D), lambda i: (0, 0, 0)),      # folded Q/K (resident)
                pl.BlockSpec((H, D, D), lambda i: (0, 0, 0)),      # folded V/O (resident)
                pl.BlockSpec((D, 2 * D), lambda i: (0, 0)),        # W1
                pl.BlockSpec((2 * D, D), lambda i: (0, 0)),        # W2
                pl.BlockSpec((8, 2 * D), lambda i: (0, 0)),        # packed 1-D params
            ],
            out_specs=pl.BlockSpec((gb, N, D), lambda i: (i, 0, 0)),
        ),
        compiler_params=pltpu.CompilerParams(
            dimension_semantics=("parallel",)),
        cost_estimate=cost,
    )(h, mqk, wvo, w1, w2, vec)

    out = out[:g]
    return out[0] if squeeze else out


def init_params(key):
    """Deterministic parameter init (torch-style uniform ±1/sqrt(fan_in)).
    Linear weights stored already transposed: [in_features, out_features]."""
    ks = jax.random.split(key, 12)

    def lin_w(k, fan_in, fan_out):
        b = 1.0 / np.sqrt(fan_in)
        return jax.random.uniform(k, (fan_in, fan_out), jnp.float32, -b, b)

    def lin_b(k, fan_in, fan_out):
        b = 1.0 / np.sqrt(fan_in)
        return jax.random.uniform(k, (fan_out,), jnp.float32, -b, b)

    return {
        "wq": lin_w(ks[0], D, D),            # Q/K/V: use_bias=False
        "wk": lin_w(ks[1], D, D),
        "wv": lin_w(ks[2], D, D),
        "wo": lin_w(ks[3], D, D),
        "bo": lin_b(ks[4], D, D),
        "g1": 1.0 + 0.1 * jax.random.normal(ks[5], (D,), jnp.float32),
        "be1": 0.1 * jax.random.normal(ks[6], (D,), jnp.float32),
        "w1": lin_w(ks[7], D, 2 * D),
        "b1": lin_b(ks[8], D, 2 * D),
        "w2": lin_w(ks[9], 2 * D, D),
        "b2": lin_b(ks[10], 2 * D, D),
        "g2": 1.0 + 0.1 * jax.random.normal(ks[11], (D,), jnp.float32),
        "be2": 0.1 * jax.random.normal(jax.random.fold_in(key, 99), (D,), jnp.float32),
    }


def reference_numpy(h, p):
    """Pure numpy (float64) re-implementation of the PyTorch forward (one graph)."""
    h = np.asarray(h, np.float64)
    wq = np.asarray(p["wq"], np.float64); wk = np.asarray(p["wk"], np.float64)
    wv = np.asarray(p["wv"], np.float64); wo = np.asarray(p["wo"], np.float64)
    q = (h @ wq).reshape(N, H, DK).transpose(1, 0, 2)
    k = (h @ wk).reshape(N, H, DK).transpose(1, 0, 2)
    v = (h @ wv).reshape(N, H, DK).transpose(1, 0, 2)
    s = q @ k.transpose(0, 2, 1) / np.sqrt(DK)
    s = s - s.max(axis=-1, keepdims=True)
    pexp = np.exp(s)
    probs = pexp / pexp.sum(axis=-1, keepdims=True)
    attn = (probs @ v).transpose(1, 0, 2).reshape(N, D)
    h1 = attn @ wo + np.asarray(p["bo"], np.float64)
    h1 = h + h1
    mu = h1.mean(0); var = h1.var(0)
    h1n = (h1 - mu) / np.sqrt(var + EPS) * np.asarray(p["g1"], np.float64) \
          + np.asarray(p["be1"], np.float64)
    f = np.maximum(h1n @ np.asarray(p["w1"], np.float64)
                   + np.asarray(p["b1"], np.float64), 0.0)
    f = f @ np.asarray(p["w2"], np.float64) + np.asarray(p["b2"], np.float64)
    h2 = h1n + f
    mu2 = h2.mean(0); var2 = h2.var(0)
    return (h2 - mu2) / np.sqrt(var2 + EPS) * np.asarray(p["g2"], np.float64) \
           + np.asarray(p["be2"], np.float64)


if __name__ == "__main__":
    key = jax.random.PRNGKey(0)
    k_h, k_p = jax.random.split(key)
    G = 16                                   # batch of independent graphs
    h = jax.random.normal(k_h, (G, N, D), jnp.float32)
    params = init_params(k_p)

    out = jax.block_until_ready(graph_transformer_layer(h, params))
    assert out.shape == (G, N, D)
    assert np.all(np.isfinite(np.asarray(out)))
    for gi in range(G):
        ref = reference_numpy(np.asarray(h[gi]), params)
        np.testing.assert_allclose(np.asarray(out[gi]), ref, rtol=2e-3, atol=2e-3)

    # Single-graph path ([N, D] input), matching the module's call signature.
    out1 = jax.block_until_ready(graph_transformer_layer(h[0], params))
    np.testing.assert_allclose(np.asarray(out1),
                               reference_numpy(np.asarray(h[0]), params),
                               rtol=2e-3, atol=2e-3)
    print("KERNEL_OK")
</pallas_src>

<mosaic_0001>
module attributes {stable_mosaic.version = 11 : i64} {
  func.func @graph_transformer_kernel(%arg0: i32, %arg1: memref<8x16x32xf32, #tpu.memory_space<vmem>>, %arg2: memref<4x32x32xf32, #tpu.memory_space<vmem>>, %arg3: memref<4x32x32xf32, #tpu.memory_space<vmem>>, %arg4: memref<32x64xf32, #tpu.memory_space<vmem>>, %arg5: memref<64x32xf32, #tpu.memory_space<vmem>>, %arg6: memref<8x64xf32, #tpu.memory_space<vmem>>, %arg7: memref<8x16x32xf32, #tpu.memory_space<vmem>>) attributes {dimension_semantics = [#tpu.dimension_semantics<parallel>], iteration_bounds = array<i64: 2>, scalar_prefetch = 0 : i64, scratch_operands = 0 : i64, tpu.core_type = #tpu.core_type<tc>, window_params = [{transform_indices = @transform_0, window_bounds = array<i64: 8, 16, 32>}, {pipeline_mode = #tpu.pipeline_mode<synchronous>, transform_indices = @transform_1, window_bounds = array<i64: 4, 32, 32>}, {pipeline_mode = #tpu.pipeline_mode<synchronous>, transform_indices = @transform_2, window_bounds = array<i64: 4, 32, 32>}, {pipeline_mode = #tpu.pipeline_mode<synchronous>, transform_indices = @transform_3, window_bounds = array<i64: 32, 64>}, {pipeline_mode = #tpu.pipeline_mode<synchronous>, transform_indices = @transform_4, window_bounds = array<i64: 64, 32>}, {pipeline_mode = #tpu.pipeline_mode<synchronous>, transform_indices = @transform_5, window_bounds = array<i64: 8, 64>}, {transform_indices = @transform_6, window_bounds = array<i64: 8, 16, 32>}]} {
    %c0 = arith.constant 0 : index
    %c0_0 = arith.constant 0 : index
    %c0_1 = arith.constant 0 : index
    %0 = vector.load %arg1[%c0, %c0_0, %c0_1] : memref<8x16x32xf32, #tpu.memory_space<vmem>>, vector<8x16x32xf32>
    %1 = vector.shape_cast %0 : vector<8x16x32xf32> to vector<128x32xf32>
    %c0_2 = arith.constant 0 : index
    %c0_3 = arith.constant 0 : index
    %2 = vector.load %arg6[%c0_2, %c0_3] : memref<8x64xf32, #tpu.memory_space<vmem>>, vector<8x64xf32>
    %3 = vector.extract_strided_slice %2 {offsets = [0, 0], sizes = [1, 32], strides = [1, 1]} : vector<8x64xf32> to vector<1x32xf32>
    %4 = vector.extract_strided_slice %2 {offsets = [1, 0], sizes = [1, 32], strides = [1, 1]} : vector<8x64xf32> to vector<1x32xf32>
    %5 = vector.extract_strided_slice %2 {offsets = [2, 0], sizes = [1, 64], strides = [1, 1]} : vector<8x64xf32> to vector<1x64xf32>
    %6 = vector.extract_strided_slice %2 {offsets = [3, 0], sizes = [1, 32], strides = [1, 1]} : vector<8x64xf32> to vector<1x32xf32>
    %7 = vector.extract_strided_slice %2 {offsets = [4, 0], sizes = [1, 32], strides = [1, 1]} : vector<8x64xf32> to vector<1x32xf32>
    %c0_4 = arith.constant 0 : index
    %c0_5 = arith.constant 0 : index
    %c0_6 = arith.constant 0 : index
    %8 = vector.load %arg2[%c0_4, %c0_5, %c0_6] : memref<4x32x32xf32, #tpu.memory_space<vmem>>, vector<1x32x32xf32>
    %9 = vector.shape_cast %8 : vector<1x32x32xf32> to vector<32x32xf32>
    %cst = arith.constant dense<0.000000e+00> : vector<128x32xf32>
    %10 = tpu.matmul %1, %9, %cst {dimension_numbers = #tpu.dot_dimension_numbers<[1], [0], [0], [1], [0, 0, 1, 1], [], []>} : vector<128x32xf32>, vector<32x32xf32>, vector<128x32xf32> -> vector<128x32xf32>
    %11 = vector.shape_cast %10 : vector<128x32xf32> to vector<8x16x32xf32>
    "tpu.trace_start"() <{level = 10 : i32, message = "gnd,gmd->gnm"}> : () -> ()
    %cst_7 = arith.constant dense<0.000000e+00> : vector<8x16x16xf32>
    %12 = tpu.matmul %11, %0, %cst_7 {dimension_numbers = #tpu.dot_dimension_numbers<[2], [2], [1], [1], [0, 0, 0, 1, 1, 1], [0], [0]>} : vector<8x16x32xf32>, vector<8x16x32xf32>, vector<8x16x16xf32> -> vector<8x16x16xf32>
    "tpu.trace_stop"() : () -> ()
    %c1 = arith.constant 1 : index
    %c0_8 = arith.constant 0 : index
    %c0_9 = arith.constant 0 : index
    %13 = vector.load %arg2[%c1, %c0_8, %c0_9] : memref<4x32x32xf32, #tpu.memory_space<vmem>>, vector<1x32x32xf32>
    %14 = vector.shape_cast %13 : vector<1x32x32xf32> to vector<32x32xf32>
    %cst_10 = arith.constant dense<0.000000e+00> : vector<128x32xf32>
    %15 = tpu.matmul %1, %14, %cst_10 {dimension_numbers = #tpu.dot_dimension_numbers<[1], [0], [0], [1], [0, 0, 1, 1], [], []>} : vector<128x32xf32>, vector<32x32xf32>, vector<128x32xf32> -> vector<128x32xf32>
    %16 = vector.shape_cast %15 : vector<128x32xf32> to vector<8x16x32xf32>
    "tpu.trace_start"() <{level = 10 : i32, message = "gnd,gmd->gnm"}> : () -> ()
    %cst_11 = arith.constant dense<0.000000e+00> : vector<8x16x16xf32>
    %17 = tpu.matmul %16, %0, %cst_11 {dimension_numbers = #tpu.dot_dimension_numbers<[2], [2], [1], [1], [0, 0, 0, 1, 1, 1], [0], [0]>} : vector<8x16x32xf32>, vector<8x16x32xf32>, vector<8x16x16xf32> -> vector<8x16x16xf32>
    "tpu.trace_stop"() : () -> ()
    %c2 = arith.constant 2 : index
    %c0_12 = arith.constant 0 : index
    %c0_13 = arith.constant 0 : index
    %18 = vector.load %arg2[%c2, %c0_12, %c0_13] : memref<4x32x32xf32, #tpu.memory_space<vmem>>, vector<1x32x32xf32>
    %19 = vector.shape_cast %18 : vector<1x32x32xf32> to vector<32x32xf32>
    %cst_14 = arith.constant dense<0.000000e+00> : vector<128x32xf32>
    %20 = tpu.matmul %1, %19, %cst_14 {dimension_numbers = #tpu.dot_dimension_numbers<[1], [0], [0], [1], [0, 0, 1, 1], [], []>} : vector<128x32xf32>, vector<32x32xf32>, vector<128x32xf32> -> vector<128x32xf32>
    %21 = vector.shape_cast %20 : vector<128x32xf32> to vector<8x16x32xf32>
    "tpu.trace_start"() <{level = 10 : i32, message = "gnd,gmd->gnm"}> : () -> ()
    %cst_15 = arith.constant dense<0.000000e+00> : vector<8x16x16xf32>
    %22 = tpu.matmul %21, %0, %cst_15 {dimension_numbers = #tpu.dot_dimension_numbers<[2], [2], [1], [1], [0, 0, 0, 1, 1, 1], [0], [0]>} : vector<8x16x32xf32>, vector<8x16x32xf32>, vector<8x16x16xf32> -> vector<8x16x16xf32>
    "tpu.trace_stop"() : () -> ()
    %c3 = arith.constant 3 : index
    %c0_16 = arith.constant 0 : index
    %c0_17 = arith.constant 0 : index
    %23 = vector.load %arg2[%c3, %c0_16, %c0_17] : memref<4x32x32xf32, #tpu.memory_space<vmem>>, vector<1x32x32xf32>
    %24 = vector.shape_cast %23 : vector<1x32x32xf32> to vector<32x32xf32>
    %cst_18 = arith.constant dense<0.000000e+00> : vector<128x32xf32>
    %25 = tpu.matmul %1, %24, %cst_18 {dimension_numbers = #tpu.dot_dimension_numbers<[1], [0], [0], [1], [0, 0, 1, 1], [], []>} : vector<128x32xf32>, vector<32x32xf32>, vector<128x32xf32> -> vector<128x32xf32>
    %26 = vector.shape_cast %25 : vector<128x32xf32> to vector<8x16x32xf32>
    "tpu.trace_start"() <{level = 10 : i32, message = "gnd,gmd->gnm"}> : () -> ()
    %cst_19 = arith.constant dense<0.000000e+00> : vector<8x16x16xf32>
    %27 = tpu.matmul %26, %0, %cst_19 {dimension_numbers = #tpu.dot_dimension_numbers<[2], [2], [1], [1], [0, 0, 0, 1, 1, 1], [0], [0]>} : vector<8x16x32xf32>, vector<8x16x32xf32>, vector<8x16x16xf32> -> vector<8x16x16xf32>
    "tpu.trace_stop"() : () -> ()
    %28 = vector.shape_cast %12 : vector<8x16x16xf32> to vector<1x8x16x16xf32>
    %29 = vector.shape_cast %17 : vector<8x16x16xf32> to vector<1x8x16x16xf32>
    %30 = vector.shape_cast %22 : vector<8x16x16xf32> to vector<1x8x16x16xf32>
    %31 = vector.shape_cast %27 : vector<8x16x16xf32> to vector<1x8x16x16xf32>
    %32 = tpu.concatenate %28, %29, %30, %31 in 0 : vector<1x8x16x16xf32>, vector<1x8x16x16xf32>, vector<1x8x16x16xf32>, vector<1x8x16x16xf32> -> vector<4x8x16x16xf32>
    %cst_20 = arith.constant dense<0xFF800000> : vector<4x8x16xf32>
    %33 = vector.multi_reduction <maximumf>, %32, %cst_20 [3] : vector<4x8x16x16xf32> to vector<4x8x16xf32>
    %34 = vector.shape_cast %33 : vector<4x8x16xf32> to vector<4x8x16x1xf32>
    %35 = vector.broadcast %34 : vector<4x8x16x1xf32> to vector<4x8x16x16xf32>
    %36 = arith.subf %32, %35 : vector<4x8x16x16xf32>
    %37 = math.exp %36 : vector<4x8x16x16xf32>
    %cst_21 = arith.constant dense<0.000000e+00> : vector<4x8x16xf32>
    %38 = vector.multi_reduction <add>, %37, %cst_21 [3] : vector<4x8x16x16xf32> to vector<4x8x16xf32>
    %39 = vector.shape_cast %38 : vector<4x8x16xf32> to vector<4x8x16x1xf32>
    %40 = vector.broadcast %39 : vector<4x8x16x1xf32> to vector<4x8x16x16xf32>
    %41 = arith.divf %37, %40 : vector<4x8x16x16xf32>
    %c0_22 = arith.constant 0 : index
    %c0_23 = arith.constant 0 : index
    %c0_24 = arith.constant 0 : index
    %42 = vector.load %arg3[%c0_22, %c0_23, %c0_24] : memref<4x32x32xf32, #tpu.memory_space<vmem>>, vector<1x32x32xf32>
    %43 = vector.shape_cast %42 : vector<1x32x32xf32> to vector<32x32xf32>
    %cst_25 = arith.constant dense<0.000000e+00> : vector<128x32xf32>
    %44 = tpu.matmul %1, %43, %cst_25 {dimension_numbers = #tpu.dot_dimension_numbers<[1], [0], [0], [1], [0, 0, 1, 1], [], []>} : vector<128x32xf32>, vector<32x32xf32>, vector<128x32xf32> -> vector<128x32xf32>
    %45 = vector.extract_strided_slice %41 {offsets = [0, 0, 0, 0], sizes = [1, 8, 16, 16], strides = [1, 1, 1, 1]} : vector<4x8x16x16xf32> to vector<1x8x16x16xf32>
    %46 = vector.shape_cast %45 : vector<1x8x16x16xf32> to vector<8x16x16xf32>
    %47 = vector.shape_cast %44 : vector<128x32xf32> to vector<8x16x32xf32>
    "tpu.trace_start"() <{level = 10 : i32, message = "gnm,gmd->gnd"}> : () -> ()
    %cst_26 = arith.constant dense<0.000000e+00> : vector<8x16x32xf32>
    %48 = tpu.matmul %46, %47, %cst_26 {dimension_numbers = #tpu.dot_dimension_numbers<[2], [1], [1], [2], [0, 0, 0, 1, 1, 2], [0], [0]>} : vector<8x16x16xf32>, vector<8x16x32xf32>, vector<8x16x32xf32> -> vector<8x16x32xf32>
    "tpu.trace_stop"() : () -> ()
    %49 = arith.addf %0, %48 : vector<8x16x32xf32>
    %c1_27 = arith.constant 1 : index
    %c0_28 = arith.constant 0 : index
    %c0_29 = arith.constant 0 : index
    %50 = vector.load %arg3[%c1_27, %c0_28, %c0_29] : memref<4x32x32xf32, #tpu.memory_space<vmem>>, vector<1x32x32xf32>
    %51 = vector.shape_cast %50 : vector<1x32x32xf32> to vector<32x32xf32>
    %cst_30 = arith.constant dense<0.000000e+00> : vector<128x32xf32>
    %52 = tpu.matmul %1, %51, %cst_30 {dimension_numbers = #tpu.dot_dimension_numbers<[1], [0], [0], [1], [0, 0, 1, 1], [], []>} : vector<128x32xf32>, vector<32x32xf32>, vector<128x32xf32> -> vector<128x32xf32>
    %53 = vector.extract_strided_slice %41 {offsets = [1, 0, 0, 0], sizes = [1, 8, 16, 16], strides = [1, 1, 1, 1]} : vector<4x8x16x16xf32> to vector<1x8x16x16xf32>
    %54 = vector.shape_cast %53 : vector<1x8x16x16xf32> to vector<8x16x16xf32>
    %55 = vector.shape_cast %52 : vector<128x32xf32> to vector<8x16x32xf32>
    "tpu.trace_start"() <{level = 10 : i32, message = "gnm,gmd->gnd"}> : () -> ()
    %cst_31 = arith.constant dense<0.000000e+00> : vector<8x16x32xf32>
    %56 = tpu.matmul %54, %55, %cst_31 {dimension_numbers = #tpu.dot_dimension_numbers<[2], [1], [1], [2], [0, 0, 0, 1, 1, 2], [0], [0]>} : vector<8x16x16xf32>, vector<8x16x32xf32>, vector<8x16x32xf32> -> vector<8x16x32xf32>
    "tpu.trace_stop"() : () -> ()
    %57 = arith.addf %49, %56 : vector<8x16x32xf32>
    %c2_32 = arith.constant 2 : index
    %c0_33 = arith.constant 0 : index
    %c0_34 = arith.constant 0 : index
    %58 = vector.load %arg3[%c2_32, %c0_33, %c0_34] : memref<4x32x32xf32, #tpu.memory_space<vmem>>, vector<1x32x32xf32>
    %59 = vector.shape_cast %58 : vector<1x32x32xf32> to vector<32x32xf32>
    %cst_35 = arith.constant dense<0.000000e+00> : vector<128x32xf32>
    %60 = tpu.matmul %1, %59, %cst_35 {dimension_numbers = #tpu.dot_dimension_numbers<[1], [0], [0], [1], [0, 0, 1, 1], [], []>} : vector<128x32xf32>, vector<32x32xf32>, vector<128x32xf32> -> vector<128x32xf32>
    %61 = vector.extract_strided_slice %41 {offsets = [2, 0, 0, 0], sizes = [1, 8, 16, 16], strides = [1, 1, 1, 1]} : vector<4x8x16x16xf32> to vector<1x8x16x16xf32>
    %62 = vector.shape_cast %61 : vector<1x8x16x16xf32> to vector<8x16x16xf32>
    %63 = vector.shape_cast %60 : vector<128x32xf32> to vector<8x16x32xf32>
    "tpu.trace_start"() <{level = 10 : i32, message = "gnm,gmd->gnd"}> : () -> ()
    %cst_36 = arith.constant dense<0.000000e+00> : vector<8x16x32xf32>
    %64 = tpu.matmul %62, %63, %cst_36 {dimension_numbers = #tpu.dot_dimension_numbers<[2], [1], [1], [2], [0, 0, 0, 1, 1, 2], [0], [0]>} : vector<8x16x16xf32>, vector<8x16x32xf32>, vector<8x16x32xf32> -> vector<8x16x32xf32>
    "tpu.trace_stop"() : () -> ()
    %65 = arith.addf %57, %64 : vector<8x16x32xf32>
    %c3_37 = arith.constant 3 : index
    %c0_38 = arith.constant 0 : index
    %c0_39 = arith.constant 0 : index
    %66 = vector.load %arg3[%c3_37, %c0_38, %c0_39] : memref<4x32x32xf32, #tpu.memory_space<vmem>>, vector<1x32x32xf32>
    %67 = vector.shape_cast %66 : vector<1x32x32xf32> to vector<32x32xf32>
    %cst_40 = arith.constant dense<0.000000e+00> : vector<128x32xf32>
    %68 = tpu.matmul %1, %67, %cst_40 {dimension_numbers = #tpu.dot_dimension_numbers<[1], [0], [0], [1], [0, 0, 1, 1], [], []>} : vector<128x32xf32>, vector<32x32xf32>, vector<128x32xf32> -> vector<128x32xf32>
    %69 = vector.extract_strided_slice %41 {offsets = [3, 0, 0, 0], sizes = [1, 8, 16, 16], strides = [1, 1, 1, 1]} : vector<4x8x16x16xf32> to vector<1x8x16x16xf32>
    %70 = vector.shape_cast %69 : vector<1x8x16x16xf32> to vector<8x16x16xf32>
    %71 = vector.shape_cast %68 : vector<128x32xf32> to vector<8x16x32xf32>
    "tpu.trace_start"() <{level = 10 : i32, message = "gnm,gmd->gnd"}> : () -> ()
    %cst_41 = arith.constant dense<0.000000e+00> : vector<8x16x32xf32>
    %72 = tpu.matmul %70, %71, %cst_41 {dimension_numbers = #tpu.dot_dimension_numbers<[2], [1], [1], [2], [0, 0, 0, 1, 1, 2], [0], [0]>} : vector<8x16x16xf32>, vector<8x16x32xf32>, vector<8x16x32xf32> -> vector<8x16x32xf32>
    "tpu.trace_stop"() : () -> ()
    %73 = arith.addf %65, %72 : vector<8x16x32xf32>
    %cst_42 = arith.constant dense<0.000000e+00> : vector<8x32xf32>
    %74 = vector.multi_reduction <add>, %73, %cst_42 [1] : vector<8x16x32xf32> to vector<8x32xf32>
    %75 = vector.shape_cast %74 : vector<8x32xf32> to vector<8x1x32xf32>
    %cst_43 = arith.constant 1.600000e+01 : f32
    %76 = vector.broadcast %cst_43 : f32 to vector<8x1x32xf32>
    %77 = arith.divf %75, %76 : vector<8x1x32xf32>
    %78 = vector.broadcast %77 : vector<8x1x32xf32> to vector<8x16x32xf32>
    %79 = arith.subf %73, %78 : vector<8x16x32xf32>
    %80 = arith.mulf %79, %79 : vector<8x16x32xf32>
    %cst_44 = arith.constant dense<0.000000e+00> : vector<8x32xf32>
    %81 = vector.multi_reduction <add>, %80, %cst_44 [1] : vector<8x16x32xf32> to vector<8x32xf32>
    %82 = vector.shape_cast %81 : vector<8x32xf32> to vector<8x1x32xf32>
    %cst_45 = arith.constant 1.600000e+01 : f32
    %83 = vector.broadcast %cst_45 : f32 to vector<8x1x32xf32>
    %84 = arith.divf %82, %83 : vector<8x1x32xf32>
    %cst_46 = arith.constant 9.99999974E-6 : f32
    %85 = vector.broadcast %cst_46 : f32 to vector<8x1x32xf32>
    %86 = arith.addf %84, %85 : vector<8x1x32xf32>
    %87 = math.rsqrt %86 : vector<8x1x32xf32>
    %88 = vector.broadcast %87 : vector<8x1x32xf32> to vector<8x16x32xf32>
    %89 = arith.mulf %79, %88 : vector<8x16x32xf32>
    %90 = vector.shape_cast %3 : vector<1x32xf32> to vector<1x1x32xf32>
    %91 = vector.broadcast %90 : vector<1x1x32xf32> to vector<8x16x32xf32>
    %92 = arith.mulf %89, %91 : vector<8x16x32xf32>
    %93 = vector.shape_cast %4 : vector<1x32xf32> to vector<1x1x32xf32>
    %94 = vector.broadcast %93 : vector<1x1x32xf32> to vector<8x16x32xf32>
    %95 = arith.addf %92, %94 : vector<8x16x32xf32>
    %96 = vector.shape_cast %95 : vector<8x16x32xf32> to vector<128x32xf32>
    %c0_47 = arith.constant 0 : index
    %c0_48 = arith.constant 0 : index
    %97 = vector.load %arg4[%c0_47, %c0_48] : memref<32x64xf32, #tpu.memory_space<vmem>>, vector<32x64xf32>
    %cst_49 = arith.constant dense<0.000000e+00> : vector<128x64xf32>
    %98 = tpu.matmul %96, %97, %cst_49 {dimension_numbers = #tpu.dot_dimension_numbers<[1], [0], [0], [1], [0, 0, 1, 1], [], []>} : vector<128x32xf32>, vector<32x64xf32>, vector<128x64xf32> -> vector<128x64xf32>
    %99 = vector.broadcast %5 : vector<1x64xf32> to vector<128x64xf32>
    %100 = arith.addf %98, %99 : vector<128x64xf32>
    %cst_50 = arith.constant 0.000000e+00 : f32
    %101 = vector.broadcast %cst_50 : f32 to vector<128x64xf32>
    %102 = arith.maximumf %100, %101 : vector<128x64xf32>
    %c0_51 = arith.constant 0 : index
    %c0_52 = arith.constant 0 : index
    %103 = vector.load %arg5[%c0_51, %c0_52] : memref<64x32xf32, #tpu.memory_space<vmem>>, vector<64x32xf32>
    %cst_53 = arith.constant dense<0.000000e+00> : vector<128x32xf32>
    %104 = tpu.matmul %102, %103, %cst_53 {dimension_numbers = #tpu.dot_dimension_numbers<[1], [0], [0], [1], [0, 0, 1, 1], [], []>} : vector<128x64xf32>, vector<64x32xf32>, vector<128x32xf32> -> vector<128x32xf32>
    %105 = vector.shape_cast %104 : vector<128x32xf32> to vector<8x16x32xf32>
    %106 = arith.addf %95, %105 : vector<8x16x32xf32>
    %cst_54 = arith.constant dense<0.000000e+00> : vector<8x32xf32>
    %107 = vector.multi_reduction <add>, %106, %cst_54 [1] : vector<8x16x32xf32> to vector<8x32xf32>
    %108 = vector.shape_cast %107 : vector<8x32xf32> to vector<8x1x32xf32>
    %cst_55 = arith.constant 1.600000e+01 : f32
    %109 = vector.broadcast %cst_55 : f32 to vector<8x1x32xf32>
    %110 = arith.divf %108, %109 : vector<8x1x32xf32>
    %111 = vector.broadcast %110 : vector<8x1x32xf32> to vector<8x16x32xf32>
    %112 = arith.subf %106, %111 : vector<8x16x32xf32>
    %113 = arith.mulf %112, %112 : vector<8x16x32xf32>
    %cst_56 = arith.constant dense<0.000000e+00> : vector<8x32xf32>
    %114 = vector.multi_reduction <add>, %113, %cst_56 [1] : vector<8x16x32xf32> to vector<8x32xf32>
    %115 = vector.shape_cast %114 : vector<8x32xf32> to vector<8x1x32xf32>
    %cst_57 = arith.constant 1.600000e+01 : f32
    %116 = vector.broadcast %cst_57 : f32 to vector<8x1x32xf32>
    %117 = arith.divf %115, %116 : vector<8x1x32xf32>
    %cst_58 = arith.constant 9.99999974E-6 : f32
    %118 = vector.broadcast %cst_58 : f32 to vector<8x1x32xf32>
    %119 = arith.addf %117, %118 : vector<8x1x32xf32>
    %120 = math.rsqrt %119 : vector<8x1x32xf32>
    %121 = vector.broadcast %120 : vector<8x1x32xf32> to vector<8x16x32xf32>
    %122 = arith.mulf %112, %121 : vector<8x16x32xf32>
    %123 = vector.shape_cast %6 : vector<1x32xf32> to vector<1x1x32xf32>
    %124 = vector.broadcast %123 : vector<1x1x32xf32> to vector<8x16x32xf32>
    %125 = arith.mulf %122, %124 : vector<8x16x32xf32>
    %126 = vector.shape_cast %7 : vector<1x32xf32> to vector<1x1x32xf32>
    %127 = vector.broadcast %126 : vector<1x1x32xf32> to vector<8x16x32xf32>
    %128 = arith.addf %125, %127 : vector<8x16x32xf32>
    %c0_59 = arith.constant 0 : index
    %c0_60 = arith.constant 0 : index
    %c0_61 = arith.constant 0 : index
    %129 = vector.load %arg7[%c0_59, %c0_60, %c0_61] : memref<8x16x32xf32, #tpu.memory_space<vmem>>, vector<8x16x32xf32>
    tpu.vector_store %arg7[%c0_59, %c0_60, %c0_61], %128 {strides = array<i32>} : memref<8x16x32xf32, #tpu.memory_space<vmem>>, vector<8x16x32xf32>,
    return
  }
  func.func @transform_0(%arg0: i32) -> (i32, i32, i32) {
    %c0_i32 = arith.constant 0 : i32
    %c0_i32_0 = arith.constant 0 : i32
    %c0_i32_1 = arith.constant 0 : i32
    return %arg0, %c0_i32, %c0_i32_0 : i32, i32, i32
  }
  func.func @transform_1(%arg0: i32) -> (i32, i32, i32) {
    %c0_i32 = arith.constant 0 : i32
    %c0_i32_0 = arith.constant 0 : i32
    %c0_i32_1 = arith.constant 0 : i32
    %c0_i32_2 = arith.constant 0 : i32
    return %c0_i32, %c0_i32_0, %c0_i32_1 : i32, i32, i32
  }
  func.func @transform_2(%arg0: i32) -> (i32, i32, i32) {
    %c0_i32 = arith.constant 0 : i32
    %c0_i32_0 = arith.constant 0 : i32
    %c0_i32_1 = arith.constant 0 : i32
    %c0_i32_2 = arith.constant 0 : i32
    return %c0_i32, %c0_i32_0, %c0_i32_1 : i32, i32, i32
  }
  func.func @transform_3(%arg0: i32) -> (i32, i32) {
    %c0_i32 = arith.constant 0 : i32
    %c0_i32_0 = arith.constant 0 : i32
    %c0_i32_1 = arith.constant 0 : i32
    return %c0_i32, %c0_i32_0 : i32, i32
  }
  func.func @transform_4(%arg0: i32) -> (i32, i32) {
    %c0_i32 = arith.constant 0 : i32
    %c0_i32_0 = arith.constant 0 : i32
    %c0_i32_1 = arith.constant 0 : i32
    return %c0_i32, %c0_i32_0 : i32, i32
  }
  func.func @transform_5(%arg0: i32) -> (i32, i32) {
    %c0_i32 = arith.constant 0 : i32
    %c0_i32_0 = arith.constant 0 : i32
    %c0_i32_1 = arith.constant 0 : i32
    return %c0_i32, %c0_i32_0 : i32, i32
  }
  func.func @transform_6(%arg0: i32) -> (i32, i32, i32) {
    %c0_i32 = arith.constant 0 : i32
    %c0_i32_0 = arith.constant 0 : i32
    %c0_i32_1 = arith.constant 0 : i32
    return %arg0, %c0_i32, %c0_i32_0 : i32, i32, i32
  }
}

</mosaic_0001>

<bundles_post_ra>
// kernel: tpu_custom_call.1
= control target key start
LH: loop header
LB: loop body
LE: loop exit
PB: predicated region body
PF: predicated region fallthrough
CT: control target
= control target key end

     0   :  { %11 = vsyncpa [#allocation3], 0  ;;  %s13295_s0 = inlined_call_operand.hbm [shape: f32[16,16,32], index: 0, kind: input, shape index: {}]   ;;  %s13296_s1 = inlined_call_operand.hbm [shape: f32[4,32,32], index: 1, kind: input, shape index: {}]   ;;  %s13297_s2 = inlined_call_operand.hbm [shape: f32[4,32,32], index: 2, kind: input, shape index: {}]   ;;  %s13298_s3 = inlined_call_operand.vmem [shape: f32[32,64], index: 3, kind: input, shape index: {}]   ;;  %s13299_s4 = inlined_call_operand.vmem [shape: f32[64,32], index: 4, kind: input, shape index: {}]   ;;  %s13300_s5 = inlined_call_operand.vmem [shape: f32[8,64], index: 5, kind: input, shape index: {}]   ;;  %s13301_s6 = inlined_call_operand.hbm [shape: f32[16,16,32], index: 6, kind: output, shape index: {}]  }
   0x1   :  { %13 = vsyncpa [#allocation3 + $0x1], 0 }
   0x2   :  { %14 = vsyncpa [#allocation6], 0 }
   0x3   :  { %15 = vsyncpa [#allocation4], 0 }
   0x4   :  { %17 = vsyncpa [#allocation4 + $0x1], 0  ;;  %s10818_s21 = smov 0   ;;  %s10820_s22 = smov 0  }
   0x5   :  { %s10822_s23 = smov 0   ;;  %s10824_s24 = smov 0  }
   0x6 LB: > { %s10839_s25 = sadd.s32 4294967295, %s10773_s24   ;;  %s8606_s26 = sadd.s32 4294967294, %s10773_s24   ;;  %s10773_s24 = sphi %s10824_s24, %s13413_s24   ;;  %s10769_s23 = sphi %s10822_s23, %s13412_s23   ;;  %s10765_s22 = sphi %s10820_s22, %s13411_s22   ;;  %s10761_s21 = sphi %s10818_s21, %s13410_s21  }
   0x7   : > { %p43_p0 = scmp.ne.s32.totalorder %s10765_s22, %s10761_s21  ;;  %p13302_p1 = scmp.eq.s32.totalorder %s10839_s25, 0 }
   0x8   : > { %p172_p2 = scmp.eq.s32.totalorder %s10839_s25, 1  ;;  %p178_p3 = scmp.eq.s32.totalorder %s8606_s26, 1 }
   0x9   : > { %p10848_p4 = por %p13302_p1, %p43_p0  ;;  %p8607_p5 = scmp.ge.s32.totalorder %s10773_s24, 1 }
   0xa   : > { %p10853_p6 = por %p178_p3, %p43_p0  ;;  %p185_p7 = scmp.lt.s32.totalorder %s10773_s24, 3 }
   0xb   : > { %s13337_s27 = scalar_select %p10848_p4, 1, 0 }
   0xc   : > { %s13338_s28 = scalar_select %p10853_p6, 1, 0 }
   0xd   : > { %p10858_p8 = pnand %p8607_p5, %p185_p7  ;;  %s10775_s30 = smov [#allocation5]  }
   0xe   : > { %s197_s7 = sshll.u32 %s10775_s30, 4  ;;  %s10776_s9 = smov [#allocation7]   ;;  %s198_s7 = int_to_ptr.vmem [resolvable:$true] %s197_s7 }
   0xf   : > { %s13339_s29 = scalar_select %p10858_p8, 1, 0 }
  0x10   : > { %p10246_p9 = pneg %p10858_p8  ;;  %s210_s10 = sshll.u32 %s10776_s9, 4  ;;  %s211_s10 = int_to_ptr.vmem [resolvable:$true] %s210_s10 }
  0x11   : > { %s10636_s11 = scalar_lea.vmem %s198_s7, 2048  ;;  %p10644_p5 = scmp.lt.s32.totalorder %s198_s7, %s198_s7 }
  0x12   : > { %p10867_p11 = pnand %p10246_p9, %p13302_p1  ;;  %p10637_p13 = scmp.ne.s32.totalorder %s198_s7, %s10636_s11 }
  0x13   : > { %p10645_p7 = scmp.lt.s32.totalorder %s10636_s11, %s10636_s11 }
  0x14   : > { %p10627_p12 = pneg %p10867_p11 }
  0x15   : > { %p10646_p10 = por %p10645_p7, %p10644_p5 }
  0x16   : > { %p10639_p0 = pnand %p10637_p13, %p10627_p12 }
  0x18   : > { %p10640_p3 = pneg %p10639_p0 }
  0x1a   : > { %p10647_p9 = pnand %p10646_p10, %p10640_p3 }
  0x1c   : > { %10650 = shalt.err (!%p10647_p9)
}
  0x1d   : > { %s13303_s12 = smov 128   ;;  %s13304_s13 = smov 8  }
  0x1e   : > { %10249 = dma.hbm_to_vmem [thread:$0]  (!%p10867_p11), %s13296_s1, 2048, %s198_s7, [#allocation6], %s13303_s12, %s13303_s12, %s13304_s13  }
  0x1f   : > { %s10662_s16 = scalar_lea.vmem %s211_s10, 2048  ;;  %p10670_p10 = scmp.lt.s32.totalorder %s211_s10, %s211_s10 }
  0x20   : > { %p10663_p13 = scmp.ne.s32.totalorder %s211_s10, %s10662_s16  ;;  %p10671_p3 = scmp.lt.s32.totalorder %s10662_s16, %s10662_s16 }
  0x22   : > { %p10665_p0 = pnand %p10663_p13, %p10627_p12  ;;  %p10672_p7 = por %p10671_p3, %p10670_p10 }
  0x24   : > { %p10666_p5 = pneg %p10665_p0 }
  0x26   : > { %p10673_p9 = pnand %p10672_p7, %p10666_p5 }
  0x28   : > { %10676 = shalt.err (!%p10673_p9)
}
  0x29   : > { %10252 = dma.hbm_to_vmem [thread:$0]  (!%p10867_p11), %s13297_s2, 2048, %s211_s10, [#allocation6], %s13303_s12, %s13303_s12, %s13304_s13  }
  0x2a   : > { %s10896_s19 = sadd.s32 1, %s10773_s24   ;;  %s30_s20 = sadd.s32 1, %s10769_s23 }
  0x2b   : > { %s27_s26 = ssub.s32 %s10773_s24, %s10896_s19  ;;  %p37_p12 = scmp.ne.s32.totalorder %s10769_s23, %s10765_s22 }
  0x2c   : > { %p28_p13 = scmp.eq.s32.totalorder %s27_s26, 0  ;;  %p38_p0 = scmp.eq.s32.totalorder %s10773_s24, 0 }
  0x2d   : > { %p10906_p5 = por %p172_p2, %p37_p12  ;;  %p10263_p10 = scmp.lt.s32.totalorder %s10773_s24, 2 }
  0x2e   : > { %s10912_s7 = scalar_select %p28_p13, %s10769_s23, %s30_s20  }
  0x2f   : > { %s13341_s30 = scalar_select %p10906_p5, 1, 0 }
  0x30   : > { %p39_p3 = por %p38_p0, %p37_p12  ;;  %s233_s8 = sand.u32 1, %s10769_s23  }
  0x31   : > { %s8611_s9 = sshll.u32 %s233_s8, 7  ;;  %s8979_s10 = sshll.u32 %s10773_s24, 11 }
  0x32   : > { %s10919_s15 = scalar_lea.hbm %s13295_s0, %s8979_s10  ;;  %s237_s16 = scalar_lea.vmem [#allocation2], %s8611_s9 }
  0x33   : > { %s245_s17 = sshll.u32 %s237_s16, 4  ;;  %p10923_p2 = pnand %p10263_p10, %p39_p3  ;;  %s10921_s17 = int_to_ptr.vmem [resolvable:$true] %s245_s17 }
  0x34   : > { %s10927_s20 = scalar_lea.sflag [#allocation3], %s233_s8  ;;  %s10677_s26 = scalar_lea.hbm %s10919_s15, 2048 }
  0x35   : > { %p10678_p11 = scmp.ne.s32.totalorder %s10919_s15, %s10677_s26  ;;  %p10679_p7 = pneg %p10923_p2 }
  0x36   : > { %s10682_s9 = scalar_lea.hbm %s13295_s0, 4096  ;;  %p10683_p13 = scmp.lt.s32.totalorder %s10919_s15, %s13295_s0 }
  0x37   : > { %p10680_p9 = pnand %p10679_p7, %p10678_p11  ;;  %p10684_p0 = scmp.lt.s32.totalorder %s10682_s9, %s10677_s26 }
  0x39   : > { %p10681_p12 = pneg %p10680_p9  ;;  %p10685_p10 = por %p10684_p0, %p10683_p13 }
  0x3b   : > { %p10686_p3 = pnand %p10685_p10, %p10681_p12 }
  0x3d   : > { %10689 = shalt.err (!%p10686_p3)
}
  0x3e   : > { %s10690_s8 = scalar_lea.vmem %s10921_s17, 2048  ;;  %s10779_s12 = smov [#allocation2]  }
  0x3f   : > { %p10691_p1 = scmp.ne.s32.totalorder %s10921_s17, %s10690_s8  ;;  %s10695_s13 = sshll.u32 %s10779_s12, 4  ;;  %s10696_s13 = int_to_ptr.vmem [resolvable:$false] %s10695_s13 }
  0x40   : > { %s10697_s10 = scalar_lea.vmem %s10696_s13, 4096  ;;  %p10698_p9 = scmp.lt.s32.totalorder %s10921_s17, %s10696_s13 }
  0x41   : > { %p10693_p6 = pnand %p10691_p1, %p10679_p7  ;;  %p10699_p5 = scmp.lt.s32.totalorder %s10697_s10, %s10690_s8 }
  0x43   : > { %p10694_p11 = pneg %p10693_p6  ;;  %p10700_p4 = por %p10699_p5, %p10698_p9 }
  0x45   : > { %p10701_p8 = pnand %p10700_p4, %p10694_p11 }
  0x47   : > { %10704 = shalt.err (!%p10701_p8)
}
  0x48   : > { %s13343_s26 = smov 8   ;;  %s13344_s11 = smov 128  }
  0x49   : > { %10256 = dma.hbm_to_vmem [thread:$0]  (!%p10923_p2), %s10919_s15, 2048, %s10921_s17, %s10927_s20, %s13344_s11, %s13344_s11, %s13343_s26  }
  0x4a   : > { %p13345_p1 = scmp.ne.s32.totalorder %s13339_s29, 0 }
  0x4c   : > { %257 = sbr.rel (%p13345_p1) target bundleno = 2280 (0x8e8), region = 44 }
  0x51   : > { %s10954_s12 = sand.u32 1, %s10765_s22   ;;  %p13346_p4 = scmp.ne.s32.totalorder %s13337_s27, 0 }
  0x52   : > { %s8616_s13 = sshll.u32 %s10954_s12, 7  ;;  %s260_s9 = scalar_lea.sflag [#allocation3], %s10954_s12 }
  0x53   : > { %s10960_s18 = scalar_lea.vmem [#allocation2], %s8616_s13 }
  0x54   : > { %10748 = dma.done.wait (%p13346_p4), %s260_s9, 2048  }
  0x55   : > { %10750 = vsyncadd (%p13346_p4), %s260_s9, 4294965248  ;;  %p13347_p6 = scmp.eq.s32.totalorder %s10839_s25, 0 }
  0x57   : > { %10752 = dma.done.wait (%p13347_p6), [#allocation6], 4096   ;;  %p13348_p8 = pmov %p13347_p6 }
  0x58   : > { %vm323_vm0 = vcmask 261120   ;;  %v322_v0 = vld [vmem:[#allocation5 + $0x18] sm:$0xff]  ;;  %v321_v1 = vld [vmem:[#allocation5 + $0x10] sm:$0xff]  ;;  %v10971_v2 = vld [vmem:[%s10960_s18] sm:$0xff]  ;;  %vm3559_vm1 = vcmask 130048   ;;  %vm8009_vm2 = vcmask 523264  }
  0x59   : > { %10754 = vsyncadd (%p13348_p8), [#allocation6], 4294963200  ;;  %9442 = vmatprep.subr.mxu0 %v322_v0  ;;  %v320_v3 = vld [vmem:[#allocation5 + $0x8] sm:$0xff]  ;;  %9450 = vmatprep.mubr.msk.f32.mxu0 %vm323_vm0, %v10971_v2  ;;  %v319_v5 = vld [vmem:[#allocation5] sm:$0xff]  ;;  %s13158_s29 = scalar_lea.vmem [#allocation8], %s8616_s13  ;;  %s8981_s13 = sshll.u32 %s10839_s25, 11 }
  0x5a   : > { %9443 = vmatpush3.msra.mxu0 %v322_v0  ;;  %v10976_v4 = vld [vmem:[%s10960_s18 + $0x8] sm:$0xff]  ;;  %v10985_v6 = vld [vmem:[%s10960_s18 + $0x10] sm:$0xff]  ;;  %v10999_v8 = vld [vmem:[%s10960_s18 + $0x18] sm:$0xff]  ;;  %s8514_s15 = sshll.u32 %s13158_s29, 4  ;;  %s13244_s20 = scalar_lea.hbm %s13301_s6, %s8981_s13  ;;  %s13246_s15 = int_to_ptr.vmem [resolvable:$true] %s8514_s15 }
  0x5b   : > { %9444 = vmatprep.subr.mxu0 %v321_v1  ;;  %9474 = vmatprep.subr.msk.mxu1 %vm323_vm0, %v10976_v4  ;;  %v10988_v7 = vld [vmem:[%s10960_s18 + $0x48] sm:$0xff]  ;;  %v11002_v9 = vld [vmem:[%s10960_s18 + $0x40] sm:$0xff]  ;;  %v11026_v13 = vld [vmem:[%s10960_s18 + $0x30] sm:$0xff]  ;;  %s8500_s25 = scalar_lea.sflag [#allocation4], %s10954_s12  ;;  %s10705_s14 = scalar_lea.vmem %s13246_s15, 2048 }
  0x5c   : > { %9445 = vmatpush3.msra.mxu0 %v321_v1  ;;  %9475 = vmatpush3.xpose.msk.msra.mxu1 %vm323_vm0, %v10976_v4  ;;  %v11007_v10 = vld [vmem:[%s10960_s18 + $0x20] sm:$0xff]  ;;  %v11018_v11 = vld [vmem:[%s10960_s18 + $0x28] sm:$0xff]  ;;  %v11035_v14 = vld [vmem:[%s10960_s18 + $0x38] sm:$0xff]  ;;  %p10706_p5 = scmp.ne.s32.totalorder %s13246_s15, %s10705_s14  ;;  %p13407_p2 = scmp.ne.s32.totalorder %s13341_s30, 0 }
  0x5d   : > { %9446 = vmatprep.subr.mxu0 %v320_v3  ;;  %9476 = vmatprep.subr.msk.mxu1 %vm323_vm0, %v10971_v2  ;;  %v11021_v12 = vld [vmem:[%s10960_s18 + $0x68] sm:$0xff]  ;;  %v11042_v15 = vld [vmem:[%s10960_s18 + $0x50] sm:$0xff]  ;;  %v11049_v16 = vld [vmem:[%s10960_s18 + $0x58] sm:$0xff]  ;;  %s10780_s16 = smov [#allocation8]  }
  0x5e   : > { %9447 = vmatpush3.msra.mxu0 %v320_v3  ;;  %v11052_v17 = vld [vmem:[%s10960_s18 + $0x60] sm:$0xff]  ;;  %v11059_v18 = vld [vmem:[%s10960_s18 + $0x70] sm:$0xff]  ;;  %v11066_v19 = vld [vmem:[%s10960_s18 + $0x78] sm:$0xff]  ;;  %p10707_p7 = pnand %p10706_p5, %p13407_p2  ;;  %s10709_s8 = sshll.u32 %s10780_s16, 4  ;;  %s10710_s8 = int_to_ptr.vmem [resolvable:$false] %s10709_s8 }
  0x5f   : > { %9448 = vmatprep.subr.mxu0 %v319_v5  ;;  %v1169_v33 = vld [vmem:[#allocation5 + $0x38] sm:$0xff]  ;;  %v1168_v35 = vld [vmem:[#allocation5 + $0x30] sm:$0xff]  ;;  %v1167_v36 = vld [vmem:[#allocation5 + $0x28] sm:$0xff]  ;;  %s10711_s10 = scalar_lea.vmem %s10710_s8, 4096  ;;  %p10712_p13 = scmp.lt.s32.totalorder %s13246_s15, %s10710_s8 }
  0x60   : > { %9449 = vmatpush3.msra.mxu0 %v319_v5  ;;  %9477 = vmatpush3.xpose.msk.msra.mxu1 %vm323_vm0, %v10971_v2  ;;  %v1166_v38 = vld [vmem:[#allocation5 + $0x20] sm:$0xff]  ;;  %p10708_p12 = pneg %p10707_p7  ;;  %p10713_p0 = scmp.lt.s32.totalorder %s10711_s10, %s10705_s14 }
  0x61   : > { %9451 = vmatmul.mubr.msk.f32.vlgmr.msra.gmra.mxu0 %vm323_vm0, %v10976_v4  ;;  %9502 = vmatprep.subr.msk.mxu0 %vm323_vm0, %v10988_v7 }
  0x62   : > { %9453 = vmatprep.mubr.msk.f32.mxu0 %vm323_vm0, %v10985_v6  ;;  %9503 = vmatpush3.xpose.msk.msra.mxu0 %vm323_vm0, %v10988_v7  ;;  %p10714_p10 = por %p10713_p0, %p10712_p13 }
  0x63   : > { %9481 = vmatprep.subr.msk.mxu1 %vm323_vm0, %v10999_v8  ;;  %9504 = vmatprep.subr.msk.mxu0 %vm323_vm0, %v11002_v9 }
  0x64   : > { %p10715_p3 = pnand %p10714_p10, %p10708_p12 }
  0x65   : > { %9454 = vmatmul.mubr.msk.f32.gmra.mxu0 %vm323_vm0, %v10999_v8 }
  0x66   : > { %9456 = vmatprep.mubr.msk.f32.mxu0 %vm323_vm0, %v11007_v10  ;;  %9505 = vmatpush3.xpose.msk.msra.mxu0 %vm323_vm0, %v11002_v9 }
  0x67   : > { %9516 = vmatprep.subr.msk.mxu0 %vm323_vm0, %v11021_v12 }
  0x69   : > { %9457 = vmatmul.mubr.msk.f32.gmra.mxu0 %vm323_vm0, %v11018_v11 }
  0x6a   : > { %9459 = vmatprep.mubr.msk.f32.mxu0 %vm323_vm0, %v11026_v13 }
  0x6d   : > { %9460 = vmatmul.mubr.msk.f32.gmra.mxu0 %vm323_vm0, %v11035_v14 }
  0x6e   : > { %9462 = vmatprep.mubr.msk.f32.mxu0 %vm323_vm0, %v11002_v9 }
  0x71   : > { %9463 = vmatmul.mubr.msk.f32.gmra.mxu0 %vm323_vm0, %v10988_v7 }
  0x72   : > { %9465 = vmatprep.mubr.msk.f32.mxu0 %vm323_vm0, %v11042_v15 }
  0x75   : > { %9466 = vmatmul.mubr.msk.f32.gmra.mxu0 %vm323_vm0, %v11049_v16 }
  0x76   : > { %9468 = vmatprep.mubr.msk.f32.mxu0 %vm323_vm0, %v11052_v17 }
  0x79   : > { %9469 = vmatmul.mubr.msk.f32.gmra.mxu0 %vm323_vm0, %v11021_v12 }
  0x7a   : > { %9471 = vmatprep.mubr.msk.f32.mxu0 %vm323_vm0, %v11059_v18 }
  0x7d   : > { %9472 = vmatmul.mubr.msk.f32.gmra.mxu0 %vm323_vm0, %v11066_v19 }
 0x121   : > { %v9452_v20 = vpop.f32.mrf.mxu0 }
 0x123   : > { %v438_v21 = vpop.f32.mrf.mxu0 }
 0x124   : > { %9478 = vmatprep.mubr.msk.f32.mxu1 %vm323_vm0, %v438_v21 }
 0x125   : > { %v9455_v22 = vpop.f32.mrf.mxu0  ;;  %9479 = vmatmul.mubr.msk.f32.vlgmr.msra.gmra.mxu1 %vm323_vm0, %v9452_v20 }
 0x126   : > { %9482 = vmatpush3.xpose.msk.msra.mxu1 %vm323_vm0, %v10999_v8 }
 0x127   : > { %v448_v23 = vpop.f32.mrf.mxu0  ;;  %9483 = vmatprep.subr.msk.mxu1 %vm323_vm0, %v10985_v6 }
 0x128   : > { %9485 = vmatprep.mubr.msk.f32.mxu1 %vm323_vm0, %v448_v23 }
 0x129   : > { %v9458_v24 = vpop.f32.mrf.mxu0 }
 0x12a   : > { %9484 = vmatpush3.xpose.msk.msra.mxu1 %vm323_vm0, %v10985_v6 }
 0x12b   : > { %v458_v25 = vpop.f32.mrf.mxu0  ;;  %9488 = vmatprep.subr.msk.mxu1 %vm323_vm0, %v11018_v11 }
 0x12d   : > { %9486 = vmatmul.mubr.msk.f32.vlgmr.msra.gmra.mxu1 %vm323_vm0, %v9455_v22  ;;  %v9461_v26 = vpop.f32.mrf.mxu0 }
 0x12e   : > { %9489 = vmatpush3.xpose.msk.msra.mxu1 %vm323_vm0, %v11018_v11  ;;  %9492 = vmatprep.mubr.msk.f32.mxu1 %vm323_vm0, %v458_v25 }
 0x12f   : > { %v468_v27 = vpop.f32.mrf.mxu0  ;;  %9490 = vmatprep.subr.msk.mxu1 %vm323_vm0, %v11007_v10 }
 0x131   : > { %v9464_v28 = vpop.f32.mrf.mxu0 }
 0x132   : > { %9491 = vmatpush3.xpose.msk.msra.mxu1 %vm323_vm0, %v11007_v10 }
 0x133   : > { %v478_v29 = vpop.f32.mrf.mxu0  ;;  %9495 = vmatprep.subr.msk.mxu1 %vm323_vm0, %v11035_v14 }
 0x134   : > { %9506 = vmatprep.mubr.msk.f32.mxu0 %vm323_vm0, %v478_v29 }
 0x135   : > { %9493 = vmatmul.mubr.msk.f32.vlgmr.msra.gmra.mxu1 %vm323_vm0, %v9458_v24  ;;  %v9467_v30 = vpop.f32.mrf.mxu0  ;;  %9507 = vmatmul.mubr.msk.f32.vlgmr.msra.gmra.mxu0 %vm323_vm0, %v9464_v28 }
 0x136   : > { %9496 = vmatpush3.xpose.msk.msra.mxu1 %vm323_vm0, %v11035_v14  ;;  %9499 = vmatprep.mubr.msk.f32.mxu1 %vm323_vm0, %v468_v27 }
 0x137   : > { %9517 = vmatpush3.xpose.msk.msra.mxu0 %vm323_vm0, %v11021_v12  ;;  %v488_v31 = vpop.f32.mrf.mxu0  ;;  %9497 = vmatprep.subr.msk.mxu1 %vm323_vm0, %v11026_v13 }
 0x138   : > { %9518 = vmatprep.subr.msk.mxu0 %vm323_vm0, %v11052_v17 }
 0x139   : > { %v9470_v32 = vpop.f32.mrf.mxu0 }
 0x13a   : > { %9498 = vmatpush3.xpose.msk.msra.mxu1 %vm323_vm0, %v11026_v13 }
 0x13b   : > { %9519 = vmatpush3.xpose.msk.msra.mxu0 %vm323_vm0, %v11052_v17  ;;  %v498_v34 = vpop.f32.mrf.mxu0  ;;  %9509 = vmatprep.subr.msk.mxu1 %vm323_vm0, %v11049_v16 }
 0x13c   : > { %9520 = vmatprep.mubr.msk.f32.mxu0 %vm323_vm0, %v498_v34  ;;  %9530 = vmatprep.subr.mxu0 %v1169_v33 }
 0x13d   : > { %9500 = vmatmul.mubr.msk.f32.vlgmr.msra.gmra.mxu1 %vm323_vm0, %v9461_v26  ;;  %v9473_v37 = vpop.f32.mrf.mxu0 }
 0x13e   : > { %9510 = vmatpush3.xpose.msk.msra.mxu1 %vm323_vm0, %v11049_v16  ;;  %9513 = vmatprep.mubr.msk.f32.mxu1 %vm323_vm0, %v488_v31 }
 0x13f   : > { %9521 = vmatmul.mubr.msk.f32.vlgmr.msra.gmra.mxu0 %vm323_vm0, %v9470_v32  ;;  %9511 = vmatprep.subr.msk.mxu1 %vm323_vm0, %v11042_v15  ;;  %v508_v39 = vpop.f32.mrf.mxu0 }
 0x140   : > { %9531 = vmatpush3.msra.mxu0 %v1169_v33  ;;  %9538 = vmatprep.mubr.msk.f32.mxu0 %vm323_vm0, %v10971_v2 }
 0x141   : > { %9532 = vmatprep.subr.mxu0 %v1168_v35 }
 0x142   : > { %9533 = vmatpush3.msra.mxu0 %v1168_v35  ;;  %9512 = vmatpush3.xpose.msk.msra.mxu1 %vm323_vm0, %v11042_v15 }
 0x143   : > { %9534 = vmatprep.subr.mxu0 %v1167_v36  ;;  %9523 = vmatprep.subr.msk.mxu1 %vm323_vm0, %v11066_v19 }
 0x144   : > { %9535 = vmatpush3.msra.mxu0 %v1167_v36 }
 0x145   : > { %9536 = vmatprep.subr.mxu0 %v1166_v38  ;;  %9514 = vmatmul.mubr.msk.f32.vlgmr.msra.gmra.mxu1 %vm323_vm0, %v9467_v30 }
 0x146   : > { %9537 = vmatpush3.msra.mxu0 %v1166_v38  ;;  %9524 = vmatpush3.xpose.msk.msra.mxu1 %vm323_vm0, %v11066_v19 }
 0x147   : > { %9539 = vmatmul.mubr.msk.f32.vlgmr.msra.gmra.mxu0 %vm323_vm0, %v10976_v4  ;;  %9525 = vmatprep.subr.msk.mxu1 %vm323_vm0, %v11059_v18 }
 0x148   : > { %9541 = vmatprep.mubr.msk.f32.mxu0 %vm323_vm0, %v10985_v6  ;;  %9527 = vmatprep.mubr.msk.f32.mxu1 %vm323_vm0, %v508_v39  ;;  %v1966_v39 = vld [vmem:[#allocation5 + $0x50] sm:$0xff] }
 0x149   : > { %9590 = vmatprep.subr.msk.mxu0 %vm323_vm0, %v10988_v7 }
 0x14a   : > { %9526 = vmatpush3.xpose.msk.msra.mxu1 %vm323_vm0, %v11059_v18  ;;  %9591 = vmatpush3.xpose.msk.msra.mxu0 %vm323_vm0, %v10988_v7 }
 0x14b   : > { %9542 = vmatmul.mubr.msk.f32.gmra.mxu0 %vm323_vm0, %v10999_v8  ;;  %9562 = vmatprep.subr.msk.mxu1 %vm323_vm0, %v10976_v4 }
 0x14c   : > { %9544 = vmatprep.mubr.msk.f32.mxu0 %vm323_vm0, %v11007_v10  ;;  %9592 = vmatprep.subr.msk.mxu0 %vm323_vm0, %v11002_v9 }
 0x14d   : > { %9528 = vmatmul.mubr.msk.f32.vlgmr.msra.gmra.mxu1 %vm323_vm0, %v9473_v37  ;;  %v1967_v37 = vld [vmem:[#allocation5 + $0x58] sm:$0xff] }
 0x14e   : > { %9563 = vmatpush3.xpose.msk.msra.mxu1 %vm323_vm0, %v10976_v4  ;;  %9593 = vmatpush3.xpose.msk.msra.mxu0 %vm323_vm0, %v11002_v9 }
 0x14f   : > { %9545 = vmatmul.mubr.msk.f32.gmra.mxu0 %vm323_vm0, %v11018_v11  ;;  %9564 = vmatprep.subr.msk.mxu1 %vm323_vm0, %v10971_v2 }
 0x150   : > { %9547 = vmatprep.mubr.msk.f32.mxu0 %vm323_vm0, %v11026_v13  ;;  %9604 = vmatprep.subr.msk.mxu0 %vm323_vm0, %v11021_v12 }
 0x152   : > { %9565 = vmatpush3.xpose.msk.msra.mxu1 %vm323_vm0, %v10971_v2 }
 0x153   : > { %9548 = vmatmul.mubr.msk.f32.gmra.mxu0 %vm323_vm0, %v11035_v14  ;;  %9569 = vmatprep.subr.msk.mxu1 %vm323_vm0, %v10999_v8 }
 0x154   : > { %9550 = vmatprep.mubr.msk.f32.mxu0 %vm323_vm0, %v11002_v9 }
 0x157   : > { %9551 = vmatmul.mubr.msk.f32.gmra.mxu0 %vm323_vm0, %v10988_v7 }
 0x158   : > { %9553 = vmatprep.mubr.msk.f32.mxu0 %vm323_vm0, %v11042_v15 }
 0x15b   : > { %9554 = vmatmul.mubr.msk.f32.gmra.mxu0 %vm323_vm0, %v11049_v16 }
 0x15c   : > { %9556 = vmatprep.mubr.msk.f32.mxu0 %vm323_vm0, %v11052_v17 }
 0x15f   : > { %9557 = vmatmul.mubr.msk.f32.gmra.mxu0 %vm323_vm0, %v11021_v12 }
 0x160   : > { %9559 = vmatprep.mubr.msk.f32.mxu0 %vm323_vm0, %v11059_v18 }
 0x163   : > { %9560 = vmatmul.mubr.msk.f32.gmra.mxu0 %vm323_vm0, %v11066_v19 }
 0x1e5   : > { %v11182_v40 = vpop.f32.mrf.mxu1 }
 0x1e6   : > { %v3563_v41 = vsel %vm3559_vm1, %v11182_v40, -inf }
 0x1e7   : > { %3564 = vmax.xlane.f32.xlu0 %v3563_v41  ;;  %v11186_v42 = vpop.f32.mrf.mxu1  ;;  %v1965_v41 = vld [vmem:[#allocation5 + $0x48] sm:$0xff] }
 0x1e8   : > { %v3560_v43 = vsel %vm3559_vm1, %v11186_v42, -inf }
 0x1eb   : > { %3561 = vmax.xlane.f32.xlu0 %v3560_v43 }
 0x1ed   : > { %v11190_v44 = vpop.f32.mrf.mxu1 }
 0x1ee   : > { %v3569_v45 = vsel %vm3559_vm1, %v11190_v44, -inf }
 0x1ef   : > { %3570 = vmax.xlane.f32.xlu1 %v3569_v45  ;;  %v11194_v46 = vpop.f32.mrf.mxu1  ;;  %v1964_v45 = vld [vmem:[#allocation5 + $0x40] sm:$0xff] }
 0x1f0   : > { %v3566_v47 = vsel %vm3559_vm1, %v11194_v46, -inf }
 0x1f3   : > { %3567 = vmax.xlane.f32.xlu1 %v3566_v47 }
 0x1f5   : > { %v11198_v48 = vpop.f32.mrf.mxu1  ;;  %v11200_v49 = vpop.f32.mrf.mxu0 }
 0x1f6   : > { %v3575_v50 = vsel %vm3559_vm1, %v11198_v48, -inf  ;;  %v3587_v54 = vsel %vm3559_vm1, %v11200_v49, -inf }
 0x1f7   : > { %3576 = vmax.xlane.f32.xlu1 %v3575_v50  ;;  %v11204_v51 = vpop.f32.mrf.mxu1  ;;  %v11208_v53 = vpop.f32.mrf.mxu0 }
 0x1f8   : > { %v3572_v52 = vsel %vm3559_vm1, %v11204_v51, -inf  ;;  %v3584_v55 = vsel %vm3559_vm1, %v11208_v53, -inf }
 0x1f9   : > { %3573 = vmax.xlane.f32.xlu0 %v3572_v52 }
 0x1fb   : > { %3588 = vmax.xlane.f32.xlu1 %v3587_v54 }
 0x1fd   : > { %v11214_v56 = vpop.f32.mrf.mxu1  ;;  %3585 = vmax.xlane.f32.xlu0 %v3584_v55 }
 0x1fe   : > { %v3581_v57 = vsel %vm3559_vm1, %v11214_v56, -inf }
 0x1ff   : > { %v11218_v58 = vpop.f32.mrf.mxu0  ;;  %v11220_v59 = vpop.f32.mrf.mxu1  ;;  %3582 = vmax.xlane.f32.xlu1 %v3581_v57 }
 0x200   : > { %v3578_v60 = vsel %vm3559_vm1, %v11220_v59, -inf  ;;  %v3599_v62 = vsel %vm3559_vm1, %v11218_v58, -inf }
 0x201   : > { %v11224_v61 = vpop.f32.mrf.mxu0  ;;  %3579 = vmax.xlane.f32.xlu0 %v3578_v60 }
 0x202   : > { %v3596_v63 = vsel %vm3559_vm1, %v11224_v61, -inf }
 0x203   : > { %3600 = vmax.xlane.f32.xlu1 %v3599_v62 }
 0x205   : > { %v11230_v0 = vpop.f32.mrf.mxu1  ;;  %3597 = vmax.xlane.f32.xlu0 %v3596_v63 }
 0x206   : > { %v3593_v1 = vsel %vm3559_vm1, %v11230_v0, -inf }
 0x207   : > { %v9540_v3 = vpop.f32.mrf.mxu0  ;;  %v11234_v5 = vpop.f32.mrf.mxu1  ;;  %3594 = vmax.xlane.f32.xlu1 %v3593_v1 }
 0x208   : > { %v3590_v20 = vsel %vm3559_vm1, %v11234_v5, -inf }
 0x209   : > { %v1236_v21 = vpop.f32.mrf.mxu0  ;;  %3591 = vmax.xlane.f32.xlu0 %v3590_v20 }
 0x20a   : > { %9566 = vmatprep.mubr.msk.f32.mxu1 %vm323_vm0, %v1236_v21 }
 0x20b   : > { %v9543_v22 = vpop.f32.mrf.mxu0  ;;  %9567 = vmatmul.mubr.msk.f32.vlgmr.msra.gmra.mxu1 %vm323_vm0, %v9540_v3 }
 0x20c   : > { %9570 = vmatpush3.xpose.msk.msra.mxu1 %vm323_vm0, %v10999_v8 }
 0x20d   : > { %v1246_v23 = vpop.f32.mrf.mxu0  ;;  %9571 = vmatprep.subr.msk.mxu1 %vm323_vm0, %v10985_v6  ;;  %v11244_v24 = vpop.f32.mrf.mxu1 }
 0x20e   : > { %9573 = vmatprep.mubr.msk.f32.mxu1 %vm323_vm0, %v1246_v23  ;;  %v3605_v25 = vsel %vm3559_vm1, %v11244_v24, -inf }
 0x20f   : > { %v9546_v26 = vpop.f32.mrf.mxu0  ;;  %v11249_v27 = vpop.f32.mrf.mxu1  ;;  %3606 = vmax.xlane.f32.xlu1 %v3605_v25 }
 0x210   : > { %9572 = vmatpush3.xpose.msk.msra.mxu1 %vm323_vm0, %v10985_v6  ;;  %v3602_v28 = vsel %vm3559_vm1, %v11249_v27, -inf }
 0x211   : > { %v1256_v29 = vpop.f32.mrf.mxu0  ;;  %9576 = vmatprep.subr.msk.mxu1 %vm323_vm0, %v11018_v11  ;;  %3603 = vmax.xlane.f32.xlu0 %v3602_v28 }
 0x213   : > { %9574 = vmatmul.mubr.msk.f32.vlgmr.msra.gmra.mxu1 %vm323_vm0, %v9543_v22  ;;  %v9549_v30 = vpop.f32.mrf.mxu0 }
 0x214   : > { %9577 = vmatpush3.xpose.msk.msra.mxu1 %vm323_vm0, %v11018_v11  ;;  %9580 = vmatprep.mubr.msk.f32.mxu1 %vm323_vm0, %v1256_v29 }
 0x215   : > { %v1266_v31 = vpop.f32.mrf.mxu0  ;;  %9578 = vmatprep.subr.msk.mxu1 %vm323_vm0, %v11007_v10 }
 0x217   : > { %v9552_v32 = vpop.f32.mrf.mxu0 }
 0x218   : > { %9579 = vmatpush3.xpose.msk.msra.mxu1 %vm323_vm0, %v11007_v10 }
 0x219   : > { %v1276_v33 = vpop.f32.mrf.mxu0  ;;  %9583 = vmatprep.subr.msk.mxu1 %vm323_vm0, %v11035_v14 }
 0x21a   : > { %9594 = vmatprep.mubr.msk.f32.mxu0 %vm323_vm0, %v1276_v33 }
 0x21b   : > { %9581 = vmatmul.mubr.msk.f32.vlgmr.msra.gmra.mxu1 %vm323_vm0, %v9546_v26  ;;  %v9555_v34 = vpop.f32.mrf.mxu0  ;;  %9595 = vmatmul.mubr.msk.f32.vlgmr.msra.gmra.mxu0 %vm323_vm0, %v9552_v32 }
 0x21c   : > { %9584 = vmatpush3.xpose.msk.msra.mxu1 %vm323_vm0, %v11035_v14  ;;  %9587 = vmatprep.mubr.msk.f32.mxu1 %vm323_vm0, %v1266_v31 }
 0x21d   : > { %9605 = vmatpush3.xpose.msk.msra.mxu0 %vm323_vm0, %v11021_v12  ;;  %v1286_v35 = vpop.f32.mrf.mxu0  ;;  %9585 = vmatprep.subr.msk.mxu1 %vm323_vm0, %v11026_v13 }
 0x21e   : > { %9606 = vmatprep.subr.msk.mxu0 %vm323_vm0, %v11052_v17 }
 0x21f   : > { %v9558_v36 = vpop.f32.mrf.mxu0 }
 0x220   : > { %9586 = vmatpush3.xpose.msk.msra.mxu1 %vm323_vm0, %v11026_v13 }
 0x221   : > { %9607 = vmatpush3.xpose.msk.msra.mxu0 %vm323_vm0, %v11052_v17  ;;  %v1296_v38 = vpop.f32.mrf.mxu0  ;;  %9597 = vmatprep.subr.msk.mxu1 %vm323_vm0, %v11049_v16 }
 0x222   : > { %9608 = vmatprep.mubr.msk.f32.mxu0 %vm323_vm0, %v1296_v38  ;;  %9618 = vmatprep.subr.mxu0 %v1967_v37 }
 0x223   : > { %9588 = vmatmul.mubr.msk.f32.vlgmr.msra.gmra.mxu1 %vm323_vm0, %v9549_v30  ;;  %v9561_v43 = vpop.f32.mrf.mxu0 }
 0x224   : > { %9598 = vmatpush3.xpose.msk.msra.mxu1 %vm323_vm0, %v11049_v16  ;;  %9601 = vmatprep.mubr.msk.f32.mxu1 %vm323_vm0, %v1286_v35 }
 0x225   : > { %9609 = vmatmul.mubr.msk.f32.vlgmr.msra.gmra.mxu0 %vm323_vm0, %v9558_v36  ;;  %9599 = vmatprep.subr.msk.mxu1 %vm323_vm0, %v11042_v15  ;;  %v1306_v47 = vpop.f32.mrf.mxu0 }
 0x226   : > { %9619 = vmatpush3.msra.mxu0 %v1967_v37  ;;  %9626 = vmatprep.mubr.msk.f32.mxu0 %vm323_vm0, %v10971_v2 }
 0x227   : > { %9620 = vmatprep.subr.mxu0 %v1966_v39 }
 0x228   : > { %9621 = vmatpush3.msra.mxu0 %v1966_v39  ;;  %9600 = vmatpush3.xpose.msk.msra.mxu1 %vm323_vm0, %v11042_v15 }
 0x229   : > { %9622 = vmatprep.subr.mxu0 %v1965_v41  ;;  %9611 = vmatprep.subr.msk.mxu1 %vm323_vm0, %v11066_v19 }
 0x22a   : > { %9623 = vmatpush3.msra.mxu0 %v1965_v41 }
 0x22b   : > { %9624 = vmatprep.subr.mxu0 %v1964_v45  ;;  %9602 = vmatmul.mubr.msk.f32.vlgmr.msra.gmra.mxu1 %vm323_vm0, %v9555_v34 }
 0x22c   : > { %9625 = vmatpush3.msra.mxu0 %v1964_v45  ;;  %9612 = vmatpush3.xpose.msk.msra.mxu1 %vm323_vm0, %v11066_v19 }
 0x22d   : > { %9627 = vmatmul.mubr.msk.f32.vlgmr.msra.gmra.mxu0 %vm323_vm0, %v10976_v4  ;;  %9613 = vmatprep.subr.msk.mxu1 %vm323_vm0, %v11059_v18 }
 0x22e   : > { %9629 = vmatprep.mubr.msk.f32.mxu0 %vm323_vm0, %v10985_v6  ;;  %9615 = vmatprep.mubr.msk.f32.mxu1 %vm323_vm0, %v1306_v47 }
 0x22f   : > { %9678 = vmatprep.subr.msk.mxu0 %vm323_vm0, %v10988_v7 }
 0x230   : > { %9614 = vmatpush3.xpose.msk.msra.mxu1 %vm323_vm0, %v11059_v18  ;;  %9679 = vmatpush3.xpose.msk.msra.mxu0 %vm323_vm0, %v10988_v7 }
 0x231   : > { %9630 = vmatmul.mubr.msk.f32.gmra.mxu0 %vm323_vm0, %v10999_v8  ;;  %9650 = vmatprep.subr.msk.mxu1 %vm323_vm0, %v10976_v4 }
 0x232   : > { %9632 = vmatprep.mubr.msk.f32.mxu0 %vm323_vm0, %v11007_v10  ;;  %9680 = vmatprep.subr.msk.mxu0 %vm323_vm0, %v11002_v9 }
 0x233   : > { %9616 = vmatmul.mubr.msk.f32.vlgmr.msra.gmra.mxu1 %vm323_vm0, %v9561_v43 }
 0x234   : > { %9651 = vmatpush3.xpose.msk.msra.mxu1 %vm323_vm0, %v10976_v4  ;;  %9681 = vmatpush3.xpose.msk.msra.mxu0 %vm323_vm0, %v11002_v9 }
 0x235   : > { %9633 = vmatmul.mubr.msk.f32.gmra.mxu0 %vm323_vm0, %v11018_v11  ;;  %9652 = vmatprep.subr.msk.mxu1 %vm323_vm0, %v10971_v2 }
 0x236   : > { %9635 = vmatprep.mubr.msk.f32.mxu0 %vm323_vm0, %v11026_v13  ;;  %9692 = vmatprep.subr.msk.mxu0 %vm323_vm0, %v11021_v12 }
 0x238   : > { %9653 = vmatpush3.xpose.msk.msra.mxu1 %vm323_vm0, %v10971_v2 }
 0x239   : > { %9636 = vmatmul.mubr.msk.f32.gmra.mxu0 %vm323_vm0, %v11035_v14  ;;  %9657 = vmatprep.subr.msk.mxu1 %vm323_vm0, %v10999_v8 }
 0x23a   : > { %9638 = vmatprep.mubr.msk.f32.mxu0 %vm323_vm0, %v11002_v9 }
 0x23d   : > { %9639 = vmatmul.mubr.msk.f32.gmra.mxu0 %vm323_vm0, %v10988_v7 }
 0x23e   : > { %9641 = vmatprep.mubr.msk.f32.mxu0 %vm323_vm0, %v11042_v15 }
 0x241   : > { %9642 = vmatmul.mubr.msk.f32.gmra.mxu0 %vm323_vm0, %v11049_v16 }
 0x242   : > { %9644 = vmatprep.mubr.msk.f32.mxu0 %vm323_vm0, %v11052_v17 }
 0x245   : > { %9645 = vmatmul.mubr.msk.f32.gmra.mxu0 %vm323_vm0, %v11021_v12 }
 0x246   : > { %9647 = vmatprep.mubr.msk.f32.mxu0 %vm323_vm0, %v11059_v18 }
 0x249   : > { %9648 = vmatmul.mubr.msk.f32.gmra.mxu0 %vm323_vm0, %v11066_v19 }
 0x270   : > { %v3565_v50 = vpop.xlane.xlu0 %3564 }
 0x271   : > { %v3753_v52 = vsub.f32 %v11182_v40, %v3565_v50 }
 0x273   : > { %v3818_v54 = vmul.f32 1.442695, %v3753_v52 }
 0x274   : > { %v3562_v55 = vpop.xlane.xlu0 %3561 }
 0x275   : > { %10305 = vpow2.f32 %v3818_v54  ;;  %v3752_v57 = vsub.f32 %v11186_v42, %v3562_v55 }
 0x277   : > { %v3816_v60 = vmul.f32 1.442695, %v3752_v57 }
 0x278   : > { %v3571_v62 = vpop.xlane.xlu1 %3570 }
 0x279   : > { %10307 = vpow2.f32 %v3816_v60  ;;  %v3755_v63 = vsub.f32 %v11190_v44, %v3571_v62 }
 0x27b   : > { %v3822_v1 = vmul.f32 1.442695, %v3755_v63 }
 0x27c   : > { %v3568_v3 = vpop.xlane.xlu1 %3567 }
 0x27d   : > { %10309 = vpow2.f32 %v3822_v1  ;;  %v3754_v20 = vsub.f32 %v11194_v46, %v3568_v3 }
 0x27f   : > { %v3820_v21 = vmul.f32 1.442695, %v3754_v20 }
 0x280   : > { %v3577_v22 = vpop.xlane.xlu1 %3576 }
 0x281   : > { %10311 = vpow2.f32 %v3820_v21  ;;  %v3757_v40 = vsub.f32 %v11198_v48, %v3577_v22 }
 0x282   : > { %v11363_v23 = vpop.eup %10305  ;;  %v3574_v25 = vpop.xlane.xlu0 %3573 }
 0x283   : > { %v3826_v26 = vmul.f32 1.442695, %v3757_v40  ;;  %v3756_v42 = vsub.f32 %v11204_v51, %v3574_v25  ;;  %v3947_v28 = vsel %vm3559_vm1, %v11363_v23, 0.0 }
 0x284   : > { %v3589_v44 = vpop.xlane.xlu1 %3588  ;;  %3948 = vadd.xlane.f32.xlu1 %v3947_v28 }
 0x285   : > { %10313 = vpow2.f32 %v3826_v26  ;;  %v3824_v29 = vmul.f32 1.442695, %v3756_v42  ;;  %v3761_v46 = vsub.f32 %v11200_v49, %v3589_v44 }
 0x286   : > { %v11369_v30 = vpop.eup %10307  ;;  %v3586_v31 = vpop.xlane.xlu0 %3585 }
 0x287   : > { %10315 = vpow2.f32 %v3824_v29  ;;  %v3834_v48 = vmul.f32 1.442695, %v3761_v46  ;;  %v3760_v32 = vsub.f32 %v11208_v53, %v3586_v31  ;;  %v3944_v33 = vsel %vm3559_vm1, %v11369_v30, 0.0 }
 0x288   : > { %v3583_v51 = vpop.xlane.xlu1 %3582  ;;  %3945 = vadd.xlane.f32.xlu0 %v3944_v33 }
 0x289   : > { %10317 = vpow2.f32 %v3834_v48  ;;  %v3832_v34 = vmul.f32 1.442695, %v3760_v32  ;;  %v3759_v35 = vsub.f32 %v11214_v56, %v3583_v51 }
 0x28a   : > { %v11375_v36 = vpop.eup %10309  ;;  %v3580_v37 = vpop.xlane.xlu0 %3579 }
 0x28b   : > { %10319 = vpow2.f32 %v3832_v34  ;;  %v3830_v49 = vmul.f32 1.442695, %v3759_v35  ;;  %v3758_v38 = vsub.f32 %v11220_v59, %v3580_v37  ;;  %v3953_v39 = vsel %vm3559_vm1, %v11375_v36, 0.0 }
 0x28c   : > { %3954 = vadd.xlane.f32.xlu1 %v3953_v39  ;;  %v3601_v53 = vpop.xlane.xlu1 %3600 }
 0x28d   : > { %10321 = vpow2.f32 %v3830_v49  ;;  %v3828_v41 = vmul.f32 1.442695, %v3758_v38  ;;  %v3765_v43 = vsub.f32 %v11218_v58, %v3601_v53 }
 0x28e   : > { %v11381_v45 = vpop.eup %10311  ;;  %v3598_v47 = vpop.xlane.xlu0 %3597 }
 0x28f   : > { %10323 = vpow2.f32 %v3828_v41  ;;  %v3842_v56 = vmul.f32 1.442695, %v3765_v43  ;;  %v3764_v50 = vsub.f32 %v11224_v61, %v3598_v47  ;;  %v3950_v52 = vsel %vm3559_vm1, %v11381_v45, 0.0 }
 0x290   : > { %v3595_v59 = vpop.xlane.xlu1 %3594  ;;  %3951 = vadd.xlane.f32.xlu0 %v3950_v52 }
 0x291   : > { %10325 = vpow2.f32 %v3842_v56  ;;  %v3840_v54 = vmul.f32 1.442695, %v3764_v50  ;;  %v3763_v55 = vsub.f32 %v11230_v0, %v3595_v59 }
 0x292   : > { %v11387_v57 = vpop.eup %10313  ;;  %v3592_v60 = vpop.xlane.xlu0 %3591 }
 0x293   : > { %10327 = vpow2.f32 %v3840_v54  ;;  %v3838_v58 = vmul.f32 1.442695, %v3763_v55  ;;  %v3762_v62 = vsub.f32 %v11234_v5, %v3592_v60  ;;  %v3959_v63 = vsel %vm3559_vm1, %v11387_v57, 0.0 }
 0x294   : > { %v11392_v61 = vpop.eup %10315  ;;  %3960 = vadd.xlane.f32.xlu1 %v3959_v63 }
 0x295   : > { %10329 = vpow2.f32 %v3838_v58  ;;  %v3836_v1 = vmul.f32 1.442695, %v3762_v62  ;;  %v3956_v3 = vsel %vm3559_vm1, %v11392_v61, 0.0 }
 0x296   : > { %v11396_v20 = vpop.eup %10317  ;;  %3957 = vadd.xlane.f32.xlu0 %v3956_v3 }
 0x297   : > { %10331 = vpow2.f32 %v3836_v1  ;;  %v3971_v0 = vsel %vm3559_vm1, %v11396_v20, 0.0 }
 0x298   : > { %v11400_v21 = vpop.eup %10319  ;;  %3972 = vadd.xlane.f32.xlu1 %v3971_v0  ;;  %v3607_v5 = vpop.xlane.xlu1 %3606 }
 0x299   : > { %v3767_v22 = vsub.f32 %v11244_v24, %v3607_v5  ;;  %v3968_v40 = vsel %vm3559_vm1, %v11400_v21, 0.0 }
 0x29a   : > { %v11405_v25 = vpop.eup %10321  ;;  %3969 = vadd.xlane.f32.xlu0 %v3968_v40  ;;  %v3604_v26 = vpop.xlane.xlu0 %3603 }
 0x29b   : > { %v3846_v42 = vmul.f32 1.442695, %v3767_v22  ;;  %v3766_v28 = vsub.f32 %v11249_v27, %v3604_v26  ;;  %v3965_v44 = vsel %vm3559_vm1, %v11405_v25, 0.0 }
 0x29c   : > { %v11410_v29 = vpop.eup %10323  ;;  %3966 = vadd.xlane.f32.xlu1 %v3965_v44 }
 0x29d   : > { %10333 = vpow2.f32 %v3846_v42  ;;  %v3844_v46 = vmul.f32 1.442695, %v3766_v28  ;;  %v3962_v24 = vsel %vm3559_vm1, %v11410_v29, 0.0 }
 0x29e   : > { %v11414_v31 = vpop.eup %10325  ;;  %3963 = vadd.xlane.f32.xlu0 %v3962_v24 }
 0x29f   : > { %13349 = vst [vmem:[#allocation12_spill] sm:$0xff] %v11414_v31  ;;  %10335 = vpow2.f32 %v3844_v46  ;;  %v3983_v48 = vsel %vm3559_vm1, %v11414_v31, 0.0 }
 0x2a0   : > { %v11418_v32 = vpop.eup %10327  ;;  %3984 = vadd.xlane.f32.xlu1 %v3983_v48 }
 0x2a1   : > { %13350 = vst [vmem:[#allocation13_spill] sm:$0xff] %v11418_v32  ;;  %v3980_v27 = vsel %vm3559_vm1, %v11418_v32, 0.0 }
 0x2a2   : > { %v11422_v33 = vpop.eup %10329  ;;  %3981 = vadd.xlane.f32.xlu0 %v3980_v27 }
 0x2a3   : > { %v3977_v51 = vsel %vm3559_vm1, %v11422_v33, 0.0 }
 0x2a4   : > { %v11426_v34 = vpop.eup %10331  ;;  %3978 = vadd.xlane.f32.xlu1 %v3977_v51 }
 0x2a5   : > { %v3974_v35 = vsel %vm3559_vm1, %v11426_v34, 0.0 }
 0x2a6   : > { %3975 = vadd.xlane.f32.xlu0 %v3974_v35 }
 0x2aa   : > { %v11430_v37 = vpop.eup %10333 }
 0x2ab   : > { %13351 = vst [vmem:[#allocation14_spill] sm:$0xff] %v11430_v37  ;;  %v3989_v49 = vsel %vm3559_vm1, %v11430_v37, 0.0  ;;  %v6707_v37 = vld [vmem:[#allocation7 + $0x68] sm:$0xff] }
 0x2ac   : > { %v11434_v38 = vpop.eup %10335  ;;  %3990 = vadd.xlane.f32.xlu1 %v3989_v49 }
 0x2ad   : > { %13352 = vst [vmem:[#allocation15_spill] sm:$0xff] %v11434_v38  ;;  %v3986_v39 = vsel %vm3559_vm1, %v11434_v38, 0.0 }
 0x2ae   : > { %3987 = vadd.xlane.f32.xlu0 %v3986_v39 }
 0x2cb   : > { %v11438_v53 = vpop.f32.mrf.mxu1 }
 0x2cc   : > { %v3611_v41 = vsel %vm3559_vm1, %v11438_v53, -inf }
 0x2cd   : > { %3612 = vmax.xlane.f32.xlu1 %v3611_v41  ;;  %v11442_v43 = vpop.f32.mrf.mxu1 }
 0x2ce   : > { %v3608_v47 = vsel %vm3559_vm1, %v11442_v43, -inf }
 0x2cf   : > { %3609 = vmax.xlane.f32.xlu0 %v3608_v47 }
 0x2d3   : > { %v11446_v56 = vpop.f32.mrf.mxu1 }
 0x2d4   : > { %v3617_v50 = vsel %vm3559_vm1, %v11446_v56, -inf }
 0x2d5   : > { %3618 = vmax.xlane.f32.xlu1 %v3617_v50  ;;  %v11450_v52 = vpop.f32.mrf.mxu1 }
 0x2d6   : > { %v3614_v59 = vsel %vm3559_vm1, %v11450_v52, -inf }
 0x2d7   : > { %3615 = vmax.xlane.f32.xlu0 %v3614_v59 }
 0x2db   : > { %v11454_v54 = vpop.f32.mrf.mxu1  ;;  %v11456_v55 = vpop.f32.mrf.mxu0 }
 0x2dc   : > { %v3623_v60 = vsel %vm3559_vm1, %v11454_v54, -inf  ;;  %v3635_v1 = vsel %vm3559_vm1, %v11456_v55, -inf }
 0x2dd   : > { %3624 = vmax.xlane.f32.xlu1 %v3623_v60  ;;  %v11460_v58 = vpop.f32.mrf.mxu1  ;;  %v11464_v63 = vpop.f32.mrf.mxu0 }
 0x2de   : > { %v3620_v62 = vsel %vm3559_vm1, %v11460_v58, -inf  ;;  %v3632_v3 = vsel %vm3559_vm1, %v11464_v63, -inf }
 0x2df   : > { %3621 = vmax.xlane.f32.xlu0 %v3620_v62 }
 0x2e1   : > { %3636 = vmax.xlane.f32.xlu1 %v3635_v1 }
 0x2e3   : > { %v11470_v0 = vpop.f32.mrf.mxu1  ;;  %3633 = vmax.xlane.f32.xlu0 %v3632_v3 }
 0x2e4   : > { %v3629_v5 = vsel %vm3559_vm1, %v11470_v0, -inf }
 0x2e5   : > { %v11474_v22 = vpop.f32.mrf.mxu0  ;;  %v11476_v40 = vpop.f32.mrf.mxu1  ;;  %3630 = vmax.xlane.f32.xlu1 %v3629_v5 }
 0x2e6   : > { %v3626_v26 = vsel %vm3559_vm1, %v11476_v40, -inf  ;;  %v3647_v28 = vsel %vm3559_vm1, %v11474_v22, -inf }
 0x2e7   : > { %v11480_v42 = vpop.f32.mrf.mxu0  ;;  %3627 = vmax.xlane.f32.xlu0 %v3626_v26 }
 0x2e8   : > { %v3644_v44 = vsel %vm3559_vm1, %v11480_v42, -inf }
 0x2e9   : > { %3648 = vmax.xlane.f32.xlu1 %v3647_v28 }
 0x2eb   : > { %v11486_v46 = vpop.f32.mrf.mxu1  ;;  %3645 = vmax.xlane.f32.xlu0 %v3644_v44 }
 0x2ec   : > { %v3641_v24 = vsel %vm3559_vm1, %v11486_v46, -inf }
 0x2ed   : > { %v9628_v48 = vpop.f32.mrf.mxu0  ;;  %v11490_v27 = vpop.f32.mrf.mxu1  ;;  %3642 = vmax.xlane.f32.xlu1 %v3641_v24 }
 0x2ee   : > { %v3638_v51 = vsel %vm3559_vm1, %v11490_v27, -inf }
 0x2ef   : > { %v2034_v35 = vpop.f32.mrf.mxu0  ;;  %3639 = vmax.xlane.f32.xlu0 %v3638_v51 }
 0x2f0   : > { %9654 = vmatprep.mubr.msk.f32.mxu1 %vm323_vm0, %v2034_v35  ;;  %v2764_v35 = vld [vmem:[#allocation5 + $0x70] sm:$0xff] }
 0x2f1   : > { %v9631_v49 = vpop.f32.mrf.mxu0  ;;  %9655 = vmatmul.mubr.msk.f32.vlgmr.msra.gmra.mxu1 %vm323_vm0, %v9628_v48  ;;  %v2765_v48 = vld [vmem:[#allocation5 + $0x78] sm:$0xff] }
 0x2f2   : > { %9658 = vmatpush3.xpose.msk.msra.mxu1 %vm323_vm0, %v10999_v8 }
 0x2f3   : > { %v2044_v39 = vpop.f32.mrf.mxu0  ;;  %9659 = vmatprep.subr.msk.mxu1 %vm323_vm0, %v10985_v6  ;;  %v11500_v41 = vpop.f32.mrf.mxu1 }
 0x2f4   : > { %9661 = vmatprep.mubr.msk.f32.mxu1 %vm323_vm0, %v2044_v39  ;;  %v3653_v47 = vsel %vm3559_vm1, %v11500_v41, -inf }
 0x2f5   : > { %v9634_v50 = vpop.f32.mrf.mxu0  ;;  %v11505_v59 = vpop.f32.mrf.mxu1  ;;  %3654 = vmax.xlane.f32.xlu1 %v3653_v47  ;;  %v2762_v47 = vld [vmem:[#allocation5 + $0x60] sm:$0xff] }
 0x2f6   : > { %9660 = vmatpush3.xpose.msk.msra.mxu1 %vm323_vm0, %v10985_v6  ;;  %v3650_v60 = vsel %vm3559_vm1, %v11505_v59, -inf }
 0x2f7   : > { %v2054_v62 = vpop.f32.mrf.mxu0  ;;  %9664 = vmatprep.subr.msk.mxu1 %vm323_vm0, %v11018_v11  ;;  %3651 = vmax.xlane.f32.xlu0 %v3650_v60 }
 0x2f9   : > { %9662 = vmatmul.mubr.msk.f32.vlgmr.msra.gmra.mxu1 %vm323_vm0, %v9631_v49  ;;  %v9637_v1 = vpop.f32.mrf.mxu0  ;;  %v2763_v49 = vld [vmem:[#allocation5 + $0x68] sm:$0xff] }
 0x2fa   : > { %9665 = vmatpush3.xpose.msk.msra.mxu1 %vm323_vm0, %v11018_v11  ;;  %9668 = vmatprep.mubr.msk.f32.mxu1 %vm323_vm0, %v2054_v62 }
 0x2fb   : > { %v2064_v3 = vpop.f32.mrf.mxu0  ;;  %9666 = vmatprep.subr.msk.mxu1 %vm323_vm0, %v11007_v10 }
 0x2fd   : > { %v9640_v5 = vpop.f32.mrf.mxu0 }
 0x2fe   : > { %9667 = vmatpush3.xpose.msk.msra.mxu1 %vm323_vm0, %v11007_v10 }
 0x2ff   : > { %v2074_v26 = vpop.f32.mrf.mxu0  ;;  %9671 = vmatprep.subr.msk.mxu1 %vm323_vm0, %v11035_v14 }
 0x300   : > { %9682 = vmatprep.mubr.msk.f32.mxu0 %vm323_vm0, %v2074_v26 }
 0x301   : > { %9669 = vmatmul.mubr.msk.f32.vlgmr.msra.gmra.mxu1 %vm323_vm0, %v9634_v50  ;;  %v9643_v28 = vpop.f32.mrf.mxu0  ;;  %9683 = vmatmul.mubr.msk.f32.vlgmr.msra.gmra.mxu0 %vm323_vm0, %v9640_v5 }
 0x302   : > { %9672 = vmatpush3.xpose.msk.msra.mxu1 %vm323_vm0, %v11035_v14  ;;  %9675 = vmatprep.mubr.msk.f32.mxu1 %vm323_vm0, %v2064_v3 }
 0x303   : > { %9693 = vmatpush3.xpose.msk.msra.mxu0 %vm323_vm0, %v11021_v12  ;;  %v2084_v44 = vpop.f32.mrf.mxu0  ;;  %9673 = vmatprep.subr.msk.mxu1 %vm323_vm0, %v11026_v13 }
 0x304   : > { %9694 = vmatprep.subr.msk.mxu0 %vm323_vm0, %v11052_v17 }
 0x305   : > { %v9646_v24 = vpop.f32.mrf.mxu0 }
 0x306   : > { %9674 = vmatpush3.xpose.msk.msra.mxu1 %vm323_vm0, %v11026_v13 }
 0x307   : > { %9695 = vmatpush3.xpose.msk.msra.mxu0 %vm323_vm0, %v11052_v17  ;;  %v2094_v51 = vpop.f32.mrf.mxu0  ;;  %9685 = vmatprep.subr.msk.mxu1 %vm323_vm0, %v11049_v16 }
 0x308   : > { %9696 = vmatprep.mubr.msk.f32.mxu0 %vm323_vm0, %v2094_v51  ;;  %9706 = vmatprep.subr.mxu0 %v2765_v48 }
 0x309   : > { %9676 = vmatmul.mubr.msk.f32.vlgmr.msra.gmra.mxu1 %vm323_vm0, %v9637_v1  ;;  %v9649_v39 = vpop.f32.mrf.mxu0 }
 0x30a   : > { %9686 = vmatpush3.xpose.msk.msra.mxu1 %vm323_vm0, %v11049_v16  ;;  %9689 = vmatprep.mubr.msk.f32.mxu1 %vm323_vm0, %v2084_v44 }
 0x30b   : > { %9697 = vmatmul.mubr.msk.f32.vlgmr.msra.gmra.mxu0 %vm323_vm0, %v9646_v24  ;;  %9687 = vmatprep.subr.msk.mxu1 %vm323_vm0, %v11042_v15  ;;  %v2104_v50 = vpop.f32.mrf.mxu0 }
 0x30c   : > { %9707 = vmatpush3.msra.mxu0 %v2765_v48  ;;  %9714 = vmatprep.mubr.msk.f32.mxu0 %vm323_vm0, %v10971_v2  ;;  %v11581_v2 = vld [vmem:[%s10960_s18 + $0x8] sm:$0xff] }
 0x30d   : > { %9708 = vmatprep.subr.mxu0 %v2764_v35 }
 0x30e   : > { %9709 = vmatpush3.msra.mxu0 %v2764_v35  ;;  %9688 = vmatpush3.xpose.msk.msra.mxu1 %vm323_vm0, %v11042_v15 }
 0x30f   : > { %9710 = vmatprep.subr.mxu0 %v2763_v49  ;;  %9699 = vmatprep.subr.msk.mxu1 %vm323_vm0, %v11066_v19 }
 0x310   : > { %9711 = vmatpush3.msra.mxu0 %v2763_v49 }
 0x311   : > { %9712 = vmatprep.subr.mxu0 %v2762_v47  ;;  %9690 = vmatmul.mubr.msk.f32.vlgmr.msra.gmra.mxu1 %vm323_vm0, %v9643_v28 }
 0x312   : > { %9713 = vmatpush3.msra.mxu0 %v2762_v47  ;;  %9700 = vmatpush3.xpose.msk.msra.mxu1 %vm323_vm0, %v11066_v19 }
 0x313   : > { %9715 = vmatmul.mubr.msk.f32.vlgmr.msra.gmra.mxu0 %vm323_vm0, %v10976_v4  ;;  %9701 = vmatprep.subr.msk.mxu1 %vm323_vm0, %v11059_v18 }
 0x314   : > { %9717 = vmatprep.mubr.msk.f32.mxu0 %vm323_vm0, %v10985_v6  ;;  %9703 = vmatprep.mubr.msk.f32.mxu1 %vm323_vm0, %v2104_v50  ;;  %v11607_v6 = vld [vmem:[%s10960_s18 + $0x48] sm:$0xff] }
 0x315   : > { %9766 = vmatprep.subr.msk.mxu0 %vm323_vm0, %v10988_v7 }
 0x316   : > { %9702 = vmatpush3.xpose.msk.msra.mxu1 %vm323_vm0, %v11059_v18  ;;  %9767 = vmatpush3.xpose.msk.msra.mxu0 %vm323_vm0, %v10988_v7 }
 0x317   : > { %9718 = vmatmul.mubr.msk.f32.gmra.mxu0 %vm323_vm0, %v10999_v8  ;;  %9738 = vmatprep.subr.msk.mxu1 %vm323_vm0, %v10976_v4  ;;  %v11590_v4 = vld [vmem:[%s10960_s18] sm:$0xff] }
 0x318   : > { %9720 = vmatprep.mubr.msk.f32.mxu0 %vm323_vm0, %v11007_v10  ;;  %9768 = vmatprep.subr.msk.mxu0 %vm323_vm0, %v11002_v9 }
 0x319   : > { %9704 = vmatmul.mubr.msk.f32.vlgmr.msra.gmra.mxu1 %vm323_vm0, %v9649_v39 }
 0x31a   : > { %9739 = vmatpush3.xpose.msk.msra.mxu1 %vm323_vm0, %v11581_v2  ;;  %9769 = vmatpush3.xpose.msk.msra.mxu0 %vm323_vm0, %v11002_v9 }
 0x31b   : > { %9721 = vmatmul.mubr.msk.f32.gmra.mxu0 %vm323_vm0, %v11018_v11  ;;  %9740 = vmatprep.subr.msk.mxu1 %vm323_vm0, %v11590_v4 }
 0x31c   : > { %9723 = vmatprep.mubr.msk.f32.mxu0 %vm323_vm0, %v11026_v13  ;;  %9780 = vmatprep.subr.msk.mxu0 %vm323_vm0, %v11021_v12 }
 0x31e   : > { %9741 = vmatpush3.xpose.msk.msra.mxu1 %vm323_vm0, %v11590_v4 }
 0x31f   : > { %9724 = vmatmul.mubr.msk.f32.gmra.mxu0 %vm323_vm0, %v11035_v14  ;;  %9745 = vmatprep.subr.msk.mxu1 %vm323_vm0, %v10999_v8 }
 0x320   : > { %9726 = vmatprep.mubr.msk.f32.mxu0 %vm323_vm0, %v11002_v9 }
 0x323   : > { %9727 = vmatmul.mubr.msk.f32.gmra.mxu0 %vm323_vm0, %v11607_v6 }
 0x324   : > { %9729 = vmatprep.mubr.msk.f32.mxu0 %vm323_vm0, %v11042_v15 }
 0x327   : > { %9730 = vmatmul.mubr.msk.f32.gmra.mxu0 %vm323_vm0, %v11049_v16 }
 0x328   : > { %9732 = vmatprep.mubr.msk.f32.mxu0 %vm323_vm0, %v11052_v17 }
 0x32b   : > { %9733 = vmatmul.mubr.msk.f32.gmra.mxu0 %vm323_vm0, %v11021_v12 }
 0x32c   : > { %9735 = vmatprep.mubr.msk.f32.mxu0 %vm323_vm0, %v11059_v18 }
 0x32f   : > { %9736 = vmatmul.mubr.msk.f32.gmra.mxu0 %vm323_vm0, %v11066_v19 }
 0x3b1   : > { %v11623_v7 = vpop.f32.mrf.mxu1 }
 0x3b2   : > { %v3659_v8 = vsel %vm3559_vm1, %v11623_v7, -inf }
 0x3b3   : > { %3660 = vmax.xlane.f32.xlu1 %v3659_v8  ;;  %v11627_v9 = vpop.f32.mrf.mxu1 }
 0x3b4   : > { %v3656_v10 = vsel %vm3559_vm1, %v11627_v9, -inf }
 0x3b5   : > { %3657 = vmax.xlane.f32.xlu0 %v3656_v10 }
 0x3b9   : > { %v11631_v11 = vpop.f32.mrf.mxu1 }
 0x3ba   : > { %v3665_v12 = vsel %vm3559_vm1, %v11631_v11, -inf }
 0x3bb   : > { %3666 = vmax.xlane.f32.xlu1 %v3665_v12  ;;  %v11635_v13 = vpop.f32.mrf.mxu1  ;;  %v11682_v12 = vld [vmem:[%s10960_s18 + $0x18] sm:$0xff] }
 0x3bc   : > { %13353 = vst [vmem:[#allocation16_spill] sm:$0xff] %v11635_v13  ;;  %v3662_v14 = vsel %vm3559_vm1, %v11635_v13, -inf }
 0x3bd   : > { %3663 = vmax.xlane.f32.xlu0 %v3662_v14 }
 0x3c1   : > { %v11639_v15 = vpop.f32.mrf.mxu1  ;;  %v11641_v16 = vpop.f32.mrf.mxu0 }
 0x3c2   : > { %13354 = vst [vmem:[#allocation17_spill] sm:$0xff] %v11639_v15  ;;  %13355 = vst [vmem:[#allocation18_spill] sm:$0xff] %v11641_v16  ;;  %v3671_v17 = vsel %vm3559_vm1, %v11639_v15, -inf  ;;  %v3683_v62 = vsel %vm3559_vm1, %v11641_v16, -inf }
 0x3c3   : > { %3672 = vmax.xlane.f32.xlu1 %v3671_v17  ;;  %v11645_v18 = vpop.f32.mrf.mxu1  ;;  %v11649_v60 = vpop.f32.mrf.mxu0  ;;  %v11687_v17 = vld [vmem:[%s10960_s18 + $0x10] sm:$0xff] }
 0x3c4   : > { %13356 = vst [vmem:[#allocation19_spill] sm:$0xff] %v11645_v18  ;;  %v3668_v19 = vsel %vm3559_vm1, %v11645_v18, -inf  ;;  %13357 = vst [vmem:[#allocation20_spill] sm:$0xff] %v11649_v60  ;;  %v3680_v1 = vsel %vm3559_vm1, %v11649_v60, -inf }
 0x3c5   : > { %3669 = vmax.xlane.f32.xlu0 %v3668_v19 }
 0x3c7   : > { %3684 = vmax.xlane.f32.xlu1 %v3683_v62 }
 0x3c9   : > { %v11655_v3 = vpop.f32.mrf.mxu1  ;;  %3681 = vmax.xlane.f32.xlu0 %v3680_v1 }
 0x3ca   : > { %13358 = vst [vmem:[#allocation21_spill] sm:$0xff] %v11655_v3  ;;  %v3677_v5 = vsel %vm3559_vm1, %v11655_v3, -inf  ;;  %v6706_v3 = vld [vmem:[#allocation7 + $0x60] sm:$0xff] }
 0x3cb   : > { %v11659_v26 = vpop.f32.mrf.mxu0  ;;  %v11661_v28 = vpop.f32.mrf.mxu1  ;;  %3678 = vmax.xlane.f32.xlu1 %v3677_v5 }
 0x3cc   : > { %13359 = vst [vmem:[#allocation22_spill] sm:$0xff] %v11659_v26  ;;  %13360 = vst [vmem:[#allocation23_spill] sm:$0xff] %v11661_v28  ;;  %v3674_v44 = vsel %vm3559_vm1, %v11661_v28, -inf  ;;  %v3695_v48 = vsel %vm3559_vm1, %v11659_v26, -inf  ;;  %v4266_v26 = vld [vmem:[#allocation7 + $0x10] sm:$0xff] }
 0x3cd   : > { %v11665_v24 = vpop.f32.mrf.mxu0  ;;  %3675 = vmax.xlane.f32.xlu0 %v3674_v44  ;;  %v6708_v28 = vld [vmem:[#allocation7 + $0x70] sm:$0xff] }
 0x3ce   : > { %13361 = vst [vmem:[#allocation24_spill] sm:$0xff] %v11665_v24  ;;  %v3692_v51 = vsel %vm3559_vm1, %v11665_v24, -inf  ;;  %v11749_v24 = vld [vmem:[%s10960_s18 + $0x58] sm:$0xff] }
 0x3cf   : > { %3696 = vmax.xlane.f32.xlu1 %v3695_v48 }
 0x3d1   : > { %v11671_v35 = vpop.f32.mrf.mxu1  ;;  %3693 = vmax.xlane.f32.xlu0 %v3692_v51  ;;  %v11703_v51 = vld [vmem:[%s10960_s18 + $0x28] sm:$0xff] }
 0x3d2   : > { %13362 = vst [vmem:[#allocation25_spill] sm:$0xff] %v11671_v35  ;;  %v3689_v49 = vsel %vm3559_vm1, %v11671_v35, -inf }
 0x3d3   : > { %v9716_v39 = vpop.f32.mrf.mxu0  ;;  %v11675_v47 = vpop.f32.mrf.mxu1  ;;  %3690 = vmax.xlane.f32.xlu1 %v3689_v49 }
 0x3d4   : > { %13363 = vst [vmem:[#allocation26_spill] sm:$0xff] %v11675_v47  ;;  %v3686_v50 = vsel %vm3559_vm1, %v11675_v47, -inf  ;;  %v11760_v47 = vld [vmem:[%s10960_s18 + $0x50] sm:$0xff] }
 0x3d5   : > { %v2832_v8 = vpop.f32.mrf.mxu0  ;;  %3687 = vmax.xlane.f32.xlu0 %v3686_v50  ;;  %v11712_v50 = vld [vmem:[%s10960_s18 + $0x20] sm:$0xff] }
 0x3d6   : > { %9742 = vmatprep.mubr.msk.f32.mxu1 %vm323_vm0, %v2832_v8 }
 0x3d7   : > { %v9719_v10 = vpop.f32.mrf.mxu0  ;;  %9743 = vmatmul.mubr.msk.f32.vlgmr.msra.gmra.mxu1 %vm323_vm0, %v9716_v39 }
 0x3d8   : > { %9746 = vmatpush3.xpose.msk.msra.mxu1 %vm323_vm0, %v11682_v12 }
 0x3d9   : > { %v2842_v14 = vpop.f32.mrf.mxu0  ;;  %9747 = vmatprep.subr.msk.mxu1 %vm323_vm0, %v11687_v17  ;;  %v11691_v19 = vpop.f32.mrf.mxu1 }
 0x3da   : > { %13364 = vst [vmem:[#allocation27_spill] sm:$0xff] %v11691_v19  ;;  %9749 = vmatprep.mubr.msk.f32.mxu1 %vm323_vm0, %v2842_v14  ;;  %v3701_v62 = vsel %vm3559_vm1, %v11691_v19, -inf  ;;  %v11719_v14 = vld [vmem:[%s10960_s18 + $0x38] sm:$0xff] }
 0x3db   : > { %v9722_v1 = vpop.f32.mrf.mxu0  ;;  %v11696_v5 = vpop.f32.mrf.mxu1  ;;  %3702 = vmax.xlane.f32.xlu1 %v3701_v62 }
 0x3dc   : > { %13365 = vst [vmem:[#allocation28_spill] sm:$0xff] %v11696_v5  ;;  %9748 = vmatpush3.xpose.msk.msra.mxu1 %vm323_vm0, %v11687_v17  ;;  %v3698_v44 = vsel %vm3559_vm1, %v11696_v5, -inf  ;;  %v11735_v5 = vld [vmem:[%s10960_s18 + $0x30] sm:$0xff] }
 0x3dd   : > { %v2852_v48 = vpop.f32.mrf.mxu0  ;;  %9752 = vmatprep.subr.msk.mxu1 %vm323_vm0, %v11703_v51  ;;  %3699 = vmax.xlane.f32.xlu0 %v3698_v44  ;;  %v11730_v44 = vld [vmem:[%s10960_s18 + $0x68] sm:$0xff] }
 0x3df   : > { %9750 = vmatmul.mubr.msk.f32.vlgmr.msra.gmra.mxu1 %vm323_vm0, %v9719_v10  ;;  %v9725_v49 = vpop.f32.mrf.mxu0 }
 0x3e0   : > { %9753 = vmatpush3.xpose.msk.msra.mxu1 %vm323_vm0, %v11703_v51  ;;  %9756 = vmatprep.mubr.msk.f32.mxu1 %vm323_vm0, %v2852_v48 }
 0x3e1   : > { %v2862_v39 = vpop.f32.mrf.mxu0  ;;  %9754 = vmatprep.subr.msk.mxu1 %vm323_vm0, %v11712_v50 }
 0x3e3   : > { %v9728_v8 = vpop.f32.mrf.mxu0 }
 0x3e4   : > { %9755 = vmatpush3.xpose.msk.msra.mxu1 %vm323_vm0, %v11712_v50 }
 0x3e5   : > { %v2872_v10 = vpop.f32.mrf.mxu0  ;;  %9759 = vmatprep.subr.msk.mxu1 %vm323_vm0, %v11719_v14 }
 0x3e6   : > { %9770 = vmatprep.mubr.msk.f32.mxu0 %vm323_vm0, %v2872_v10 }
 0x3e7   : > { %9757 = vmatmul.mubr.msk.f32.vlgmr.msra.gmra.mxu1 %vm323_vm0, %v9722_v1  ;;  %v9731_v62 = vpop.f32.mrf.mxu0  ;;  %9771 = vmatmul.mubr.msk.f32.vlgmr.msra.gmra.mxu0 %vm323_vm0, %v9728_v8  ;;  %v11740_v1 = vld [vmem:[%s10960_s18 + $0x60] sm:$0xff]  ;;  %v3946_v8 = vpop.xlane.xlu0 %3945 }
 0x3e8   : > { %9760 = vmatpush3.xpose.msk.msra.mxu1 %vm323_vm0, %v11719_v14  ;;  %9763 = vmatprep.mubr.msk.f32.mxu1 %vm323_vm0, %v2862_v39  ;;  %v4267_v39 = vld [vmem:[#allocation7 + $0x18] sm:$0xff]  ;;  %10337 = vrcp.f32 %v3946_v8  ;;  %v4265_v8 = vld [vmem:[#allocation7 + $0x8] sm:$0xff] }
 0x3e9   : > { %9781 = vmatpush3.xpose.msk.msra.mxu0 %vm323_vm0, %v11730_v44  ;;  %v2882_v48 = vpop.f32.mrf.mxu0  ;;  %9761 = vmatprep.subr.msk.mxu1 %vm323_vm0, %v11735_v5 }
 0x3ea   : > { %9782 = vmatprep.subr.msk.mxu0 %vm323_vm0, %v11740_v1 }
 0x3eb   : > { %v9734_v10 = vpop.f32.mrf.mxu0 }
 0x3ec   : > { %9762 = vmatpush3.xpose.msk.msra.mxu1 %vm323_vm0, %v11735_v5 }
 0x3ed   : > { %9783 = vmatpush3.xpose.msk.msra.mxu0 %vm323_vm0, %v11740_v1  ;;  %v2892_v19 = vpop.f32.mrf.mxu0  ;;  %9773 = vmatprep.subr.msk.mxu1 %vm323_vm0, %v11749_v24 }
 0x3ee   : > { %9784 = vmatprep.mubr.msk.f32.mxu0 %vm323_vm0, %v2892_v19  ;;  %9794 = vmatprep.subr.mxu0 %v4267_v39 }
 0x3ef   : > { %9764 = vmatmul.mubr.msk.f32.vlgmr.msra.gmra.mxu1 %vm323_vm0, %v9725_v49  ;;  %v9737_v19 = vpop.f32.mrf.mxu0  ;;  %v4264_v49 = vld [vmem:[#allocation7] sm:$0xff] }
 0x3f0   : > { %9774 = vmatpush3.xpose.msk.msra.mxu1 %vm323_vm0, %v11749_v24  ;;  %9777 = vmatprep.mubr.msk.f32.mxu1 %vm323_vm0, %v2882_v48  ;;  %v11769_v48 = vld [vmem:[%s10960_s18 + $0x78] sm:$0xff] }
 0x3f1   : > { %9785 = vmatmul.mubr.msk.f32.vlgmr.msra.gmra.mxu0 %vm323_vm0, %v9734_v10  ;;  %9775 = vmatprep.subr.msk.mxu1 %vm323_vm0, %v11760_v47  ;;  %v2902_v10 = vpop.f32.mrf.mxu0 }
 0x3f2   : > { %9795 = vmatpush3.msra.mxu0 %v4267_v39  ;;  %9802 = vmatprep.mubr.msk.f32.mxu0 %vm323_vm0, %v11590_v4  ;;  %v11779_v39 = vld [vmem:[%s10960_s18 + $0x70] sm:$0xff] }
 0x3f3   : > { %9796 = vmatprep.subr.mxu0 %v4266_v26 }
 0x3f4   : > { %9797 = vmatpush3.msra.mxu0 %v4266_v26  ;;  %9776 = vmatpush3.xpose.msk.msra.mxu1 %vm323_vm0, %v11760_v47  ;;  %v5081_v26 = vld [vmem:[#allocation7 + $0x38] sm:$0xff] }
 0x3f5   : > { %9798 = vmatprep.subr.mxu0 %v4265_v8  ;;  %9787 = vmatprep.subr.msk.mxu1 %vm323_vm0, %v11769_v48 }
 0x3f6   : > { %9799 = vmatpush3.msra.mxu0 %v4265_v8  ;;  %v10338_v8 = vpop.eup %10337 }
 0x3f7   : > { %9800 = vmatprep.subr.mxu0 %v4264_v49  ;;  %9778 = vmatmul.mubr.msk.f32.vlgmr.msra.gmra.mxu1 %vm323_vm0, %v9731_v62  ;;  %v5080_v62 = vld [vmem:[#allocation7 + $0x30] sm:$0xff]  ;;  %v4137_v35 = vmul.f32 %v10338_v8, %v11369_v30  ;;  %v11802_v30 = vld [vmem:[%s10960_s18 + $0x40] sm:$0xff]  ;;  %v11886_v8 = vpop.xlane.xlu1 %3948 }
 0x3f8   : > { %9801 = vmatpush3.msra.mxu0 %v4264_v49  ;;  %9788 = vmatpush3.xpose.msk.msra.mxu1 %vm323_vm0, %v11769_v48  ;;  %v5079_v49 = vld [vmem:[#allocation7 + $0x28] sm:$0xff]  ;;  %10339 = vrcp.f32 %v11886_v8 }
 0x3f9   : > { %9803 = vmatmul.mubr.msk.f32.vlgmr.msra.gmra.mxu0 %vm323_vm0, %v11581_v2  ;;  %9789 = vmatprep.subr.msk.mxu1 %vm323_vm0, %v11779_v39 }
 0x3fa   : > { %9805 = vmatprep.mubr.msk.f32.mxu0 %vm323_vm0, %v11687_v17  ;;  %9791 = vmatprep.mubr.msk.f32.mxu1 %vm323_vm0, %v2902_v10  ;;  %v5078_v10 = vld [vmem:[#allocation7 + $0x20] sm:$0xff] }
 0x3fb   : > { %9882 = vmatprep.subr.mxu0 %v5081_v26 }
 0x3fc   : > { %9790 = vmatpush3.xpose.msk.msra.mxu1 %vm323_vm0, %v11779_v39  ;;  %9883 = vmatpush3.msra.mxu0 %v5081_v26  ;;  %v5893_v26 = vld [vmem:[#allocation7 + $0x48] sm:$0xff] }
 0x3fd   : > { %9806 = vmatmul.mubr.msk.f32.gmra.mxu0 %vm323_vm0, %v11682_v12  ;;  %9884 = vmatprep.subr.mxu0 %v5080_v62 }
 0x3fe   : > { %9808 = vmatprep.mubr.msk.f32.mxu0 %vm323_vm0, %v11712_v50  ;;  %9885 = vmatpush3.msra.mxu0 %v5080_v62  ;;  %v5892_v62 = vld [vmem:[#allocation7 + $0x40] sm:$0xff] }
 0x3ff   : > { %9792 = vmatmul.mubr.msk.f32.vlgmr.msra.gmra.mxu1 %vm323_vm0, %v9737_v19  ;;  %9886 = vmatprep.subr.mxu0 %v5079_v49  ;;  %v5894_v19 = vld [vmem:[#allocation7 + $0x50] sm:$0xff] }
 0x400   : > { %9830 = vmatprep.mubr.msk.f32.mxu1 %vm3559_vm1, %v4137_v35  ;;  %9887 = vmatpush3.msra.mxu0 %v5079_v49  ;;  %v5895_v35 = vld [vmem:[#allocation7 + $0x58] sm:$0xff]  ;;  %v11888_v49 = vpop.xlane.xlu1 %3954 }
 0x401   : > { %9809 = vmatmul.mubr.msk.f32.gmra.mxu0 %vm323_vm0, %v11703_v51  ;;  %9888 = vmatprep.subr.mxu0 %v5078_v10 }
 0x402   : > { %9811 = vmatprep.mubr.msk.f32.mxu0 %vm323_vm0, %v11735_v5  ;;  %9889 = vmatpush3.msra.mxu0 %v5078_v10  ;;  %v11890_v10 = vpop.xlane.xlu0 %3951 }
 0x403   : > { %9970 = vmatprep.subr.mxu0 %v5895_v35 }
 0x405   : > { %9812 = vmatmul.mubr.msk.f32.gmra.mxu0 %vm323_vm0, %v11719_v14 }
 0x406   : > { %9814 = vmatprep.mubr.msk.f32.mxu0 %vm323_vm0, %v11802_v30 }
 0x409   : > { %9815 = vmatmul.mubr.msk.f32.gmra.mxu0 %vm323_vm0, %v11607_v6 }
 0x40a   : > { %9817 = vmatprep.mubr.msk.f32.mxu0 %vm323_vm0, %v11760_v47 }
 0x40d   : > { %9818 = vmatmul.mubr.msk.f32.gmra.mxu0 %vm323_vm0, %v11749_v24 }
 0x40e   : > { %9820 = vmatprep.mubr.msk.f32.mxu0 %vm323_vm0, %v11740_v1 }
 0x411   : > { %9821 = vmatmul.mubr.msk.f32.gmra.mxu0 %vm323_vm0, %v11730_v44 }
 0x412   : > { %9823 = vmatprep.mubr.msk.f32.mxu0 %vm323_vm0, %v11779_v39 }
 0x415   : > { %9824 = vmatmul.mubr.msk.f32.gmra.mxu0 %vm323_vm0, %v11769_v48 }
 0x416   : > { %9890 = vmatprep.mubr.msk.f32.mxu0 %vm323_vm0, %v11590_v4 }
 0x419   : > { %9891 = vmatmul.mubr.msk.f32.vlgmr.msra.gmra.mxu0 %vm323_vm0, %v11581_v2 }
 0x41a   : > { %9893 = vmatprep.mubr.msk.f32.mxu0 %vm323_vm0, %v11687_v17  ;;  %9971 = vmatpush3.msra.mxu0 %v5895_v35  ;;  %v11892_v35 = vpop.xlane.xlu1 %3960 }
 0x41b   : > { %9972 = vmatprep.subr.mxu0 %v5894_v19 }
 0x41c   : > { %9973 = vmatpush3.msra.mxu0 %v5894_v19  ;;  %v11894_v19 = vpop.xlane.xlu0 %3957 }
 0x41d   : > { %9894 = vmatmul.mubr.msk.f32.gmra.mxu0 %vm323_vm0, %v11682_v12  ;;  %9974 = vmatprep.subr.mxu0 %v5893_v26 }
 0x41e   : > { %9896 = vmatprep.mubr.msk.f32.mxu0 %vm323_vm0, %v11712_v50  ;;  %9975 = vmatpush3.msra.mxu0 %v5893_v26  ;;  %v11896_v26 = vpop.xlane.xlu1 %3972 }
 0x41f   : > { %9976 = vmatprep.subr.mxu0 %v5892_v62 }
 0x420   : > { %9977 = vmatpush3.msra.mxu0 %v5892_v62  ;;  %v6709_v62 = vld [vmem:[#allocation7 + $0x78] sm:$0xff]  ;;  %v11898_v60 = vpop.xlane.xlu0 %3969 }
 0x421   : > { %9897 = vmatmul.mubr.msk.f32.gmra.mxu0 %vm323_vm0, %v11703_v51  ;;  %10058 = vmatprep.subr.mxu0 %v6709_v62 }
 0x422   : > { %9899 = vmatprep.mubr.msk.f32.mxu0 %vm323_vm0, %v11735_v5  ;;  %v11900_v16 = vpop.xlane.xlu1 %3966 }
 0x425   : > { %9900 = vmatmul.mubr.msk.f32.gmra.mxu0 %vm323_vm0, %v11719_v14 }
 0x426   : > { %9902 = vmatprep.mubr.msk.f32.mxu0 %vm323_vm0, %v11802_v30  ;;  %v11904_v38 = vpop.xlane.xlu1 %3984 }
 0x429   : > { %9903 = vmatmul.mubr.msk.f32.gmra.mxu0 %vm323_vm0, %v11607_v6 }
 0x42a   : > { %9905 = vmatprep.mubr.msk.f32.mxu0 %vm323_vm0, %v11760_v47 }
 0x42d   : > { %9906 = vmatmul.mubr.msk.f32.gmra.mxu0 %vm323_vm0, %v11749_v24 }
 0x42e   : > { %9908 = vmatprep.mubr.msk.f32.mxu0 %vm323_vm0, %v11740_v1 }
 0x431   : > { %9909 = vmatmul.mubr.msk.f32.gmra.mxu0 %vm323_vm0, %v11730_v44 }
 0x432   : > { %9911 = vmatprep.mubr.msk.f32.mxu0 %vm323_vm0, %v11779_v39 }
 0x435   : > { %9912 = vmatmul.mubr.msk.f32.gmra.mxu0 %vm323_vm0, %v11769_v48 }
 0x436   : > { %9978 = vmatprep.mubr.msk.f32.mxu0 %vm323_vm0, %v11590_v4 }
 0x439   : > { %9979 = vmatmul.mubr.msk.f32.vlgmr.msra.gmra.mxu0 %vm323_vm0, %v11581_v2 }
 0x43a   : > { %9981 = vmatprep.mubr.msk.f32.mxu0 %vm323_vm0, %v11687_v17  ;;  %10059 = vmatpush3.msra.mxu0 %v6709_v62  ;;  %v11910_v62 = vpop.xlane.xlu1 %3978 }
 0x43b   : > { %10060 = vmatprep.subr.mxu0 %v6708_v28 }
 0x43c   : > { %10061 = vmatpush3.msra.mxu0 %v6708_v28 }
 0x43d   : > { %9982 = vmatmul.mubr.msk.f32.gmra.mxu0 %vm323_vm0, %v11682_v12  ;;  %10062 = vmatprep.subr.mxu0 %v6707_v37 }
 0x43e   : > { %9984 = vmatprep.mubr.msk.f32.mxu0 %vm323_vm0, %v11712_v50  ;;  %10063 = vmatpush3.msra.mxu0 %v6707_v37  ;;  %v11918_v28 = vpop.xlane.xlu1 %3990 }
 0x43f   : > { %10064 = vmatprep.subr.mxu0 %v6706_v3 }
 0x440   : > { %10065 = vmatpush3.msra.mxu0 %v6706_v3 }
 0x441   : > { %9985 = vmatmul.mubr.msk.f32.gmra.mxu0 %vm323_vm0, %v11703_v51 }
 0x442   : > { %9987 = vmatprep.mubr.msk.f32.mxu0 %vm323_vm0, %v11735_v5 }
 0x445   : > { %9988 = vmatmul.mubr.msk.f32.gmra.mxu0 %vm323_vm0, %v11719_v14 }
 0x446   : > { %9990 = vmatprep.mubr.msk.f32.mxu0 %vm323_vm0, %v11802_v30 }
 0x449   : > { %9991 = vmatmul.mubr.msk.f32.gmra.mxu0 %vm323_vm0, %v11607_v6 }
 0x44a   : > { %9993 = vmatprep.mubr.msk.f32.mxu0 %vm323_vm0, %v11760_v47 }
 0x44d   : > { %9994 = vmatmul.mubr.msk.f32.gmra.mxu0 %vm323_vm0, %v11749_v24 }
 0x44e   : > { %9996 = vmatprep.mubr.msk.f32.mxu0 %vm323_vm0, %v11740_v1 }
 0x451   : > { %9997 = vmatmul.mubr.msk.f32.gmra.mxu0 %vm323_vm0, %v11730_v44 }
 0x452   : > { %9999 = vmatprep.mubr.msk.f32.mxu0 %vm323_vm0, %v11779_v39 }
 0x455   : > { %10000 = vmatmul.mubr.msk.f32.gmra.mxu0 %vm323_vm0, %v11769_v48 }
 0x456   : > { %10066 = vmatprep.mubr.msk.f32.mxu0 %vm323_vm0, %v11590_v4  ;;  %v11902_v4 = vpop.xlane.xlu0 %3963 }
 0x459   : > { %10067 = vmatmul.mubr.msk.f32.vlgmr.msra.gmra.mxu0 %vm323_vm0, %v11581_v2  ;;  %v3613_v2 = vpop.xlane.xlu1 %3612 }
 0x45a   : > { %v11906_v18 = vpop.xlane.xlu0 %3981  ;;  %10069 = vmatprep.mubr.msk.f32.mxu0 %vm323_vm0, %v11687_v17 }
 0x45d   : > { %10070 = vmatmul.mubr.msk.f32.gmra.mxu0 %vm323_vm0, %v11682_v12  ;;  %v3619_v12 = vpop.xlane.xlu1 %3618 }
 0x45e   : > { %v11916_v31 = vpop.xlane.xlu0 %3975  ;;  %10072 = vmatprep.mubr.msk.f32.mxu0 %vm323_vm0, %v11712_v50 }
 0x461   : > { %10073 = vmatmul.mubr.msk.f32.gmra.mxu0 %vm323_vm0, %v11703_v51  ;;  %v11936_v50 = vpop.xlane.xlu1 %3624 }
 0x462   : > { %v11924_v37 = vpop.xlane.xlu0 %3987  ;;  %10075 = vmatprep.mubr.msk.f32.mxu0 %vm323_vm0, %v11735_v5 }
 0x465   : > { %10076 = vmatmul.mubr.msk.f32.gmra.mxu0 %vm323_vm0, %v11719_v14 }
 0x466   : > { %v3610_v3 = vpop.xlane.xlu0 %3609  ;;  %10078 = vmatprep.mubr.msk.f32.mxu0 %vm323_vm0, %v11802_v30  ;;  %v11952_v30 = vpop.xlane.xlu1 %3636 }
 0x469   : > { %10079 = vmatmul.mubr.msk.f32.gmra.mxu0 %vm323_vm0, %v11607_v6 }
 0x46a   : > { %v3616_v51 = vpop.xlane.xlu0 %3615  ;;  %10081 = vmatprep.mubr.msk.f32.mxu0 %vm323_vm0, %v11760_v47 }
 0x46d   : > { %10082 = vmatmul.mubr.msk.f32.gmra.mxu0 %vm323_vm0, %v11749_v24 }
 0x46e   : > { %v11948_v6 = vpop.xlane.xlu0 %3621  ;;  %10084 = vmatprep.mubr.msk.f32.mxu0 %vm323_vm0, %v11740_v1 }
 0x471   : > { %10085 = vmatmul.mubr.msk.f32.gmra.mxu0 %vm323_vm0, %v11730_v44  ;;  %v3769_v44 = vsub.f32 %v11438_v53, %v3613_v2  ;;  %v3771_v2 = vsub.f32 %v11446_v56, %v3619_v12  ;;  %v3773_v12 = vsub.f32 %v11454_v54, %v11936_v50  ;;  %v3772_v54 = vsub.f32 %v11460_v58, %v11948_v6 }
 0x472   : > { %10087 = vmatprep.mubr.msk.f32.mxu0 %vm323_vm0, %v11779_v39  ;;  %v11964_v47 = vpop.xlane.xlu0 %3633 }
 0x473   : > { %v3854_v56 = vmul.f32 1.442695, %v3771_v2 }
 0x475   : > { %10088 = vmatmul.mubr.msk.f32.gmra.mxu0 %vm323_vm0, %v11769_v48 }
 0x476   : > { %v11976_v15 = vpop.xlane.xlu0 %3627 }
 0x497   : > { %v11932_v17 = vpop.f32.mrf.mxu1 }
 0x498   : > { %13366 = vst [vmem:[#allocation29_spill] sm:$0xff] %v11932_v17  ;;  %v3707_v32 = vsel %vm3559_vm1, %v11932_v17, -inf }
 0x499   : > { %3708 = vmax.xlane.f32.xlu1 %v3707_v32  ;;  %v11942_v5 = vpop.f32.mrf.mxu1 }
 0x49a   : > { %13367 = vst [vmem:[#allocation30_spill] sm:$0xff] %v11942_v5  ;;  %v3704_v14 = vsel %vm3559_vm1, %v11942_v5, -inf }
 0x49b   : > { %3705 = vmax.xlane.f32.xlu0 %v3704_v14  ;;  %v3631_v14 = vpop.xlane.xlu1 %3630 }
 0x49f   : > { %v11954_v17 = vpop.f32.mrf.mxu1 }
 0x4a0   : > { %13368 = vst [vmem:[#allocation31_spill] sm:$0xff] %v11954_v17  ;;  %v3713_v32 = vsel %vm3559_vm1, %v11954_v17, -inf  ;;  %v3768_v17 = vsub.f32 %v11442_v43, %v3610_v3 }
 0x4a1   : > { %3714 = vmax.xlane.f32.xlu1 %v3713_v32  ;;  %v11962_v24 = vpop.f32.mrf.mxu1  ;;  %v3850_v32 = vmul.f32 1.442695, %v3769_v44 }
 0x4a2   : > { %13369 = vst [vmem:[#allocation32_spill] sm:$0xff] %v11962_v24  ;;  %v3710_v1 = vsel %vm3559_vm1, %v11962_v24, -inf  ;;  %v11982_v24 = vpop.xlane.xlu1 %3648  ;;  %v3848_v43 = vmul.f32 1.442695, %v3768_v17  ;;  %v3770_v17 = vsub.f32 %v11450_v52, %v3616_v51 }
 0x4a3   : > { %3711 = vmax.xlane.f32.xlu0 %v3710_v1  ;;  %10341 = vpow2.f32 %v3850_v32 }
 0x4a4   : > { %10343 = vrcp.f32 %v11890_v10  ;;  %v3852_v51 = vmul.f32 1.442695, %v3770_v17  ;;  %v3777_v17 = vsub.f32 %v11456_v55, %v11952_v30 }
 0x4a5   : > { %10345 = vrcp.f32 %v11888_v49 }
 0x4a6   : > { %10347 = vpow2.f32 %v3848_v43  ;;  %v12003_v32 = vpop.xlane.xlu1 %3642  ;;  %v3858_v43 = vmul.f32 1.442695, %v3773_v12 }
 0x4a7   : > { %v11972_v5 = vpop.f32.mrf.mxu1  ;;  %v11974_v39 = vpop.f32.mrf.mxu0  ;;  %10349 = vrcp.f32 %v11894_v19  ;;  %v3775_v19 = vsub.f32 %v11470_v0, %v3631_v14  ;;  %v3774_v0 = vsub.f32 %v11476_v40, %v11976_v15 }
 0x4a8   : > { %v3719_v13 = vsel %vm3559_vm1, %v11972_v5, -inf  ;;  %v3731_v3 = vsel %vm3559_vm1, %v11974_v39, -inf  ;;  %10351 = vrcp.f32 %v11892_v35  ;;  %v3856_v35 = vmul.f32 1.442695, %v3772_v54  ;;  %v10340_v14 = vpop.eup %10339 }
 0x4a9   : > { %3720 = vmax.xlane.f32.xlu1 %v3719_v13  ;;  %v11980_v1 = vpop.f32.mrf.mxu1  ;;  %v11987_v48 = vpop.f32.mrf.mxu0  ;;  %10353 = vpow2.f32 %v3854_v56  ;;  %v3860_v54 = vmul.f32 1.442695, %v3774_v0 }
 0x4aa   : > { %v3716_v53 = vsel %vm3559_vm1, %v11980_v1, -inf  ;;  %v11994_v13 = vpop.xlane.xlu0 %3645  ;;  %v3728_v8 = vsel %vm3559_vm1, %v11987_v48, -inf  ;;  %10355 = vrcp.f32 %v11902_v4  ;;  %v3862_v4 = vmul.f32 1.442695, %v3775_v19 }
 0x4ab   : > { %3717 = vmax.xlane.f32.xlu0 %v3716_v53  ;;  %10357 = vrcp.f32 %v11900_v16 }
 0x4ac   : > { %10359 = vpow2.f32 %v3852_v51  ;;  %v3776_v51 = vsub.f32 %v11464_v63, %v11964_v47 }
 0x4ad   : > { %3732 = vmax.xlane.f32.xlu1 %v3731_v3  ;;  %v12022_v3 = vpop.xlane.xlu1 %3654  ;;  %10361 = vpow2.f32 %v3858_v43 }
 0x4ae   : > { %v12020_v2 = vpop.xlane.xlu0 %3639  ;;  %10363 = vrcp.f32 %v11898_v60  ;;  %v4139_v60 = vmul.f32 %v10340_v14, %v11363_v23 }
 0x4af   : > { %v11999_v44 = vpop.f32.mrf.mxu1  ;;  %3729 = vmax.xlane.f32.xlu0 %v3728_v8  ;;  %10365 = vrcp.f32 %v11896_v26  ;;  %v3779_v26 = vsub.f32 %v11486_v46, %v12003_v32  ;;  %v3864_v32 = vmul.f32 1.442695, %v3776_v51  ;;  %v3778_v0 = vsub.f32 %v11490_v27, %v12020_v2 }
 0x4b0   : > { %v3725_v49 = vsel %vm3559_vm1, %v11999_v44, -inf  ;;  %10367 = vpow2.f32 %v3856_v35 }
 0x4b1   : > { %v12008_v10 = vpop.f32.mrf.mxu0  ;;  %v12010_v53 = vpop.f32.mrf.mxu1  ;;  %3726 = vmax.xlane.f32.xlu1 %v3725_v49  ;;  %10369 = vpow2.f32 %v3862_v4 }
 0x4b2   : > { %v3722_v52 = vsel %vm3559_vm1, %v12010_v53, -inf  ;;  %v3743_v8 = vsel %vm3559_vm1, %v12008_v10, -inf  ;;  %v12036_v56 = vpop.xlane.xlu0 %3651  ;;  %v12038_v16 = vpop.xlane.xlu1 %3660  ;;  %10371 = vrcp.f32 %v11916_v31 }
 0x4b3   : > { %v12017_v50 = vpop.f32.mrf.mxu0  ;;  %3723 = vmax.xlane.f32.xlu0 %v3722_v52  ;;  %v12042_v49 = vpop.eup %10341  ;;  %10373 = vrcp.f32 %v11910_v62 }
 0x4b4   : > { %v3740_v58 = vsel %vm3559_vm1, %v12017_v50, -inf  ;;  %v10344_v52 = vpop.eup %10343  ;;  %v3995_v63 = vsel %vm3559_vm1, %v12042_v49, 0.0  ;;  %10375 = vpow2.f32 %v3860_v54  ;;  %v3868_v54 = vmul.f32 1.442695, %v3778_v0 }
 0x4b5   : > { %3744 = vmax.xlane.f32.xlu1 %v3743_v8  ;;  %v10346_v30 = vpop.eup %10345  ;;  %v3866_v8 = vmul.f32 1.442695, %v3777_v17  ;;  %v4141_v23 = vmul.f32 %v10344_v52, %v11381_v45  ;;  %v3781_v17 = vsub.f32 %v11474_v22, %v11982_v24 }
 0x4b6   : > { %v12053_v19 = vpop.eup %10347  ;;  %v4143_v46 = vmul.f32 %v10346_v30, %v11375_v36  ;;  %v3870_v36 = vmul.f32 1.442695, %v3779_v26 }
 0x4b7   : > { %v12032_v6 = vpop.f32.mrf.mxu1  ;;  %3741 = vmax.xlane.f32.xlu0 %v3740_v58  ;;  %v12057_v58 = vpop.xlane.xlu0 %3657  ;;  %v3992_v45 = vsel %vm3559_vm1, %v12053_v19, 0.0  ;;  %10377 = vpow2.f32 %v3866_v8  ;;  %v3783_v8 = vsub.f32 %v11500_v41, %v12022_v3 }
 0x4b8   : > { %v3737_v12 = vsel %vm3559_vm1, %v12032_v6, -inf  ;;  %v10350_v35 = vpop.eup %10349  ;;  %10379 = vrcp.f32 %v11906_v18  ;;  %v3780_v18 = vsub.f32 %v11480_v42, %v11994_v13 }
 0x4b9   : > { %v9804_v40 = vpop.f32.mrf.mxu0  ;;  %v12045_v15 = vpop.f32.mrf.mxu1  ;;  %3738 = vmax.xlane.f32.xlu1 %v3737_v12  ;;  %v4145_v22 = vmul.f32 %v10350_v35, %v11392_v61  ;;  %10381 = vrcp.f32 %v11904_v38  ;;  %v3874_v38 = vmul.f32 1.442695, %v3781_v17  ;;  %v3782_v35 = vsub.f32 %v11505_v59, %v12036_v56 }
 0x4ba   : > { %9826 = vmatprep.subr.mxu1 %v9804_v40  ;;  %v3734_v55 = vsel %vm3559_vm1, %v12045_v15, -inf  ;;  %v12059_v12 = vpop.xlane.xlu1 %3666  ;;  %v10352_v62 = vpop.eup %10351  ;;  %10383 = vpow2.f32 %v3864_v32  ;;  %v3878_v32 = vmul.f32 1.442695, %v3783_v8 }
 0x4bb   : > { %v4334_v43 = vpop.f32.mrf.mxu0  ;;  %9827 = vmatpush3.msra.mxu1 %v9804_v40  ;;  %3735 = vmax.xlane.f32.xlu0 %v3734_v55  ;;  %v12077_v4 = vpop.xlane.xlu0 %3663  ;;  %v4147_v61 = vmul.f32 %v10352_v62, %v11387_v57  ;;  %v3876_v17 = vmul.f32 1.442695, %v3782_v35 }
 0x4bc   : > { %9828 = vmatprep.subr.mxu1 %v4334_v43  ;;  %v12083_v2 = vpop.eup %10353  ;;  %10385 = vpow2.f32 %v3870_v36  ;;  %v3784_v36 = vsub.f32 %v11627_v9, %v12057_v58 }
 0x4bd   : > { %v9807_v47 = vpop.f32.mrf.mxu0  ;;  %9829 = vmatpush3.msra.mxu1 %v4334_v43  ;;  %3996 = vadd.xlane.f32.xlu1 %v3995_v63  ;;  %v10356_v24 = vpop.eup %10355  ;;  %v4001_v42 = vsel %vm3559_vm1, %v12083_v2, 0.0  ;;  %10387 = vrcp.f32 %v11924_v37 }
 0x4be   : > { %9831 = vmatmul.mubr.msk.f32.vlgmr.msra.gmra.mxu1 %vm3559_vm1, %v4139_v60  ;;  %9833 = vmatprep.subr.mxu1 %v9807_v47  ;;  %v12079_v40 = vpop.xlane.xlu1 %3672  ;;  %v10358_v51 = vpop.eup %10357  ;;  %v4149_v57 = vmul.f32 %v10356_v24, %v11410_v29  ;;  %10389 = vrcp.f32 %v11918_v28 }
 0x4bf   : > { %v4344_v14 = vpop.f32.mrf.mxu0  ;;  %9834 = vmatpush3.msra.mxu1 %v9807_v47  ;;  %9837 = vmatprep.mubr.msk.f32.mxu1 %vm3559_vm1, %v4141_v23  ;;  %v12071_v31 = vpop.f32.mrf.mxu1  ;;  %v4151_v41 = vmul.f32 %v10358_v51, %v11405_v25  ;;  %v3872_v23 = vmul.f32 1.442695, %v3780_v18  ;;  %v3785_v25 = vsub.f32 %v11623_v7, %v12038_v16 }
 0x4c0   : > { %9835 = vmatprep.subr.mxu1 %v4344_v14  ;;  %3993 = vadd.xlane.f32.xlu0 %v3992_v45  ;;  %v3749_v27 = vsel %vm3559_vm1, %v12071_v31, -inf  ;;  %v12097_v60 = vpop.eup %10359  ;;  %v12101_v26 = vpop.xlane.xlu0 %3669  ;;  %10391 = vpow2.f32 %v3868_v54  ;;  %v3880_v54 = vmul.f32 1.442695, %v3784_v36 }
 0x4c1   : > { %v9810_v52 = vpop.f32.mrf.mxu0  ;;  %9836 = vmatpush3.msra.mxu1 %v4344_v14  ;;  %v12086_v55 = vpop.f32.mrf.mxu1  ;;  %3750 = vmax.xlane.f32.xlu1 %v3749_v27  ;;  %v3998_v29 = vsel %vm3559_vm1, %v12097_v60, 0.0 }
 0x4c2   : > { %9838 = vmatmul.mubr.msk.f32.vlgmr.msra.gmra.mxu1 %vm3559_vm1, %v4143_v46  ;;  %9840 = vmatprep.subr.mxu1 %v9810_v52  ;;  %v3746_v30 = vsel %vm3559_vm1, %v12086_v55, -inf  ;;  %v12105_v13 = vpop.eup %10361  ;;  %v12114_v37 = vpop.xlane.xlu1 %3684  ;;  %10393 = vpow2.f32 %v3874_v38 }
 0x4c3   : > { %v4354_v43 = vpop.f32.mrf.mxu0  ;;  %9841 = vmatpush3.msra.mxu1 %v9810_v52  ;;  %9844 = vmatprep.mubr.msk.f32.mxu1 %vm3559_vm1, %v4145_v22  ;;  %v10364_v47 = vpop.eup %10363  ;;  %v4007_v59 = vsel %vm3559_vm1, %v12105_v13, 0.0  ;;  %10395 = vpow2.f32 %v3872_v23  ;;  %v3882_v22 = vmul.f32 1.442695, %v3785_v25  ;;  %v13374_v25 = vld [vmem:[#allocation19_spill] sm:$0xff] }
 0x4c4   : > { %9842 = vmatprep.subr.mxu1 %v4354_v43  ;;  %3747 = vmax.xlane.f32.xlu0 %v3746_v30  ;;  %v10366_v3 = vpop.eup %10365  ;;  %v4153_v14 = vmul.f32 %v10364_v47, %v11400_v21  ;;  %v12128_v62 = vpop.xlane.xlu0 %3681  ;;  %10397 = vpow2.f32 %v3878_v32 }
 0x4c5   : > { %v9813_v63 = vpop.f32.mrf.mxu0  ;;  %9843 = vmatpush3.msra.mxu1 %v4354_v43  ;;  %4002 = vadd.xlane.f32.xlu1 %v4001_v42  ;;  %v12119_v28 = vpop.eup %10367  ;;  %v4155_v7 = vmul.f32 %v10366_v3, %v11396_v20  ;;  %v3787_v20 = vsub.f32 %v11631_v11, %v12059_v12  ;;  %10399 = vpow2.f32 %v3876_v17  ;;  %v13370_v43 = vld [vmem:[#allocation16_spill] sm:$0xff]  ;;  %v13372_v3 = vld [vmem:[#allocation13_spill] sm:$0xff] }
 0x4c6   : > { %9845 = vmatmul.mubr.msk.f32.vlgmr.msra.gmra.mxu1 %vm3559_vm1, %v4147_v61  ;;  %9847 = vmatprep.subr.mxu1 %v9813_v63  ;;  %v12125_v56 = vpop.eup %10369  ;;  %v4004_v21 = vsel %vm3559_vm1, %v12119_v28, 0.0  ;;  %v12145_v58 = vpop.xlane.xlu1 %3678  ;;  %v3786_v61 = vsub.f32 %v13370_v43, %v12077_v4  ;;  %10401 = vpow2.f32 %v3882_v22  ;;  %v13375_v17 = vld [vmem:[#allocation21_spill] sm:$0xff]  ;;  %v13376_v22 = vld [vmem:[#allocation15_spill] sm:$0xff] }
 0x4c7   : > { %v4364_v46 = vpop.f32.mrf.mxu0  ;;  %9848 = vmatpush3.msra.mxu1 %v9813_v63  ;;  %9851 = vmatprep.mubr.msk.f32.mxu1 %vm3559_vm1, %v4149_v57  ;;  %v10372_v45 = vpop.eup %10371  ;;  %v4013_v24 = vsel %vm3559_vm1, %v12125_v56, 0.0  ;;  %v3886_v42 = vmul.f32 1.442695, %v3787_v20  ;;  %v13371_v63 = vld [vmem:[#allocation17_spill] sm:$0xff]  ;;  %10403 = vpow2.f32 %v3880_v54  ;;  %v3791_v36 = vsub.f32 %v13375_v17, %v12145_v58 }
 0x4c8   : > { %9849 = vmatprep.subr.mxu1 %v4364_v46  ;;  %3999 = vadd.xlane.f32.xlu0 %v3998_v29  ;;  %v10374_v16 = vpop.eup %10373  ;;  %v4157_v51 = vmul.f32 %v10372_v45, %v11426_v34  ;;  %v3676_v57 = vpop.xlane.xlu0 %3675  ;;  %v3884_v32 = vmul.f32 1.442695, %v3786_v61  ;;  %v13379_v61 = vld [vmem:[#allocation18_spill] sm:$0xff] }
 0x4c9   : > { %v9816_v0 = vpop.f32.mrf.mxu0  ;;  %9850 = vmatpush3.msra.mxu1 %v4364_v46  ;;  %4008 = vadd.xlane.f32.xlu1 %v4007_v59  ;;  %v12137_v52 = vpop.eup %10375  ;;  %v4159_v11 = vmul.f32 %v10374_v16, %v11422_v33  ;;  %v3789_v33 = vsub.f32 %v13371_v63, %v12079_v40  ;;  %v13373_v46 = vld [vmem:[#allocation12_spill] sm:$0xff]  ;;  %v3788_v59 = vsub.f32 %v13374_v25, %v12101_v26  ;;  %10405 = vpow2.f32 %v3886_v42 }
 0x4ca   : > { %9852 = vmatmul.mubr.msk.f32.vlgmr.msra.gmra.mxu1 %vm3559_vm1, %v4151_v41  ;;  %9854 = vmatprep.subr.mxu1 %v9816_v0  ;;  %v12143_v9 = vpop.eup %10377  ;;  %v4010_v8 = vsel %vm3559_vm1, %v12137_v52, 0.0  ;;  %10407 = vpow2.f32 %v3884_v32 }
 0x4cb   : > { %v4374_v27 = vpop.f32.mrf.mxu0  ;;  %9855 = vmatpush3.msra.mxu1 %v9816_v0  ;;  %9858 = vmatprep.mubr.msk.f32.mxu1 %vm3559_vm1, %v4153_v14  ;;  %v10380_v18 = vpop.eup %10379  ;;  %v4019_v4 = vsel %vm3559_vm1, %v12143_v9, 0.0  ;;  %v3890_v16 = vmul.f32 1.442695, %v3789_v33  ;;  %v3888_v58 = vmul.f32 1.442695, %v3788_v59 }
 0x4cc   : > { %9856 = vmatprep.subr.mxu1 %v4374_v27  ;;  %4005 = vadd.xlane.f32.xlu0 %v4004_v21  ;;  %v10382_v12 = vpop.eup %10381  ;;  %v4161_v23 = vmul.f32 %v10380_v18, %v13372_v3  ;;  %v12168_v0 = vpop.xlane.xlu1 %3696  ;;  %v13378_v18 = vld [vmem:[#allocation23_spill] sm:$0xff] }
 0x4cd   : > { %v9819_v30 = vpop.f32.mrf.mxu0  ;;  %9857 = vmatpush3.msra.mxu1 %v4374_v27  ;;  %4014 = vadd.xlane.f32.xlu1 %v4013_v24  ;;  %v12155_v34 = vpop.eup %10383  ;;  %v4163_v29 = vmul.f32 %v10382_v12, %v13373_v46  ;;  %10409 = vpow2.f32 %v3890_v16 }
 0x4ce   : > { %9859 = vmatmul.mubr.msk.f32.vlgmr.msra.gmra.mxu1 %vm3559_vm1, %v4155_v7  ;;  %9861 = vmatprep.subr.mxu1 %v9819_v30  ;;  %v12161_v47 = vpop.eup %10385  ;;  %v4016_v45 = vsel %vm3559_vm1, %v12155_v34, 0.0  ;;  %v12182_v24 = vpop.xlane.xlu0 %3693  ;;  %10411 = vpow2.f32 %v3888_v58  ;;  %v13384_v58 = vld [vmem:[#allocation24_spill] sm:$0xff] }
 0x4cf   : > { %v4384_v38 = vpop.f32.mrf.mxu0  ;;  %9862 = vmatpush3.msra.mxu1 %v9819_v30  ;;  %9865 = vmatprep.mubr.msk.f32.mxu1 %vm3559_vm1, %v4157_v51  ;;  %v10388_v35 = vpop.eup %10387  ;;  %v4025_v26 = vsel %vm3559_vm1, %v12161_v47, 0.0  ;;  %v13377_v30 = vld [vmem:[#allocation14_spill] sm:$0xff] }
 0x4d0   : > { %9863 = vmatprep.subr.mxu1 %v4384_v38  ;;  %4011 = vadd.xlane.f32.xlu0 %v4010_v8  ;;  %v10390_v40 = vpop.eup %10389  ;;  %v4165_v20 = vmul.f32 %v10388_v35, %v13376_v22  ;;  %v3894_v8 = vmul.f32 1.442695, %v3791_v36  ;;  %v3691_v33 = vpop.xlane.xlu1 %3690 }
 0x4d1   : > { %v9822_v41 = vpop.f32.mrf.mxu0  ;;  %9864 = vmatpush3.msra.mxu1 %v4384_v38  ;;  %4020 = vadd.xlane.f32.xlu1 %v4019_v4  ;;  %v12173_v7 = vpop.eup %10391  ;;  %v4167_v51 = vmul.f32 %v10390_v40, %v13377_v30  ;;  %v3793_v38 = vsub.f32 %v13379_v61, %v12114_v37  ;;  %v13380_v4 = vld [vmem:[#allocation20_spill] sm:$0xff]  ;;  %v13385_v61 = vld [vmem:[#allocation27_spill] sm:$0xff] }
 0x4d2   : > { %9866 = vmatmul.mubr.msk.f32.vlgmr.msra.gmra.mxu1 %vm3559_vm1, %v4159_v11  ;;  %9868 = vmatprep.subr.mxu1 %v9822_v41  ;;  %v12179_v27 = vpop.eup %10393  ;;  %v3790_v11 = vsub.f32 %v13378_v18, %v3676_v57  ;;  %v4022_v54 = vsel %vm3559_vm1, %v12173_v7, 0.0  ;;  %10413 = vpow2.f32 %v3894_v8  ;;  %v3688_v32 = vpop.xlane.xlu0 %3687  ;;  %v3796_v18 = vsub.f32 %v13384_v58, %v12182_v24  ;;  %v13386_v24 = vld [vmem:[#allocation28_spill] sm:$0xff] }
 0x4d3   : > { %v4394_v14 = vpop.f32.mrf.mxu0  ;;  %9869 = vmatpush3.msra.mxu1 %v9822_v41  ;;  %9872 = vmatprep.mubr.msk.f32.mxu1 %vm3559_vm1, %v4161_v23  ;;  %v12190_v43 = vpop.eup %10395  ;;  %v4031_v42 = vsel %vm3559_vm1, %v12179_v27, 0.0  ;;  %v3792_v41 = vsub.f32 %v13380_v4, %v12128_v62  ;;  %v3898_v46 = vmul.f32 1.442695, %v3793_v38 }
 0x4d4   : > { %9870 = vmatprep.subr.mxu1 %v4394_v14  ;;  %4017 = vadd.xlane.f32.xlu0 %v4016_v45  ;;  %v12196_v63 = vpop.eup %10397  ;;  %v3892_v37 = vmul.f32 1.442695, %v3790_v11  ;;  %v4028_v3 = vsel %vm3559_vm1, %v12190_v43, 0.0  ;;  %v13382_v45 = vld [vmem:[#allocation26_spill] sm:$0xff] }
 0x4d5   : > { %v9825_v21 = vpop.f32.mrf.mxu0  ;;  %9871 = vmatpush3.msra.mxu1 %v4394_v14  ;;  %4026 = vadd.xlane.f32.xlu1 %v4025_v26  ;;  %v12203_v35 = vpop.eup %10399  ;;  %v4037_v25 = vsel %vm3559_vm1, %v12196_v63, 0.0  ;;  %v3896_v14 = vmul.f32 1.442695, %v3792_v41  ;;  %v3794_v16 = vsub.f32 %v13382_v45, %v3688_v32  ;;  %v13383_v26 = vld [vmem:[#allocation22_spill] sm:$0xff] }
 0x4d6   : > { %9873 = vmatmul.mubr.msk.f32.vlgmr.msra.gmra.mxu1 %vm3559_vm1, %v4163_v29  ;;  %9875 = vmatprep.subr.mxu1 %v9825_v21  ;;  %v13381_v29 = vld [vmem:[#allocation25_spill] sm:$0xff]  ;;  %v12208_v59 = vpop.eup %10401  ;;  %10415 = vpow2.f32 %v3892_v37  ;;  %v4034_v17 = vsel %vm3559_vm1, %v12203_v35, 0.0  ;;  %v3700_v8 = vpop.xlane.xlu0 %3699 }
 0x4d7   : > { %v4404_v12 = vpop.f32.mrf.mxu0  ;;  %9876 = vmatpush3.msra.mxu1 %v9825_v21  ;;  %9879 = vmatprep.mubr.msk.f32.mxu1 %vm3559_vm1, %v4165_v20  ;;  %v3795_v40 = vsub.f32 %v13381_v29, %v3691_v33  ;;  %v12216_v36 = vpop.eup %10403  ;;  %10417 = vpow2.f32 %v3898_v46  ;;  %v3797_v21 = vsub.f32 %v13383_v26, %v12168_v0  ;;  %v4043_v20 = vsel %vm3559_vm1, %v12208_v59, 0.0 }
 0x4d8   : > { %9877 = vmatprep.subr.mxu1 %v4404_v12  ;;  %4023 = vadd.xlane.f32.xlu0 %v4022_v54  ;;  %v12222_v30 = vpop.eup %10405  ;;  %10419 = vpow2.f32 %v3896_v14  ;;  %v3900_v11 = vmul.f32 1.442695, %v3794_v16  ;;  %v3798_v4 = vsub.f32 %v13386_v24, %v3700_v8 }
 0x4d9   : > { %9878 = vmatpush3.msra.mxu1 %v4404_v12  ;;  %4032 = vadd.xlane.f32.xlu1 %v4031_v42  ;;  %v9892_v57 = vpop.f32.mrf.mxu0  ;;  %v3902_v22 = vmul.f32 1.442695, %v3795_v40  ;;  %v4040_v12 = vsel %vm3559_vm1, %v12216_v36, 0.0  ;;  %v12228_v54 = vpop.eup %10407  ;;  %v3906_v0 = vmul.f32 1.442695, %v3797_v21  ;;  %v4049_v42 = vsel %vm3559_vm1, %v12222_v30, 0.0 }
 0x4da   : > { %9880 = vmatmul.mubr.msk.f32.vlgmr.msra.gmra.mxu1 %vm3559_vm1, %v4167_v51  ;;  %9914 = vmatprep.subr.mxu1 %v9892_v57  ;;  %v3703_v51 = vpop.xlane.xlu1 %3702  ;;  %v12233_v33 = vpop.eup %10409  ;;  %v4046_v41 = vsel %vm3559_vm1, %v12228_v54, 0.0  ;;  %v3908_v29 = vmul.f32 1.442695, %v3798_v4 }
 0x4db   : > { %v5148_v23 = vpop.f32.mrf.mxu0  ;;  %9915 = vmatpush3.msra.mxu1 %v9892_v57  ;;  %10421 = vpow2.f32 %v3902_v22  ;;  %v3799_v38 = vsub.f32 %v13385_v61, %v3703_v51  ;;  %v3904_v57 = vmul.f32 1.442695, %v3796_v18  ;;  %v12238_v37 = vpop.eup %10411 }
 0x4dc   : > { %4029 = vadd.xlane.f32.xlu0 %v4028_v3  ;;  %9916 = vmatprep.subr.mxu1 %v5148_v23  ;;  %10423 = vpow2.f32 %v3900_v11  ;;  %v4052_v40 = vsel %vm3559_vm1, %v12238_v37, 0.0 }
 0x4dd   : > { %4038 = vadd.xlane.f32.xlu1 %v4037_v25  ;;  %9917 = vmatpush3.msra.mxu1 %v5148_v23  ;;  %v12210_v62 = vpop.f32.mrf.mxu0  ;;  %10425 = vpow2.f32 %v3906_v0  ;;  %v3910_v3 = vmul.f32 1.442695, %v3799_v38  ;;  %v4055_v23 = vsel %vm3559_vm1, %v12233_v33, 0.0 }
 0x4de   : > { %9921 = vmatprep.subr.mxu1 %v12210_v62  ;;  %10427 = vpow2.f32 %v3904_v57  ;;  %v13387_v57 = vld [vmem:[#allocation29_spill] sm:$0xff] }
 0x4df   : > { %v12242_v46 = vpop.eup %10413  ;;  %10429 = vpow2.f32 %v3910_v3  ;;  %v13388_v3 = vld [vmem:[#allocation30_spill] sm:$0xff] }
 0x4e0   : > { %4035 = vadd.xlane.f32.xlu0 %v4034_v17  ;;  %v4061_v25 = vsel %vm3559_vm1, %v12242_v46, 0.0  ;;  %10431 = vpow2.f32 %v3908_v29  ;;  %v12286_v29 = vpop.f32.mrf.mxu0 }
 0x4e1   : > { %4044 = vadd.xlane.f32.xlu1 %v4043_v20 }
 0x4e3   : > { %v12246_v32 = vpop.eup %10415 }
 0x4e4   : > { %4041 = vadd.xlane.f32.xlu0 %v4040_v12  ;;  %v12250_v14 = vpop.eup %10417  ;;  %v4058_v45 = vsel %vm3559_vm1, %v12246_v32, 0.0 }
 0x4e5   : > { %4050 = vadd.xlane.f32.xlu1 %v4049_v42  ;;  %v12254_v16 = vpop.eup %10419  ;;  %v4067_v17 = vsel %vm3559_vm1, %v12250_v14, 0.0 }
 0x4e6   : > { %v4064_v21 = vsel %vm3559_vm1, %v12254_v16, 0.0 }
 0x4e8   : > { %4047 = vadd.xlane.f32.xlu0 %v4046_v41  ;;  %v12258_v26 = vpop.eup %10421 }
 0x4e9   : > { %4056 = vadd.xlane.f32.xlu1 %v4055_v23  ;;  %v12262_v22 = vpop.eup %10423  ;;  %v4073_v20 = vsel %vm3559_vm1, %v12258_v26, 0.0 }
 0x4ea   : > { %v12266_v51 = vpop.eup %10425  ;;  %v4070_v58 = vsel %vm3559_vm1, %v12262_v22, 0.0 }
 0x4eb   : > { %v12270_v18 = vpop.eup %10427  ;;  %v4079_v11 = vsel %vm3559_vm1, %v12266_v51, 0.0 }
 0x4ec   : > { %4053 = vadd.xlane.f32.xlu0 %v4052_v40  ;;  %v12274_v12 = vpop.eup %10429  ;;  %v4076_v0 = vsel %vm3559_vm1, %v12270_v18, 0.0 }
 0x4ed   : > { %4062 = vadd.xlane.f32.xlu1 %v4061_v25  ;;  %v12278_v61 = vpop.eup %10431  ;;  %v4085_v38 = vsel %vm3559_vm1, %v12274_v12, 0.0  ;;  %v12288_v25 = vpop.f32.mrf.mxu0 }
 0x4ee   : > { %v4082_v8 = vsel %vm3559_vm1, %v12278_v61, 0.0 }
 0x4f0   : > { %4059 = vadd.xlane.f32.xlu0 %v4058_v45 }
 0x4f1   : > { %4068 = vadd.xlane.f32.xlu1 %v4067_v17  ;;  %v13389_v17 = vld [vmem:[#allocation31_spill] sm:$0xff] }
 0x4f4   : > { %4065 = vadd.xlane.f32.xlu0 %v4064_v21 }
 0x4f5   : > { %4074 = vadd.xlane.f32.xlu1 %v4073_v20 }
 0x4f8   : > { %4071 = vadd.xlane.f32.xlu0 %v4070_v58 }
 0x4f9   : > { %4080 = vadd.xlane.f32.xlu1 %v4079_v11  ;;  %v13390_v11 = vld [vmem:[#allocation32_spill] sm:$0xff] }
 0x4fc   : > { %4077 = vadd.xlane.f32.xlu0 %v4076_v0 }
 0x4fd   : > { %4086 = vadd.xlane.f32.xlu1 %v4085_v38  ;;  %v12292_v38 = vpop.f32.mrf.mxu0 }
 0x500   : > { %4083 = vadd.xlane.f32.xlu0 %v4082_v8 }
 0x522   : > { %v3709_v42 = vpop.xlane.xlu1 %3708 }
 0x523   : > { %v3801_v24 = vsub.f32 %v13387_v57, %v3709_v42  ;;  %v12294_v42 = vpop.f32.mrf.mxu0 }
 0x524   : > { %v3706_v4 = vpop.xlane.xlu0 %3705 }
 0x525   : > { %v3914_v41 = vmul.f32 1.442695, %v3801_v24  ;;  %v3800_v23 = vsub.f32 %v13388_v3, %v3706_v4 }
 0x527   : > { %10433 = vpow2.f32 %v3914_v41  ;;  %v3912_v40 = vmul.f32 1.442695, %v3800_v23 }
 0x529   : > { %10435 = vpow2.f32 %v3912_v40 }
 0x52a   : > { %v3715_v45 = vpop.xlane.xlu1 %3714 }
 0x52b   : > { %v3803_v21 = vsub.f32 %v13389_v17, %v3715_v45  ;;  %v12302_v45 = vpop.f32.mrf.mxu0 }
 0x52c   : > { %v3712_v20 = vpop.xlane.xlu0 %3711 }
 0x52d   : > { %v3918_v58 = vmul.f32 1.442695, %v3803_v21  ;;  %v3802_v0 = vsub.f32 %v13390_v11, %v3712_v20 }
 0x52f   : > { %10437 = vpow2.f32 %v3918_v58  ;;  %v3916_v8 = vmul.f32 1.442695, %v3802_v0 }
 0x531   : > { %10439 = vpow2.f32 %v3916_v8 }
 0x532   : > { %v3721_v57 = vpop.xlane.xlu1 %3720 }
 0x533   : > { %v3805_v24 = vsub.f32 %v11972_v5, %v3721_v57 }
 0x534   : > { %v12297_v4 = vpop.eup %10433  ;;  %v3718_v41 = vpop.xlane.xlu0 %3717 }
 0x535   : > { %v3922_v3 = vmul.f32 1.442695, %v3805_v24  ;;  %v3804_v23 = vsub.f32 %v11980_v1, %v3718_v41  ;;  %v4091_v40 = vsel %vm3559_vm1, %v12297_v4, 0.0  ;;  %v12309_v1 = vpop.f32.mrf.mxu0 }
 0x536   : > { %v12304_v17 = vpop.eup %10435  ;;  %v3733_v21 = vpop.xlane.xlu1 %3732  ;;  %4092 = vadd.xlane.f32.xlu1 %v4091_v40 }
 0x537   : > { %10441 = vpow2.f32 %v3922_v3  ;;  %v3920_v20 = vmul.f32 1.442695, %v3804_v23  ;;  %v4088_v5 = vsel %vm3559_vm1, %v12304_v17, 0.0  ;;  %v3809_v58 = vsub.f32 %v11974_v39, %v3733_v21  ;;  %v12318_v21 = vpop.f32.mrf.mxu0 }
 0x538   : > { %v3730_v11 = vpop.xlane.xlu0 %3729  ;;  %4089 = vadd.xlane.f32.xlu0 %v4088_v5 }
 0x539   : > { %10443 = vpow2.f32 %v3920_v20  ;;  %v3808_v0 = vsub.f32 %v11987_v48, %v3730_v11  ;;  %v3930_v41 = vmul.f32 1.442695, %v3809_v58 }
 0x53a   : > { %v3727_v8 = vpop.xlane.xlu1 %3726 }
 0x53b   : > { %v3807_v57 = vsub.f32 %v11999_v44, %v3727_v8  ;;  %v3928_v5 = vmul.f32 1.442695, %v3808_v0  ;;  %v12325_v8 = vpop.f32.mrf.mxu0 }
 0x53c   : > { %v12313_v24 = vpop.eup %10437  ;;  %v3724_v3 = vpop.xlane.xlu0 %3723 }
 0x53d   : > { %v3926_v23 = vmul.f32 1.442695, %v3807_v57  ;;  %v3806_v40 = vsub.f32 %v12010_v53, %v3724_v3  ;;  %v4097_v39 = vsel %vm3559_vm1, %v12313_v24, 0.0 }
 0x53e   : > { %v12320_v20 = vpop.eup %10439  ;;  %4098 = vadd.xlane.f32.xlu1 %v4097_v39  ;;  %v3745_v48 = vpop.xlane.xlu1 %3744 }
 0x53f   : > { %10445 = vpow2.f32 %v3926_v23  ;;  %v3924_v11 = vmul.f32 1.442695, %v3806_v40  ;;  %v3813_v44 = vsub.f32 %v12008_v10, %v3745_v48  ;;  %v4094_v58 = vsel %vm3559_vm1, %v12320_v20, 0.0 }
 0x540   : > { %10447 = vpow2.f32 %v3930_v41  ;;  %4095 = vadd.xlane.f32.xlu0 %v4094_v58  ;;  %v3742_v53 = vpop.xlane.xlu0 %3741  ;;  %v12334_v58 = vpop.f32.mrf.mxu0 }
 0x541   : > { %10449 = vpow2.f32 %v3924_v11  ;;  %v3938_v57 = vmul.f32 1.442695, %v3813_v44  ;;  %v3812_v0 = vsub.f32 %v12017_v50, %v3742_v53 }
 0x542   : > { %v3739_v3 = vpop.xlane.xlu1 %3738  ;;  %10451 = vpow2.f32 %v3928_v5  ;;  %v12340_v53 = vpop.f32.mrf.mxu0 }
 0x543   : > { %v3811_v39 = vsub.f32 %v12032_v6, %v3739_v3  ;;  %10453 = vpow2.f32 %v3938_v57  ;;  %v3936_v44 = vmul.f32 1.442695, %v3812_v0 }
 0x544   : > { %v12329_v23 = vpop.eup %10441  ;;  %v3736_v40 = vpop.xlane.xlu0 %3735 }
 0x545   : > { %13391 = vst [vmem:[#allocation16_spill] sm:$0xff] %v12329_v23  ;;  %v3934_v10 = vmul.f32 1.442695, %v3811_v39  ;;  %v3810_v48 = vsub.f32 %v12045_v15, %v3736_v40  ;;  %v4103_v41 = vsel %vm3559_vm1, %v12329_v23, 0.0 }
 0x546   : > { %v12336_v11 = vpop.eup %10443  ;;  %4104 = vadd.xlane.f32.xlu1 %v4103_v41  ;;  %v3997_v5 = vpop.xlane.xlu1 %3996 }
 0x547   : > { %13392 = vst [vmem:[#allocation17_spill] sm:$0xff] %v12336_v11  ;;  %10455 = vpow2.f32 %v3934_v10  ;;  %v3932_v50 = vmul.f32 1.442695, %v3810_v48  ;;  %v4100_v6 = vsel %vm3559_vm1, %v12336_v11, 0.0  ;;  %v12349_v41 = vpop.f32.mrf.mxu0 }
 0x548   : > { %10457 = vrcp.f32 %v3997_v5  ;;  %4101 = vadd.xlane.f32.xlu0 %v4100_v6 }
 0x549   : > { %10459 = vpow2.f32 %v3932_v50  ;;  %v3994_v15 = vpop.xlane.xlu0 %3993 }
 0x54a   : > { %10461 = vrcp.f32 %v3994_v15  ;;  %v3751_v3 = vpop.xlane.xlu1 %3750 }
 0x54b   : > { %10463 = vpow2.f32 %v3936_v44  ;;  %v3815_v39 = vsub.f32 %v12071_v31, %v3751_v3 }
 0x54c   : > { %v12343_v57 = vpop.eup %10445 }
 0x54d   : > { %13393 = vst [vmem:[#allocation13_spill] sm:$0xff] %v12343_v57  ;;  %v12345_v40 = vpop.eup %10447  ;;  %v3942_v0 = vmul.f32 1.442695, %v3815_v39  ;;  %v3748_v10 = vpop.xlane.xlu0 %3747  ;;  %v4109_v48 = vsel %vm3559_vm1, %v12343_v57, 0.0 }
 0x54e   : > { %13394 = vst [vmem:[#allocation12_spill] sm:$0xff] %v12345_v40  ;;  %v12351_v5 = vpop.eup %10449  ;;  %v3814_v50 = vsub.f32 %v12086_v55, %v3748_v10  ;;  %4110 = vadd.xlane.f32.xlu1 %v4109_v48  ;;  %v4003_v6 = vpop.xlane.xlu1 %4002  ;;  %v4115_v39 = vsel %vm3559_vm1, %v12345_v40, 0.0 }
 0x54f   : > { %13395 = vst [vmem:[#allocation19_spill] sm:$0xff] %v12351_v5  ;;  %10465 = vpow2.f32 %v3942_v0  ;;  %v4106_v31 = vsel %vm3559_vm1, %v12351_v5, 0.0  ;;  %v12356_v44 = vpop.eup %10451  ;;  %v12360_v57 = vpop.f32.mrf.mxu0 }
 0x550   : > { %13396 = vst [vmem:[#allocation21_spill] sm:$0xff] %v12356_v44  ;;  %v3940_v15 = vmul.f32 1.442695, %v3814_v50  ;;  %4107 = vadd.xlane.f32.xlu0 %v4106_v31  ;;  %10467 = vrcp.f32 %v4003_v6  ;;  %v12362_v10 = vpop.eup %10453  ;;  %v4112_v0 = vsel %vm3559_vm1, %v12356_v44, 0.0 }
 0x551   : > { %v4000_v3 = vpop.xlane.xlu0 %3999  ;;  %v12370_v40 = vpop.f32.mrf.mxu0 }
 0x552   : > { %10469 = vpow2.f32 %v3940_v15  ;;  %4116 = vadd.xlane.f32.xlu1 %v4115_v39  ;;  %v4009_v55 = vpop.xlane.xlu1 %4008 }
 0x553   : > { %10471 = vrcp.f32 %v4000_v3  ;;  %v12382_v11 = vpop.f32.mrf.mxu0 }
 0x554   : > { %v12366_v48 = vpop.eup %10455  ;;  %4113 = vadd.xlane.f32.xlu0 %v4112_v0  ;;  %10473 = vrcp.f32 %v4009_v55 }
 0x555   : > { %13397 = vst [vmem:[#allocation15_spill] sm:$0xff] %v12366_v48  ;;  %v10458_v50 = vpop.eup %10457  ;;  %v4006_v6 = vpop.xlane.xlu0 %4005  ;;  %v4121_v31 = vsel %vm3559_vm1, %v12366_v48, 0.0  ;;  %v4127_v48 = vsel %vm3559_vm1, %v12362_v10, 0.0 }
 0x556   : > { %v12372_v15 = vpop.eup %10459  ;;  %10475 = vrcp.f32 %v4006_v6  ;;  %4122 = vadd.xlane.f32.xlu1 %v4121_v31  ;;  %v4015_v39 = vpop.xlane.xlu1 %4014  ;;  %v4171_v23 = vmul.f32 %v10458_v50, %v12042_v49 }
 0x557   : > { %v10462_v3 = vpop.eup %10461  ;;  %v4118_v44 = vsel %vm3559_vm1, %v12372_v15, 0.0  ;;  %10477 = vrcp.f32 %v4015_v39  ;;  %v12394_v50 = vpop.f32.mrf.mxu0 }
 0x558   : > { %v12376_v5 = vpop.eup %10463  ;;  %4119 = vadd.xlane.f32.xlu0 %v4118_v44  ;;  %v4169_v55 = vmul.f32 %v10462_v3, %v12053_v19 }
 0x559   : > { %v4012_v0 = vpop.xlane.xlu0 %4011  ;;  %v4124_v44 = vsel %vm3559_vm1, %v12376_v5, 0.0 }
 0x55a   : > { %10479 = vrcp.f32 %v4012_v0  ;;  %9918 = vmatprep.mubr.msk.f32.mxu1 %vm3559_vm1, %v4169_v55  ;;  %4128 = vadd.xlane.f32.xlu1 %v4127_v48  ;;  %v4021_v6 = vpop.xlane.xlu1 %4020 }
 0x55b   : > { %9919 = vmatmul.mubr.msk.f32.vlgmr.msra.gmra.mxu1 %vm3559_vm1, %v4171_v23  ;;  %10481 = vrcp.f32 %v4021_v6  ;;  %v12403_v6 = vpop.f32.mrf.mxu0 }
 0x55c   : > { %v12388_v19 = vpop.eup %10465  ;;  %4125 = vadd.xlane.f32.xlu0 %v4124_v44  ;;  %9922 = vmatpush3.msra.mxu1 %v12210_v62 }
 0x55d   : > { %13398 = vst [vmem:[#allocation14_spill] sm:$0xff] %v12388_v19  ;;  %v4018_v31 = vpop.xlane.xlu0 %4017  ;;  %v4133_v49 = vsel %vm3559_vm1, %v12388_v19, 0.0  ;;  %9923 = vmatprep.subr.mxu1 %v12286_v29  ;;  %v10468_v48 = vpop.eup %10467 }
 0x55e   : > { %10483 = vrcp.f32 %v4018_v31  ;;  %4134 = vadd.xlane.f32.xlu1 %v4133_v49  ;;  %v4027_v23 = vpop.xlane.xlu1 %4026  ;;  %9924 = vmatpush3.msra.mxu1 %v12286_v29  ;;  %v4175_v29 = vmul.f32 %v10468_v48, %v12083_v2 }
 0x55f   : > { %v12397_v39 = vpop.eup %10469  ;;  %9928 = vmatprep.subr.mxu1 %v12288_v25  ;;  %10485 = vrcp.f32 %v4027_v23 }
 0x560   : > { %v10472_v62 = vpop.eup %10471  ;;  %v4130_v3 = vsel %vm3559_vm1, %v12397_v39, 0.0 }
 0x561   : > { %4131 = vadd.xlane.f32.xlu0 %v4130_v3  ;;  %v4024_v55 = vpop.xlane.xlu0 %4023  ;;  %v4173_v0 = vmul.f32 %v10472_v62, %v12097_v60  ;;  %v10474_v44 = vpop.eup %10473 }
 0x562   : > { %10487 = vrcp.f32 %v4024_v55  ;;  %v4033_v31 = vpop.xlane.xlu1 %4032  ;;  %v12410_v3 = vpop.f32.mrf.mxu0  ;;  %v4179_v48 = vmul.f32 %v10474_v44, %v12105_v13 }
 0x563   : > { %v10476_v49 = vpop.eup %10475  ;;  %9925 = vmatprep.mubr.msk.f32.mxu1 %vm3559_vm1, %v4173_v0  ;;  %10489 = vrcp.f32 %v4033_v31 }
 0x564   : > { %9926 = vmatmul.mubr.msk.f32.vlgmr.msra.gmra.mxu1 %vm3559_vm1, %v4175_v29  ;;  %v4177_v19 = vmul.f32 %v10476_v49, %v12119_v28  ;;  %v10478_v60 = vpop.eup %10477  ;;  %v12420_v55 = vpop.f32.mrf.mxu0 }
 0x565   : > { %9929 = vmatpush3.msra.mxu1 %v12288_v25  ;;  %v4030_v23 = vpop.xlane.xlu0 %4029 }
 0x566   : > { %9930 = vmatprep.subr.mxu1 %v12292_v38  ;;  %10491 = vrcp.f32 %v4030_v23  ;;  %9932 = vmatprep.mubr.msk.f32.mxu1 %vm3559_vm1, %v4177_v19  ;;  %v4039_v2 = vpop.xlane.xlu1 %4038  ;;  %v12430_v44 = vpop.f32.mrf.mxu0 }
 0x567   : > { %v10480_v62 = vpop.eup %10479  ;;  %9931 = vmatpush3.msra.mxu1 %v12292_v38  ;;  %10493 = vrcp.f32 %v4039_v2  ;;  %v4183_v38 = vmul.f32 %v10478_v60, %v12125_v56 }
 0x568   : > { %9933 = vmatmul.mubr.msk.f32.vlgmr.msra.gmra.mxu1 %vm3559_vm1, %v4179_v48  ;;  %9935 = vmatprep.subr.mxu1 %v12294_v42  ;;  %v4181_v28 = vmul.f32 %v10480_v62, %v12137_v52  ;;  %v10482_v0 = vpop.eup %10481  ;;  %v12440_v49 = vpop.f32.mrf.mxu0 }
 0x569   : > { %9936 = vmatpush3.msra.mxu1 %v12294_v42  ;;  %v4036_v25 = vpop.xlane.xlu0 %4035 }
 0x56a   : > { %9937 = vmatprep.subr.mxu1 %v12302_v45  ;;  %10495 = vrcp.f32 %v4036_v25  ;;  %9939 = vmatprep.mubr.msk.f32.mxu1 %vm3559_vm1, %v4181_v28  ;;  %v4045_v13 = vpop.xlane.xlu1 %4044  ;;  %v12450_v2 = vpop.f32.mrf.mxu0 }
 0x56b   : > { %v10484_v19 = vpop.eup %10483  ;;  %9938 = vmatpush3.msra.mxu1 %v12302_v45  ;;  %10497 = vrcp.f32 %v4045_v13  ;;  %v4187_v45 = vmul.f32 %v10482_v0, %v12143_v9 }
 0x56c   : > { %9940 = vmatmul.mubr.msk.f32.vlgmr.msra.gmra.mxu1 %vm3559_vm1, %v4183_v38  ;;  %9942 = vmatprep.subr.mxu1 %v12309_v1  ;;  %v4185_v52 = vmul.f32 %v10484_v19, %v12155_v34  ;;  %v10486_v31 = vpop.eup %10485  ;;  %v12460_v28 = vpop.f32.mrf.mxu0 }
 0x56d   : > { %9943 = vmatpush3.msra.mxu1 %v12309_v1  ;;  %v4042_v42 = vpop.xlane.xlu0 %4041 }
 0x56e   : > { %9944 = vmatprep.subr.mxu1 %v12318_v21  ;;  %10499 = vrcp.f32 %v4042_v42  ;;  %9946 = vmatprep.mubr.msk.f32.mxu1 %vm3559_vm1, %v4185_v52  ;;  %v4051_v56 = vpop.xlane.xlu1 %4050  ;;  %v6002_v13 = vpop.f32.mrf.mxu0 }
 0x56f   : > { %v10488_v29 = vpop.eup %10487  ;;  %9945 = vmatpush3.msra.mxu1 %v12318_v21  ;;  %10501 = vrcp.f32 %v4051_v56  ;;  %v4191_v21 = vmul.f32 %v10486_v31, %v12161_v47 }
 0x570   : > { %9947 = vmatmul.mubr.msk.f32.vlgmr.msra.gmra.mxu1 %vm3559_vm1, %v4187_v45  ;;  %9949 = vmatprep.subr.mxu1 %v12325_v8  ;;  %v4189_v34 = vmul.f32 %v10488_v29, %v12173_v7  ;;  %v10490_v23 = vpop.eup %10489  ;;  %v9995_v52 = vpop.f32.mrf.mxu0 }
 0x571   : > { %9950 = vmatpush3.msra.mxu1 %v12325_v8  ;;  %v4048_v1 = vpop.xlane.xlu0 %4047 }
 0x572   : > { %9951 = vmatprep.subr.mxu1 %v12334_v58  ;;  %10503 = vrcp.f32 %v4048_v1  ;;  %9953 = vmatprep.mubr.msk.f32.mxu1 %vm3559_vm1, %v4189_v34  ;;  %v4057_v9 = vpop.xlane.xlu1 %4056  ;;  %v6012_v56 = vpop.f32.mrf.mxu0 }
 0x573   : > { %v10492_v60 = vpop.eup %10491  ;;  %9952 = vmatpush3.msra.mxu1 %v12334_v58  ;;  %10505 = vrcp.f32 %v4057_v9  ;;  %v4195_v58 = vmul.f32 %v10490_v23, %v12179_v27 }
 0x574   : > { %9954 = vmatmul.mubr.msk.f32.vlgmr.msra.gmra.mxu1 %vm3559_vm1, %v4191_v21  ;;  %9956 = vmatprep.subr.mxu1 %v12340_v53  ;;  %v4193_v7 = vmul.f32 %v10492_v60, %v12190_v43  ;;  %v10494_v48 = vpop.eup %10493  ;;  %v9998_v34 = vpop.f32.mrf.mxu0 }
 0x575   : > { %9957 = vmatpush3.msra.mxu1 %v12340_v53  ;;  %v4054_v8 = vpop.xlane.xlu0 %4053 }
 0x576   : > { %9958 = vmatprep.subr.mxu1 %v12349_v41  ;;  %10507 = vrcp.f32 %v4054_v8  ;;  %9960 = vmatprep.mubr.msk.f32.mxu1 %vm3559_vm1, %v4193_v7  ;;  %v4063_v47 = vpop.xlane.xlu1 %4062 }
 0x577   : > { %v10496_v62 = vpop.eup %10495  ;;  %9959 = vmatpush3.msra.mxu1 %v12349_v41  ;;  %10509 = vrcp.f32 %v4063_v47  ;;  %v4199_v41 = vmul.f32 %v10494_v48, %v12196_v63 }
 0x578   : > { %9961 = vmatmul.mubr.msk.f32.vlgmr.msra.gmra.mxu1 %vm3559_vm1, %v4195_v58  ;;  %9963 = vmatprep.subr.mxu1 %v12360_v57  ;;  %v4197_v43 = vmul.f32 %v10496_v62, %v12203_v35  ;;  %v10498_v25 = vpop.eup %10497 }
 0x579   : > { %9964 = vmatpush3.msra.mxu1 %v12360_v57  ;;  %v4060_v53 = vpop.xlane.xlu0 %4059 }
 0x57a   : > { %9965 = vmatprep.subr.mxu1 %v12370_v40  ;;  %10511 = vrcp.f32 %v4060_v53  ;;  %9967 = vmatprep.mubr.msk.f32.mxu1 %vm3559_vm1, %v4197_v43  ;;  %v4069_v27 = vpop.xlane.xlu1 %4068 }
 0x57b   : > { %v10500_v0 = vpop.eup %10499  ;;  %9966 = vmatpush3.msra.mxu1 %v12370_v40  ;;  %10513 = vrcp.f32 %v4069_v27  ;;  %v4203_v40 = vmul.f32 %v10498_v25, %v12208_v59 }
 0x57c   : > { %9968 = vmatmul.mubr.msk.f32.vlgmr.msra.gmra.mxu1 %vm3559_vm1, %v4199_v41  ;;  %10002 = vmatprep.subr.mxu1 %v12382_v11  ;;  %v4201_v35 = vmul.f32 %v10500_v0, %v12216_v36  ;;  %v10502_v38 = vpop.eup %10501 }
 0x57d   : > { %10003 = vmatpush3.msra.mxu1 %v12382_v11  ;;  %v4066_v57 = vpop.xlane.xlu0 %4065 }
 0x57e   : > { %10004 = vmatprep.subr.mxu1 %v12394_v50  ;;  %10515 = vrcp.f32 %v4066_v57  ;;  %10006 = vmatprep.mubr.msk.f32.mxu1 %vm3559_vm1, %v4201_v35  ;;  %v4075_v63 = vpop.xlane.xlu1 %4074 }
 0x57f   : > { %v10504_v19 = vpop.eup %10503  ;;  %10005 = vmatpush3.msra.mxu1 %v12394_v50  ;;  %10517 = vrcp.f32 %v4075_v63  ;;  %v4207_v50 = vmul.f32 %v10502_v38, %v12222_v30 }
 0x580   : > { %10007 = vmatmul.mubr.msk.f32.vlgmr.msra.gmra.mxu1 %vm3559_vm1, %v4203_v40  ;;  %10009 = vmatprep.subr.mxu1 %v12403_v6  ;;  %v4205_v36 = vmul.f32 %v10504_v19, %v12228_v54  ;;  %v10506_v42 = vpop.eup %10505 }
 0x581   : > { %10010 = vmatpush3.msra.mxu1 %v12403_v6  ;;  %v4072_v11 = vpop.xlane.xlu0 %4071 }
 0x582   : > { %10011 = vmatprep.subr.mxu1 %v12410_v3  ;;  %10519 = vrcp.f32 %v4072_v11  ;;  %10013 = vmatprep.mubr.msk.f32.mxu1 %vm3559_vm1, %v4205_v36  ;;  %v4081_v59 = vpop.xlane.xlu1 %4080 }
 0x583   : > { %v10508_v31 = vpop.eup %10507  ;;  %10012 = vmatpush3.msra.mxu1 %v12410_v3  ;;  %10521 = vrcp.f32 %v4081_v59  ;;  %v4211_v3 = vmul.f32 %v10506_v42, %v12233_v33 }
 0x584   : > { %10014 = vmatmul.mubr.msk.f32.vlgmr.msra.gmra.mxu1 %vm3559_vm1, %v4207_v50  ;;  %10016 = vmatprep.subr.mxu1 %v12420_v55  ;;  %v4209_v54 = vmul.f32 %v10508_v31, %v12238_v37  ;;  %v10510_v45 = vpop.eup %10509 }
 0x585   : > { %10017 = vmatpush3.msra.mxu1 %v12420_v55  ;;  %v4078_v6 = vpop.xlane.xlu0 %4077  ;;  %v4215_v33 = vmul.f32 %v10510_v45, %v12242_v46 }
 0x586   : > { %10018 = vmatprep.subr.mxu1 %v12430_v44  ;;  %10523 = vrcp.f32 %v4078_v6  ;;  %10020 = vmatprep.mubr.msk.f32.mxu1 %vm3559_vm1, %v4209_v54  ;;  %v4087_v30 = vpop.xlane.xlu1 %4086 }
 0x587   : > { %v10512_v29 = vpop.eup %10511  ;;  %10019 = vmatpush3.msra.mxu1 %v12430_v44  ;;  %10525 = vrcp.f32 %v4087_v30 }
 0x588   : > { %10021 = vmatmul.mubr.msk.f32.vlgmr.msra.gmra.mxu1 %vm3559_vm1, %v4211_v3  ;;  %10023 = vmatprep.subr.mxu1 %v12440_v49  ;;  %v4213_v37 = vmul.f32 %v10512_v29, %v12246_v32  ;;  %v10514_v1 = vpop.eup %10513  ;;  %v13400_v3 = vld [vmem:[#allocation16_spill] sm:$0xff] }
 0x589   : > { %10024 = vmatpush3.msra.mxu1 %v12440_v49  ;;  %v4084_v55 = vpop.xlane.xlu0 %4083  ;;  %v6022_v49 = vpop.f32.mrf.mxu0  ;;  %v4219_v9 = vmul.f32 %v10514_v1, %v12250_v14 }
 0x58a   : > { %10025 = vmatprep.subr.mxu1 %v12450_v2  ;;  %10527 = vrcp.f32 %v4084_v55  ;;  %10027 = vmatprep.mubr.msk.f32.mxu1 %vm3559_vm1, %v4213_v37 }
 0x58b   : > { %v10516_v44 = vpop.eup %10515  ;;  %10026 = vmatpush3.msra.mxu1 %v12450_v2  ;;  %v10001_v60 = vpop.f32.mrf.mxu0 }
 0x58c   : > { %10028 = vmatmul.mubr.msk.f32.vlgmr.msra.gmra.mxu1 %vm3559_vm1, %v4215_v33  ;;  %10030 = vmatprep.subr.mxu1 %v12460_v28  ;;  %v4217_v32 = vmul.f32 %v10516_v44, %v12254_v16  ;;  %v10518_v23 = vpop.eup %10517 }
 0x58d   : > { %10031 = vmatpush3.msra.mxu1 %v12460_v28  ;;  %v4223_v16 = vmul.f32 %v10518_v23, %v12258_v26  ;;  %v6032_v2 = vpop.f32.mrf.mxu0 }
 0x58e   : > { %10032 = vmatprep.subr.mxu1 %v6002_v13  ;;  %10034 = vmatprep.mubr.msk.f32.mxu1 %vm3559_vm1, %v4217_v32 }
 0x58f   : > { %v10520_v21 = vpop.eup %10519  ;;  %10033 = vmatpush3.msra.mxu1 %v6002_v13  ;;  %v10068_v58 = vpop.f32.mrf.mxu0 }
 0x590   : > { %10035 = vmatmul.mubr.msk.f32.vlgmr.msra.gmra.mxu1 %vm3559_vm1, %v4219_v9  ;;  %10037 = vmatprep.subr.mxu1 %v9995_v52  ;;  %v4221_v46 = vmul.f32 %v10520_v21, %v12262_v22  ;;  %v10522_v7 = vpop.eup %10521  ;;  %v13401_v9 = vld [vmem:[#allocation19_spill] sm:$0xff] }
 0x591   : > { %10038 = vmatpush3.msra.mxu1 %v9995_v52  ;;  %v4227_v22 = vmul.f32 %v10522_v7, %v12266_v51  ;;  %v6776_v62 = vpop.f32.mrf.mxu0 }
 0x592   : > { %10039 = vmatprep.subr.mxu1 %v6012_v56  ;;  %10041 = vmatprep.mubr.msk.f32.mxu1 %vm3559_vm1, %v4221_v46  ;;  %v13402_v46 = vld [vmem:[#allocation13_spill] sm:$0xff] }
 0x593   : > { %v10524_v8 = vpop.eup %10523  ;;  %10040 = vmatpush3.msra.mxu1 %v6012_v56  ;;  %v10071_v51 = vpop.f32.mrf.mxu0 }
 0x594   : > { %10042 = vmatmul.mubr.msk.f32.vlgmr.msra.gmra.mxu1 %vm3559_vm1, %v4223_v16  ;;  %10044 = vmatprep.subr.mxu1 %v9998_v34  ;;  %v4225_v14 = vmul.f32 %v10524_v8, %v12270_v18  ;;  %v10526_v48 = vpop.eup %10525  ;;  %v12525_v56 = vpop.f32.mrf.mxu1 }
 0x595   : > { %10045 = vmatpush3.msra.mxu1 %v9998_v34  ;;  %v4231_v18 = vmul.f32 %v10526_v48, %v12274_v12  ;;  %v6786_v28 = vpop.f32.mrf.mxu0  ;;  %v13403_v48 = vld [vmem:[#allocation21_spill] sm:$0xff] }
 0x596   : > { %10046 = vmatprep.subr.mxu1 %v6022_v49  ;;  %10048 = vmatprep.mubr.msk.f32.mxu1 %vm3559_vm1, %v4225_v14  ;;  %v12531_v34 = vpop.f32.mrf.mxu1 }
 0x597   : > { %v10528_v47 = vpop.eup %10527  ;;  %10047 = vmatpush3.msra.mxu1 %v6022_v49  ;;  %v10074_v12 = vpop.f32.mrf.mxu0 }
 0x598   : > { %10049 = vmatmul.mubr.msk.f32.vlgmr.msra.gmra.mxu1 %vm3559_vm1, %v4227_v22  ;;  %10051 = vmatprep.subr.mxu1 %v10001_v60  ;;  %v4229_v26 = vmul.f32 %v10528_v47, %v12278_v61  ;;  %v12533_v23 = vpop.f32.mrf.mxu1  ;;  %v13404_v47 = vld [vmem:[#allocation12_spill] sm:$0xff] }
 0x599   : > { %10052 = vmatpush3.msra.mxu1 %v10001_v60  ;;  %v6796_v41 = vpop.f32.mrf.mxu0 }
 0x59a   : > { %10053 = vmatprep.subr.mxu1 %v6032_v2  ;;  %10055 = vmatprep.mubr.msk.f32.mxu1 %vm3559_vm1, %v4229_v26 }
 0x59b   : > { %10054 = vmatpush3.msra.mxu1 %v6032_v2  ;;  %v10077_v63 = vpop.f32.mrf.mxu0  ;;  %v4566_v2 = vpop.f32.mrf.mxu1 }
 0x59c   : > { %10056 = vmatmul.mubr.msk.f32.vlgmr.msra.gmra.mxu1 %vm3559_vm1, %v4231_v18  ;;  %10090 = vmatprep.subr.mxu1 %v10068_v58 }
 0x59d   : > { %10091 = vmatpush3.msra.mxu1 %v10068_v58  ;;  %v6806_v19 = vpop.f32.mrf.mxu0 }
 0x59e   : > { %10092 = vmatprep.subr.mxu1 %v6776_v62 }
 0x59f   : > { %10093 = vmatpush3.msra.mxu1 %v6776_v62  ;;  %v10080_v42 = vpop.f32.mrf.mxu0 }
 0x5a0   : > { %10097 = vmatprep.subr.mxu1 %v10071_v51 }
 0x5a1   : > { %v6816_v54 = vpop.f32.mrf.mxu0 }
 0x5a3   : > { %v10083_v37 = vpop.f32.mrf.mxu0 }
 0x5a5   : > { %v6826_v44 = vpop.f32.mrf.mxu0 }
 0x5a7   : > { %v10086_v8 = vpop.f32.mrf.mxu0 }
 0x5a9   : > { %v6836_v18 = vpop.f32.mrf.mxu0 }
 0x5bf   : > { %v4093_v43 = vpop.xlane.xlu1 %4092 }
 0x5c0   : > { %10529 = vrcp.f32 %v4093_v43 }
 0x5c1   : > { %v4090_v53 = vpop.xlane.xlu0 %4089 }
 0x5c2   : > { %10531 = vrcp.f32 %v4090_v53  ;;  %v13405_v53 = vld [vmem:[#allocation15_spill] sm:$0xff] }
 0x5c7   : > { %v4099_v61 = vpop.xlane.xlu1 %4098 }
 0x5c8   : > { %10533 = vrcp.f32 %v4099_v61 }
 0x5c9   : > { %v4096_v25 = vpop.xlane.xlu0 %4095 }
 0x5ca   : > { %10535 = vrcp.f32 %v4096_v25  ;;  %v10089_v25 = vpop.f32.mrf.mxu0 }
 0x5cd   : > { %v10530_v27 = vpop.eup %10529 }
 0x5ce   : > { %v4235_v38 = vmul.f32 %v10530_v27, %v12297_v4 }
 0x5cf   : > { %v10532_v0 = vpop.eup %10531  ;;  %v4105_v35 = vpop.xlane.xlu1 %4104 }
 0x5d0   : > { %v4233_v57 = vmul.f32 %v10532_v0, %v12304_v17  ;;  %10537 = vrcp.f32 %v4105_v35 }
 0x5d1   : > { %v4102_v13 = vpop.xlane.xlu0 %4101 }
 0x5d2   : > { %10539 = vrcp.f32 %v4102_v13  ;;  %10094 = vmatprep.mubr.msk.f32.mxu1 %vm3559_vm1, %v4233_v57 }
 0x5d3   : > { %10095 = vmatmul.mubr.msk.f32.vlgmr.msra.gmra.mxu1 %vm3559_vm1, %v4235_v38 }
 0x5d4   : > { %10098 = vmatpush3.msra.mxu1 %v10071_v51  ;;  %v9846_v51 = vpop.f32.mrf.mxu1 }
 0x5d5   : > { %10099 = vmatprep.subr.mxu1 %v6786_v28  ;;  %v10534_v40 = vpop.eup %10533 }
 0x5d6   : > { %10100 = vmatpush3.msra.mxu1 %v6786_v28  ;;  %v4239_v4 = vmul.f32 %v10534_v40, %v12313_v24  ;;  %v13399_v24 = vld [vmem:[#allocation17_spill] sm:$0xff]  ;;  %v4647_v27 = vpop.f32.mrf.mxu1 }
 0x5d7   : > { %v10536_v36 = vpop.eup %10535  ;;  %v4111_v11 = vpop.xlane.xlu1 %4110  ;;  %10104 = vmatprep.subr.mxu1 %v10074_v12 }
 0x5d8   : > { %v4237_v17 = vmul.f32 %v10536_v36, %v12320_v20  ;;  %10541 = vrcp.f32 %v4111_v11  ;;  %v9853_v13 = vpop.f32.mrf.mxu1 }
 0x5d9   : > { %v4108_v52 = vpop.xlane.xlu0 %4107 }
 0x5da   : > { %10543 = vrcp.f32 %v4108_v52  ;;  %10101 = vmatprep.mubr.msk.f32.mxu1 %vm3559_vm1, %v4237_v17 }
 0x5db   : > { %v4117_v59 = vpop.xlane.xlu1 %4116  ;;  %10102 = vmatmul.mubr.msk.f32.vlgmr.msra.gmra.mxu1 %vm3559_vm1, %v4239_v4 }
 0x5dc   : > { %10105 = vmatpush3.msra.mxu1 %v10074_v12  ;;  %10545 = vrcp.f32 %v4117_v59 }
 0x5dd   : > { %v4114_v50 = vpop.xlane.xlu0 %4113  ;;  %10106 = vmatprep.subr.mxu1 %v6796_v41  ;;  %v10538_v31 = vpop.eup %10537 }
 0x5de   : > { %10547 = vrcp.f32 %v4114_v50  ;;  %10107 = vmatpush3.msra.mxu1 %v6796_v41  ;;  %v4243_v29 = vmul.f32 %v10538_v31, %v13400_v3  ;;  %v10609_v50 = vld [vmem:[%s10960_s18 + $0x18] sm:$0xff] }
 0x5df   : > { %v10540_v20 = vpop.eup %10539  ;;  %v4123_v6 = vpop.xlane.xlu1 %4122  ;;  %10111 = vmatprep.subr.mxu1 %v10077_v63  ;;  %v5064_v31 = vadd.f32 %v10609_v50, %v12533_v23 }
 0x5e0   : > { %v4241_v45 = vmul.f32 %v10540_v20, %v13399_v24  ;;  %10549 = vrcp.f32 %v4123_v6  ;;  %v10610_v20 = vld [vmem:[%s10960_s18 + $0x10] sm:$0xff] }
 0x5e1   : > { %v4120_v30 = vpop.xlane.xlu0 %4119  ;;  %v5063_v6 = vadd.f32 %v10610_v20, %v4566_v2 }
 0x5e2   : > { %10551 = vrcp.f32 %v4120_v30  ;;  %10108 = vmatprep.mubr.msk.f32.mxu1 %vm3559_vm1, %v4241_v45  ;;  %v10611_v30 = vld [vmem:[%s10960_s18 + $0x28] sm:$0xff] }
 0x5e3   : > { %v4129_v55 = vpop.xlane.xlu1 %4128  ;;  %10109 = vmatmul.mubr.msk.f32.vlgmr.msra.gmra.mxu1 %vm3559_vm1, %v4243_v29  ;;  %v5066_v3 = vadd.f32 %v10611_v30, %v9846_v51 }
 0x5e4   : > { %10112 = vmatpush3.msra.mxu1 %v10077_v63  ;;  %10553 = vrcp.f32 %v4129_v55  ;;  %v10612_v55 = vld [vmem:[%s10960_s18 + $0x20] sm:$0xff] }
 0x5e5   : > { %10113 = vmatprep.subr.mxu1 %v6806_v19  ;;  %v4126_v1 = vpop.xlane.xlu0 %4125  ;;  %v10542_v33 = vpop.eup %10541 }
 0x5e6   : > { %10555 = vrcp.f32 %v4126_v1  ;;  %10114 = vmatpush3.msra.mxu1 %v6806_v19  ;;  %v4247_v60 = vmul.f32 %v10542_v33, %v13402_v46  ;;  %v5065_v1 = vadd.f32 %v10612_v55, %v4647_v27 }
 0x5e7   : > { %v10544_v32 = vpop.eup %10543  ;;  %v4135_v49 = vpop.xlane.xlu1 %4134  ;;  %10118 = vmatprep.subr.mxu1 %v10080_v42 }
 0x5e8   : > { %v4245_v21 = vmul.f32 %v10544_v32, %v13401_v9  ;;  %10557 = vrcp.f32 %v4135_v49  ;;  %v10613_v32 = vld [vmem:[%s10960_s18 + $0x38] sm:$0xff] }
 0x5e9   : > { %v10546_v7 = vpop.eup %10545  ;;  %v5068_v49 = vadd.f32 %v10613_v32, %v9853_v13  ;;  %v10621_v13 = vld [vmem:[%s10960_s18 + $0x78] sm:$0xff] }
 0x5ea   : > { %v4132_v16 = vpop.xlane.xlu0 %4131  ;;  %10115 = vmatprep.mubr.msk.f32.mxu1 %vm3559_vm1, %v4245_v21  ;;  %v4251_v58 = vmul.f32 %v10546_v7, %v13404_v47  ;;  %v10614_v21 = vld [vmem:[%s10960_s18 + $0x30] sm:$0xff]  ;;  %v12634_v32 = vld [vmem:[%s13299_s4 + $0x38] sm:$0xff] }
 0x5eb   : > { %v10548_v14 = vpop.eup %10547  ;;  %10559 = vrcp.f32 %v4132_v16  ;;  %10116 = vmatmul.mubr.msk.f32.vlgmr.msra.gmra.mxu1 %vm3559_vm1, %v4247_v60  ;;  %v10615_v16 = vld [vmem:[%s10960_s18 + $0x48] sm:$0xff] }
 0x5ec   : > { %10119 = vmatpush3.msra.mxu1 %v10080_v42  ;;  %v4249_v22 = vmul.f32 %v10548_v14, %v13403_v48  ;;  %v10616_v48 = vld [vmem:[%s10960_s18 + $0x40] sm:$0xff] }
 0x5ed   : > { %10120 = vmatprep.subr.mxu1 %v6816_v54  ;;  %v10550_v26 = vpop.eup %10549 }
 0x5ee   : > { %10121 = vmatpush3.msra.mxu1 %v6816_v54  ;;  %10122 = vmatprep.mubr.msk.f32.mxu1 %vm3559_vm1, %v4249_v22  ;;  %v4255_v61 = vmul.f32 %v10550_v26, %v13405_v53  ;;  %v10617_v26 = vld [vmem:[%s10960_s18 + $0x58] sm:$0xff] }
 0x5ef   : > { %v10552_v62 = vpop.eup %10551  ;;  %10125 = vmatprep.subr.mxu1 %v10083_v37  ;;  %10123 = vmatmul.mubr.msk.f32.vlgmr.msra.gmra.mxu1 %vm3559_vm1, %v4251_v58 }
 0x5f0   : > { %10126 = vmatpush3.msra.mxu1 %v10083_v37  ;;  %v4253_v43 = vmul.f32 %v10552_v62, %v12372_v15  ;;  %v6846_v15 = vpop.f32.mrf.mxu0 }
 0x5f1   : > { %10127 = vmatprep.subr.mxu1 %v6826_v44  ;;  %v10554_v28 = vpop.eup %10553 }
 0x5f2   : > { %10128 = vmatpush3.msra.mxu1 %v6826_v44  ;;  %10129 = vmatprep.mubr.msk.f32.mxu1 %vm3559_vm1, %v4253_v43  ;;  %v4259_v0 = vmul.f32 %v10554_v28, %v12362_v10  ;;  %v4728_v10 = vpop.f32.mrf.mxu1  ;;  %v10618_v43 = vld [vmem:[%s10960_s18 + $0x50] sm:$0xff] }
 0x5f3   : > { %v10556_v12 = vpop.eup %10555  ;;  %10132 = vmatprep.subr.mxu1 %v10086_v8  ;;  %10130 = vmatmul.mubr.msk.f32.vlgmr.msra.gmra.mxu1 %vm3559_vm1, %v4255_v61  ;;  %v5067_v46 = vadd.f32 %v10614_v21, %v4728_v10  ;;  %v10622_v21 = vld [vmem:[%s10960_s18 + $0x8] sm:$0xff] }
 0x5f4   : > { %10133 = vmatpush3.msra.mxu1 %v10086_v8  ;;  %v4257_v41 = vmul.f32 %v10556_v12, %v12376_v5  ;;  %v13406_v5 = vld [vmem:[#allocation14_spill] sm:$0xff]  ;;  %v9860_v40 = vpop.f32.mrf.mxu1 }
 0x5f5   : > { %10134 = vmatprep.subr.mxu1 %v6836_v18  ;;  %v10558_v35 = vpop.eup %10557  ;;  %v5070_v8 = vadd.f32 %v10615_v16, %v9860_v40  ;;  %v10623_v16 = vld [vmem:[%s10960_s18] sm:$0xff] }
 0x5f6   : > { %10135 = vmatpush3.msra.mxu1 %v6836_v18  ;;  %10136 = vmatprep.mubr.msk.f32.mxu1 %vm3559_vm1, %v4257_v41  ;;  %v4263_v63 = vmul.f32 %v10558_v35, %v13406_v5  ;;  %v4809_v19 = vpop.f32.mrf.mxu1 }
 0x5f7   : > { %10139 = vmatprep.subr.mxu1 %v10089_v25  ;;  %10137 = vmatmul.mubr.msk.f32.vlgmr.msra.gmra.mxu1 %vm3559_vm1, %v4259_v0  ;;  %v5069_v22 = vadd.f32 %v10616_v48, %v4809_v19  ;;  %v10620_v0 = vld [vmem:[%s10960_s18 + $0x60] sm:$0xff] }
 0x5f8   : > { %v10560_v57 = vpop.eup %10559  ;;  %10140 = vmatpush3.msra.mxu1 %v10089_v25  ;;  %v9867_v36 = vpop.f32.mrf.mxu1  ;;  %v10619_v25 = vld [vmem:[%s10960_s18 + $0x68] sm:$0xff] }
 0x5f9   : > { %10141 = vmatprep.subr.mxu1 %v6846_v15  ;;  %v4261_v38 = vmul.f32 %v10560_v57, %v12397_v39  ;;  %v5072_v18 = vadd.f32 %v10617_v26, %v9867_v36 }
 0x5fa   : > { %10142 = vmatpush3.msra.mxu1 %v6846_v15  ;;  %v4890_v11 = vpop.f32.mrf.mxu1 }
 0x5fb   : > { %10143 = vmatprep.mubr.msk.f32.mxu1 %vm3559_vm1, %v4261_v38  ;;  %v5071_v53 = vadd.f32 %v10618_v43, %v4890_v11  ;;  %v7787_v11 = vld [vmem:[%s13298_s3 + $0x18] sm:$0xff]  ;;  %10218 = vmatprep.subr.mxu1 %v12634_v32 }
 0x5fc   : > { %10144 = vmatmul.mubr.msk.f32.vlgmr.msra.gmra.mxu1 %vm3559_vm1, %v4263_v63  ;;  %v9874_v17 = vpop.f32.mrf.mxu1  ;;  %10146 = vmatprep.subr.mxu0 %v7787_v11 }
 0x5fd   : > { %v5074_v12 = vadd.f32 %v10619_v25, %v9874_v17  ;;  %10147 = vmatpush3.msra.mxu0 %v7787_v11  ;;  %10226 = vmatpush3.msra.mxu1 %v12634_v32 }
 0x5fe   : > { %v4971_v52 = vpop.f32.mrf.mxu1 }
 0x5ff   : > { %v5073_v15 = vadd.f32 %v10620_v0, %v4971_v52  ;;  %v7786_v52 = vld [vmem:[%s13298_s3 + $0x10] sm:$0xff] }
 0x600   : > { %v9881_v4 = vpop.f32.mrf.mxu1  ;;  %10148 = vmatprep.subr.mxu0 %v7786_v52 }
 0x601   : > { %v5076_v38 = vadd.f32 %v10621_v13, %v9881_v4  ;;  %10149 = vmatpush3.msra.mxu0 %v7786_v52  ;;  %v7785_v4 = vld [vmem:[%s13298_s3 + $0x8] sm:$0xff] }
 0x602   : > { %v12555_v39 = vpop.f32.mrf.mxu1  ;;  %10150 = vmatprep.subr.mxu0 %v7785_v4 }
 0x603   : > { %10151 = vmatpush3.msra.mxu0 %v7785_v4 }
 0x61b   : > { %v12557_v42 = vpop.f32.mrf.mxu1 }
 0x61d   : > { %v12559_v59 = vpop.f32.mrf.mxu1 }
 0x624   : > { %v9927_v54 = vpop.f32.mrf.mxu1 }
 0x625   : > { %v12564_v24 = vadd.f32 %v9927_v54, %v5064_v31  ;;  %v7784_v31 = vld [vmem:[%s13298_s3] sm:$0xff] }
 0x626   : > { %v5380_v45 = vpop.f32.mrf.mxu1  ;;  %10152 = vmatprep.subr.mxu0 %v7784_v31 }
 0x627   : > { %v12567_v29 = vadd.f32 %v5380_v45, %v5063_v6  ;;  %10153 = vmatpush3.msra.mxu0 %v7784_v31 }
 0x628   : > { %v9934_v37 = vpop.f32.mrf.mxu1  ;;  %10178 = vmatprep.subr.mxu0 %v12634_v32 }
 0x629   : > { %v12570_v33 = vadd.f32 %v9934_v37, %v5066_v3 }
 0x62a   : > { %v5461_v44 = vpop.f32.mrf.mxu1 }
 0x62b   : > { %v12573_v23 = vadd.f32 %v5461_v44, %v5065_v1 }
 0x62c   : > { %v9941_v9 = vpop.f32.mrf.mxu1 }
 0x62d   : > { %v12576_v60 = vadd.f32 %v9941_v9, %v5068_v49  ;;  %v12643_v9 = vld [vmem:[%s13299_s4 + $0x30] sm:$0xff] }
 0x62e   : > { %v5542_v7 = vpop.f32.mrf.mxu1  ;;  %10219 = vmatprep.subr.mxu1 %v12643_v9 }
 0x62f   : > { %v12579_v14 = vadd.f32 %v5542_v7, %v5067_v46  ;;  %v5062_v46 = vadd.f32 %v10622_v21, %v12525_v56  ;;  %v12652_v7 = vld [vmem:[%s13299_s4 + $0x28] sm:$0xff]  ;;  %10227 = vmatpush3.msra.mxu1 %v12643_v9  ;;  %v12664_v56 = vld [vmem:[%s13299_s4 + $0x20] sm:$0xff] }
 0x630   : > { %v9948_v2 = vpop.f32.mrf.mxu1  ;;  %10220 = vmatprep.subr.mxu1 %v12652_v7 }
 0x631   : > { %v12582_v47 = vadd.f32 %v9948_v2, %v5070_v8  ;;  %v5061_v8 = vadd.f32 %v10623_v16, %v12531_v34  ;;  %v5876_v2 = vadd.f32 %v12557_v42, %v5062_v46  ;;  %10228 = vmatpush3.msra.mxu1 %v12652_v7 }
 0x632   : > { %v5623_v58 = vpop.f32.mrf.mxu1  ;;  %10221 = vmatprep.subr.mxu1 %v12664_v56 }
 0x633   : > { %v12585_v62 = vadd.f32 %v5623_v58, %v5069_v22  ;;  %v5875_v22 = vadd.f32 %v12559_v59, %v5061_v8  ;;  %10229 = vmatpush3.msra.mxu1 %v12664_v56 }
 0x634   : > { %v9955_v51 = vpop.f32.mrf.mxu1 }
 0x635   : > { %v12588_v61 = vadd.f32 %v9955_v51, %v5072_v18 }
 0x636   : > { %v5704_v28 = vpop.f32.mrf.mxu1 }
 0x637   : > { %v12591_v27 = vadd.f32 %v5704_v28, %v5071_v53 }
 0x638   : > { %v9962_v41 = vpop.f32.mrf.mxu1 }
 0x639   : > { %v12594_v35 = vadd.f32 %v9962_v41, %v5074_v12 }
 0x63a   : > { %v5785_v57 = vpop.f32.mrf.mxu1 }
 0x63b   : > { %v12597_v5 = vadd.f32 %v5785_v57, %v5073_v15 }
 0x63c   : > { %v9969_v63 = vpop.f32.mrf.mxu1 }
 0x63d   : > { %v12599_v10 = vadd.f32 %v9969_v63, %v5076_v38 }
 0x63e   : > { %v12601_v40 = vpop.f32.mrf.mxu1 }
 0x640   : > { %v10008_v19 = vpop.f32.mrf.mxu1 }
 0x641   : > { %v6690_v58 = vadd.f32 %v10008_v19, %v5876_v2 }
 0x642   : > { %v6113_v36 = vpop.f32.mrf.mxu1 }
 0x643   : > { %v6689_v34 = vadd.f32 %v6113_v36, %v5875_v22 }
 0x644   : > { %v10015_v17 = vpop.f32.mrf.mxu1 }
 0x645   : > { %v6692_v25 = vadd.f32 %v10015_v17, %v12564_v24 }
 0x646   : > { %v6194_v50 = vpop.f32.mrf.mxu1 }
 0x647   : > { %v6691_v59 = vadd.f32 %v6194_v50, %v12567_v29  ;;  %v7744_v29 = vlaneseq }
 0x648   : > { %v10022_v54 = vpop.f32.mrf.mxu1 }
 0x649   : > { %v6694_v52 = vadd.f32 %v10022_v54, %v12570_v33 }
 0x64a   : > { %v6275_v20 = vpop.f32.mrf.mxu1 }
 0x64b   : > { %v6693_v31 = vadd.f32 %v6275_v20, %v12573_v23 }
 0x64c   : > { %v12615_v6 = vpop.f32.mrf.mxu1 }
 0x64e   : > { %v12617_v45 = vpop.f32.mrf.mxu1 }
 0x650   : > { %v12619_v30 = vpop.f32.mrf.mxu1 }
 0x652   : > { %v12621_v3 = vpop.f32.mrf.mxu1 }
 0x654   : > { %v12623_v37 = vpop.f32.mrf.mxu1 }
 0x656   : > { %v12625_v55 = vpop.f32.mrf.mxu1 }
 0x658   : > { %v12627_v1 = vpop.f32.mrf.mxu1 }
 0x65a   : > { %v12629_v44 = vpop.f32.mrf.mxu1 }
 0x65c   : > { %v12638_v49 = vpop.f32.mrf.mxu1 }
 0x65e   : > { %v12659_v48 = vpop.f32.mrf.mxu1 }
 0x693   : > { %v10096_v26 = vpop.f32.mrf.mxu1 }
 0x694   : > { %v7504_v42 = vadd.f32 %v10096_v26, %v6690_v58  ;;  %v10624_v58 = vld [vmem:[%s10960_s18 + $0x70] sm:$0xff] }
 0x695   : > { %v6927_v18 = vpop.f32.mrf.mxu1  ;;  %v5075_v26 = vadd.f32 %v10624_v58, %v12555_v39  ;;  %v6695_v39 = vadd.f32 %v12617_v45, %v12579_v14 }
 0x696   : > { %v7503_v51 = vadd.f32 %v6927_v18, %v6689_v34  ;;  %v7520_v43 = vsel %vm323_vm0, %v7504_v42, 0.0  ;;  %v12684_v34 = vshrl.u32 %v7744_v29, 7 }
 0x698   : > { %v7519_v53 = vsel %vm323_vm0, %v7503_v51, 0.0 }
 0x699   : > { %v7521_v28 = vadd.f32 %v7520_v43, %v7519_v53  ;;  %v5889_v53 = vadd.f32 %v12601_v40, %v5075_v26  ;;  %v7746_v40 = vsub.s32 0, %v12684_v34 }
 0x69b   : > { %v7522_v12 = vrot.slane %v7521_v28, 4  ;;  %v10103_v41 = vpop.f32.mrf.mxu1 }
 0x69c   : > { %v7506_v0 = vadd.f32 %v10103_v41, %v6692_v25 }
 0x69d   : > { %v7523_v15 = vadd.f32 %v7522_v12, %v7521_v28  ;;  %v7008_v57 = vpop.f32.mrf.mxu1  ;;  %v6696_v28 = vadd.f32 %v12615_v6, %v12576_v60 }
 0x69e   : > { %v7505_v13 = vadd.f32 %v7008_v57, %v6691_v59  ;;  %v7529_v63 = vsel %vm323_vm0, %v7506_v0, 0.0  ;;  %v6698_v59 = vadd.f32 %v12619_v30, %v12582_v47 }
 0x69f   : > { %v7524_v38 = vrot.slane %v7523_v15, 2 }
 0x6a0   : > { %v7528_v19 = vsel %vm323_vm0, %v7505_v13, 0.0 }
 0x6a1   : > { %v7525_v36 = vadd.f32 %v7524_v38, %v7523_v15  ;;  %v7530_v11 = vadd.f32 %v7529_v63, %v7528_v19  ;;  %v7766_v15 = vsub.s32 1, %v12684_v34  ;;  %v6697_v63 = vadd.f32 %v12621_v3, %v12585_v62 }
 0x6a2   : > { %v6700_v19 = vadd.f32 %v12623_v37, %v12588_v61 }
 0x6a3   : > { %v7526_v4 = vrot.slane %v7525_v36, 1  ;;  %v7531_v24 = vrot.slane %v7530_v11, 4  ;;  %v10110_v17 = vpop.f32.mrf.mxu1 }
 0x6a4   : > { %v12678_v50 = vadd.f32 %v10110_v17, %v6694_v52 }
 0x6a5   : > { %v7527_v21 = vadd.f32 %v7526_v4, %v7525_v36  ;;  %v7532_v46 = vadd.f32 %v7531_v24, %v7530_v11  ;;  %v7089_v16 = vpop.f32.mrf.mxu1  ;;  %v6699_v36 = vadd.f32 %v12625_v55, %v12591_v27  ;;  %v6702_v11 = vadd.f32 %v12627_v1, %v12594_v35 }
 0x6a6   : > { %v12680_v8 = vadd.f32 %v7089_v16, %v6693_v31  ;;  %v7538_v33 = vsel %vm323_vm0, %v12678_v50, 0.0  ;;  %v6701_v35 = vadd.f32 %v12629_v44, %v12597_v5  ;;  %v6704_v1 = vadd.f32 %v12638_v49, %v12599_v10 }
 0x6a7   : > { %v7592_v2 = vmul.f32 0.0625, %v7527_v21  ;;  %v7533_v22 = vrot.slane %v7532_v46, 2 }
 0x6a8   : > { %v7537_v23 = vsel %vm323_vm0, %v12680_v8, 0.0 }
 0x6a9   : > { %v12690_v54 = vsub.f32 %v7503_v51, %v7592_v2  ;;  %v12692_v20 = vsub.f32 %v7504_v42, %v7592_v2  ;;  %v7534_v18 = vadd.f32 %v7533_v22, %v7532_v46  ;;  %v7539_v43 = vadd.f32 %v7538_v33, %v7537_v23 }
 0x6ab   : > { %v7616_v25 = vmul.f32 %v12690_v54, %v12690_v54  ;;  %v7617_v12 = vmul.f32 %v12692_v20, %v12692_v20  ;;  %v7535_v51 = vrot.slane %v7534_v18, 1  ;;  %v7540_v41 = vrot.slane %v7539_v43, 4  ;;  %v10117_v42 = vpop.f32.mrf.mxu1 }
 0x6ac   : > { %v12707_v60 = vadd.f32 %v10117_v42, %v6696_v28 }
 0x6ad   : > { %v7632_v14 = vsel %vm323_vm0, %v7616_v25, 0.0  ;;  %v7633_v6 = vsel %vm323_vm0, %v7617_v12, 0.0  ;;  %v7536_v45 = vadd.f32 %v7535_v51, %v7534_v18  ;;  %v7541_v57 = vadd.f32 %v7540_v41, %v7539_v43  ;;  %v7170_v38 = vpop.f32.mrf.mxu1 }
 0x6ae   : > { %v7634_v47 = vadd.f32 %v7633_v6, %v7632_v14  ;;  %v12715_v30 = vadd.f32 %v7170_v38, %v6695_v39  ;;  %v7547_v31 = vsel %vm323_vm0, %v12707_v60, 0.0  ;;  %v12750_v43 = vadd.f32 %v12659_v48, %v5889_v53 }
 0x6af   : > { %v7593_v52 = vmul.f32 0.0625, %v7536_v45  ;;  %v7542_v4 = vrot.slane %v7541_v57, 2  ;;  %v10124_v24 = vpop.f32.mrf.mxu1 }
 0x6b0   : > { %v7635_v17 = vrot.slane %v7634_v47, 4  ;;  %v7546_v62 = vsel %vm323_vm0, %v12715_v30, 0.0  ;;  %v12725_v61 = vadd.f32 %v10124_v24, %v6698_v59 }
 0x6b1   : > { %v12727_v3 = vsub.f32 %v7505_v13, %v7593_v52  ;;  %v12729_v37 = vsub.f32 %v7506_v0, %v7593_v52  ;;  %v7543_v27 = vadd.f32 %v7542_v4, %v7541_v57  ;;  %v7548_v55 = vadd.f32 %v7547_v31, %v7546_v62  ;;  %v7251_v29 = vpop.f32.mrf.mxu1 }
 0x6b2   : > { %v7636_v21 = vadd.f32 %v7635_v17, %v7634_v47  ;;  %v12735_v46 = vadd.f32 %v7251_v29, %v6697_v63  ;;  %v7556_v26 = vsel %vm323_vm0, %v12725_v61, 0.0 }
 0x6b3   : > { %v7618_v16 = vmul.f32 %v12727_v3, %v12727_v3  ;;  %v7619_v13 = vmul.f32 %v12729_v37, %v12729_v37  ;;  %v7544_v0 = vrot.slane %v7543_v27, 1  ;;  %v7549_v2 = vrot.slane %v7548_v55, 4  ;;  %v10131_v22 = vpop.f32.mrf.mxu1 }
 0x6b4   : > { %v7637_v58 = vrot.slane %v7636_v21, 2  ;;  %v7555_v5 = vsel %vm323_vm0, %v12735_v46, 0.0  ;;  %v12745_v10 = vadd.f32 %v10131_v22, %v6700_v19 }
 0x6b5   : > { %v7641_v44 = vsel %vm323_vm0, %v7618_v16, 0.0  ;;  %v7642_v49 = vsel %vm323_vm0, %v7619_v13, 0.0  ;;  %v7545_v33 = vadd.f32 %v7544_v0, %v7543_v27  ;;  %v7550_v23 = vadd.f32 %v7549_v2, %v7548_v55  ;;  %v7332_v18 = vpop.f32.mrf.mxu1 }
 0x6b6   : > { %v7638_v28 = vadd.f32 %v7637_v58, %v7636_v21  ;;  %v7643_v39 = vadd.f32 %v7642_v49, %v7641_v44  ;;  %v7557_v25 = vadd.f32 %v7556_v26, %v7555_v5  ;;  %v7565_v41 = vsel %vm323_vm0, %v12745_v10, 0.0 }
 0x6b7   : > { %v7594_v12 = vmul.f32 0.0625, %v7545_v33  ;;  %v7551_v51 = vrot.slane %v7550_v23, 2  ;;  %v12754_v42 = vadd.f32 %v7332_v18, %v6699_v36  ;;  %v10138_v59 = vpop.f32.mrf.mxu1 }
 0x6b8   : > { %v7639_v14 = vrot.slane %v7638_v28, 1  ;;  %v7644_v6 = vrot.slane %v7643_v39, 4  ;;  %v7558_v45 = vrot.slane %v7557_v25, 4  ;;  %v12756_v57 = vadd.f32 %v10138_v59, %v6702_v11 }
 0x6b9   : > { %v12759_v38 = vsub.f32 %v12680_v8, %v7594_v12  ;;  %v12762_v48 = vsub.f32 %v12678_v50, %v7594_v12  ;;  %v7552_v53 = vadd.f32 %v7551_v51, %v7550_v23  ;;  %v7564_v63 = vsel %vm323_vm0, %v12754_v42, 0.0  ;;  %v7413_v19 = vpop.f32.mrf.mxu1 }
 0x6ba   : > { %v7640_v47 = vadd.f32 %v7639_v14, %v7638_v28  ;;  %v7645_v36 = vadd.f32 %v7644_v6, %v7643_v39  ;;  %v7559_v52 = vadd.f32 %v7558_v45, %v7557_v25  ;;  %v7566_v4 = vadd.f32 %v7565_v41, %v7564_v63 }
 0x6bb   : > { %v7620_v24 = vmul.f32 %v12759_v38, %v12759_v38  ;;  %v7621_v11 = vmul.f32 %v12762_v48, %v12762_v48  ;;  %v7553_v8 = vrot.slane %v7552_v53, 1  ;;  %v7574_v50 = vsel %vm323_vm0, %v12756_v57, 0.0 }
 0x6bc   : > { %v7704_v17 = vmul.f32 0.0625, %v7640_v47  ;;  %v7646_v31 = vrot.slane %v7645_v36, 2  ;;  %v7560_v62 = vrot.slane %v7559_v52, 2  ;;  %v7567_v27 = vrot.slane %v7566_v4, 4  ;;  %v10145_v55 = vpop.f32.mrf.mxu1 }
 0x6bd   : > { %v7650_v29 = vsel %vm323_vm0, %v7620_v24, 0.0  ;;  %v7651_v21 = vsel %vm323_vm0, %v7621_v11, 0.0  ;;  %v7554_v16 = vadd.f32 %v7553_v8, %v7552_v53  ;;  %v12774_v13 = vadd.f32 %v7413_v19, %v6701_v35 }
 0x6be   : > { %v7712_v0 = vadd.f32 1e-05, %v7704_v17  ;;  %v7647_v2 = vadd.f32 %v7646_v31, %v7645_v36  ;;  %v7652_v22 = vadd.f32 %v7651_v21, %v7650_v29  ;;  %v7561_v58 = vadd.f32 %v7560_v62, %v7559_v52  ;;  %v7494_v12 = vpop.f32.mrf.mxu1  ;;  %v12803_v17 = vld [vmem:[%s13300_s5] sm:$0xff] }
 0x6bf   : > { %v7595_v26 = vmul.f32 0.0625, %v7554_v16  ;;  %v7568_v5 = vadd.f32 %v7567_v27, %v7566_v4  ;;  %v7573_v44 = vsel %vm323_vm0, %v12774_v13, 0.0  ;;  %v12778_v49 = vadd.f32 %v10145_v55, %v6704_v1 }
 0x6c0   : > { %10561 = vrsqrt.f32 %v7712_v0  ;;  %v7648_v33 = vrot.slane %v7647_v2, 1  ;;  %v7653_v23 = vrot.slane %v7652_v22, 4  ;;  %v7562_v18 = vrot.slane %v7561_v58, 1 }
 0x6c1   : > { %v12781_v28 = vsub.f32 %v12715_v30, %v7595_v26  ;;  %v12784_v35 = vsub.f32 %v12707_v60, %v7595_v26  ;;  %v7569_v39 = vrot.slane %v7568_v5, 2  ;;  %v7575_v25 = vadd.f32 %v7574_v50, %v7573_v44 }
 0x6c2   : > { %v7649_v51 = vadd.f32 %v7648_v33, %v7647_v2  ;;  %v7654_v41 = vadd.f32 %v7653_v23, %v7652_v22  ;;  %v7563_v59 = vadd.f32 %v7562_v18, %v7561_v58  ;;  %v7583_v1 = vsel %vm323_vm0, %v12778_v49, 0.0 }
 0x6c3   : > { %v7622_v14 = vmul.f32 %v12781_v28, %v12781_v28  ;;  %v7623_v6 = vmul.f32 %v12784_v35, %v12784_v35  ;;  %v7570_v30 = vadd.f32 %v7569_v39, %v7568_v5  ;;  %v7576_v45 = vrot.slane %v7575_v25, 4 }
 0x6c4   : > { %v7705_v53 = vmul.f32 0.0625, %v7649_v51  ;;  %v7655_v60 = vrot.slane %v7654_v41, 2  ;;  %v7596_v63 = vmul.f32 0.0625, %v7563_v59  ;;  %v12793_v19 = vadd.f32 %v7494_v12, %v12750_v43 }
 0x6c5   : > { %v7659_v47 = vsel %vm323_vm0, %v7622_v14, 0.0  ;;  %v7660_v36 = vsel %vm323_vm0, %v7623_v6, 0.0  ;;  %v7571_v52 = vrot.slane %v7570_v30, 1  ;;  %v7577_v4 = vadd.f32 %v7576_v45, %v7575_v25 }
 0x6c6   : > { %v7713_v24 = vadd.f32 1e-05, %v7705_v53  ;;  %v7656_v11 = vadd.f32 %v7655_v60, %v7654_v41  ;;  %v7661_v8 = vadd.f32 %v7660_v36, %v7659_v47  ;;  %v12798_v50 = vsub.f32 %v12735_v46, %v7596_v63 }
 0x6c7   : > { %v12806_v43 = vsub.f32 %v12725_v61, %v7596_v63  ;;  %v7572_v31 = vadd.f32 %v7571_v52, %v7570_v30  ;;  %v7578_v62 = vrot.slane %v7577_v4, 2  ;;  %v7582_v27 = vsel %vm323_vm0, %v12793_v19, 0.0 }
 0x6c8   : > { %10563 = vrsqrt.f32 %v7713_v24  ;;  %v7657_v55 = vrot.slane %v7656_v11, 1  ;;  %v7662_v29 = vrot.slane %v7661_v8, 4  ;;  %v7624_v46 = vmul.f32 %v12798_v50, %v12798_v50 }
 0x6c9   : > { %v7625_v21 = vmul.f32 %v12806_v43, %v12806_v43  ;;  %v7597_v16 = vmul.f32 0.0625, %v7572_v31  ;;  %v7579_v0 = vadd.f32 %v7578_v62, %v7577_v4  ;;  %v7584_v2 = vadd.f32 %v7583_v1, %v7582_v27 }
 0x6ca   : > { %v12817_v61 = vrot.slane %v12803_v17, %v7746_v40  ;;  %v7658_v22 = vadd.f32 %v7657_v55, %v7656_v11  ;;  %v7663_v58 = vadd.f32 %v7662_v29, %v7661_v8  ;;  %v7668_v26 = vsel %vm323_vm0, %v7624_v46, 0.0 }
 0x6cb   : > { %v7669_v5 = vsel %vm323_vm0, %v7625_v21, 0.0  ;;  %v12822_v44 = vsub.f32 %v12754_v42, %v7597_v16  ;;  %v12825_v33 = vsub.f32 %v12745_v10, %v7597_v16  ;;  %v7580_v23 = vrot.slane %v7579_v0, 1 }
 0x6cc   : > { %v12830_v18 = vrot.slane %v12803_v17, %v7766_v15  ;;  %v7706_v40 = vmul.f32 0.0625, %v7658_v22  ;;  %v7664_v39 = vrot.slane %v7663_v58, 2  ;;  %v7670_v25 = vadd.f32 %v7669_v5, %v7668_v26 }
 0x6cd   : > { %v10562_v12 = vpop.eup %10561  ;;  %v7626_v51 = vmul.f32 %v12822_v44, %v12822_v44  ;;  %v7627_v42 = vmul.f32 %v12825_v33, %v12825_v33  ;;  %v7581_v41 = vadd.f32 %v7580_v23, %v7579_v0  ;;  %v7585_v59 = vrot.slane %v7584_v2, 4 }
 0x6ce   : > { %v7728_v10 = vmul.f32 %v10562_v12, %v12690_v54  ;;  %v7729_v1 = vmul.f32 %v10562_v12, %v12692_v20  ;;  %v7714_v14 = vadd.f32 1e-05, %v7706_v40  ;;  %v7665_v6 = vadd.f32 %v7664_v39, %v7663_v58 }
 0x6cf   : > { %v7671_v15 = vrot.slane %v7670_v25, 4  ;;  %v7677_v30 = vsel %vm323_vm0, %v7626_v51, 0.0  ;;  %v7678_v45 = vsel %vm323_vm0, %v7627_v42, 0.0  ;;  %v7598_v53 = vmul.f32 0.0625, %v7581_v41 }
 0x6d0   : > { %v7748_v60 = vmul.f32 %v12817_v61, %v7728_v10  ;;  %v7749_v63 = vmul.f32 %v12817_v61, %v7729_v1  ;;  %10565 = vrsqrt.f32 %v7714_v14  ;;  %v7666_v47 = vrot.slane %v7665_v6, 1 }
 0x6d1   : > { %v7672_v36 = vadd.f32 %v7671_v15, %v7670_v25  ;;  %v7679_v52 = vadd.f32 %v7678_v45, %v7677_v30  ;;  %v12843_v54 = vsub.f32 %v12774_v13, %v7598_v53  ;;  %v12846_v20 = vsub.f32 %v12756_v57, %v7598_v53 }
 0x6d2   : > { %v12849_v4 = vadd.f32 %v12830_v18, %v7749_v63  ;;  %v7667_v24 = vadd.f32 %v7666_v47, %v7665_v6  ;;  %v7586_v11 = vadd.f32 %v7585_v59, %v7584_v2  ;;  %v12852_v8 = vadd.f32 %v12830_v18, %v7748_v60 }
 0x6d3   : > { %v7673_v31 = vrot.slane %v7672_v36, 2  ;;  %v7680_v62 = vrot.slane %v7679_v52, 4  ;;  %v7628_v27 = vmul.f32 %v12843_v54, %v12843_v54  ;;  %v7629_v13 = vmul.f32 %v12846_v20, %v12846_v20 }
 0x6d4   : > { %v7707_v55 = vmul.f32 0.0625, %v7667_v24  ;;  %v7587_v29 = vrot.slane %v7586_v11, 2  ;;  %10154 = vmatprep.mubr.msk.f32.mxu0 %vm323_vm0, %v12852_v8 }
 0x6d5   : > { %v10564_v57 = vpop.eup %10563  ;;  %v7674_v46 = vadd.f32 %v7673_v31, %v7672_v36  ;;  %v7681_v21 = vadd.f32 %v7680_v62, %v7679_v52  ;;  %v7686_v16 = vsel %vm323_vm0, %v7628_v27, 0.0  ;;  %v7687_v0 = vsel %vm323_vm0, %v7629_v13, 0.0  ;;  %10155 = vmatmul.mubr.msk.f32.vlgmr.msra.gmra.mxu0 %vm323_vm0, %v12849_v4 }
 0x6d6   : > { %v7730_v2 = vmul.f32 %v10564_v57, %v12727_v3  ;;  %v7731_v22 = vmul.f32 %v10564_v57, %v12729_v37  ;;  %v7715_v58 = vadd.f32 1e-05, %v7707_v55  ;;  %v7688_v26 = vadd.f32 %v7687_v0, %v7686_v16  ;;  %10179 = vmatpush3.msra.mxu0 %v12634_v32 }
 0x6d7   : > { %v7675_v5 = vrot.slane %v7674_v46, 1  ;;  %v7682_v23 = vrot.slane %v7681_v21, 2  ;;  %v7588_v40 = vadd.f32 %v7587_v29, %v7586_v11  ;;  %10180 = vmatprep.subr.mxu0 %v12643_v9 }
 0x6d8   : > { %v7750_v39 = vmul.f32 %v12817_v61, %v7730_v2  ;;  %v7751_v25 = vmul.f32 %v12817_v61, %v7731_v22  ;;  %10567 = vrsqrt.f32 %v7715_v58  ;;  %v7689_v12 = vrot.slane %v7688_v26, 4  ;;  %10181 = vmatpush3.msra.mxu0 %v12643_v9 }
 0x6d9   : > { %v7676_v3 = vadd.f32 %v7675_v5, %v7674_v46  ;;  %v7683_v51 = vadd.f32 %v7682_v23, %v7681_v21  ;;  %v7589_v37 = vrot.slane %v7588_v40, 1  ;;  %10182 = vmatprep.subr.mxu0 %v12652_v7 }
 0x6da   : > { %v7690_v42 = vadd.f32 %v7689_v12, %v7688_v26  ;;  %v12873_v32 = vadd.f32 %v12830_v18, %v7750_v39  ;;  %v12876_v41 = vadd.f32 %v12830_v18, %v7751_v25  ;;  %10183 = vmatpush3.msra.mxu0 %v12652_v7 }
 0x6db   : > { %v7708_v59 = vmul.f32 0.0625, %v7676_v3  ;;  %v7684_v10 = vrot.slane %v7683_v51, 1  ;;  %v7590_v1 = vadd.f32 %v7589_v37, %v7588_v40  ;;  %10184 = vmatprep.subr.mxu0 %v12664_v56 }
 0x6dc   : > { %v7691_v9 = vrot.slane %v7690_v42, 2  ;;  %10157 = vmatprep.mubr.msk.f32.mxu0 %vm323_vm0, %v12873_v32  ;;  %10185 = vmatpush3.msra.mxu0 %v12664_v56 }
 0x6dd   : > { %v10566_v14 = vpop.eup %10565  ;;  %v7716_v6 = vadd.f32 1e-05, %v7708_v59  ;;  %v7685_v15 = vadd.f32 %v7684_v10, %v7683_v51  ;;  %v7599_v30 = vmul.f32 0.0625, %v7590_v1  ;;  %10158 = vmatmul.mubr.msk.f32.gmra.mxu0 %vm323_vm0, %v12876_v41 }
 0x6de   : > { %v7732_v7 = vmul.f32 %v10566_v14, %v12759_v38  ;;  %v7733_v45 = vmul.f32 %v10566_v14, %v12762_v48  ;;  %v7692_v53 = vadd.f32 %v7691_v9, %v7690_v42 }
 0x6df   : > { %10569 = vrsqrt.f32 %v7716_v6  ;;  %v7709_v60 = vmul.f32 0.0625, %v7685_v15  ;;  %v12888_v63 = vsub.f32 %v12793_v19, %v7599_v30  ;;  %v12891_v47 = vsub.f32 %v12778_v49, %v7599_v30 }
 0x6e0   : > { %v7752_v56 = vmul.f32 %v12817_v61, %v7732_v7  ;;  %v7753_v36 = vmul.f32 %v12817_v61, %v7733_v45  ;;  %v7693_v52 = vrot.slane %v7692_v53, 1 }
 0x6e1   : > { %v7717_v24 = vadd.f32 1e-05, %v7709_v60  ;;  %v7630_v38 = vmul.f32 %v12888_v63, %v12888_v63  ;;  %v7631_v48 = vmul.f32 %v12891_v47, %v12891_v47 }
 0x6e2   : > { %v7694_v11 = vadd.f32 %v7693_v52, %v7692_v53  ;;  %v12900_v31 = vadd.f32 %v12830_v18, %v7752_v56  ;;  %v12903_v19 = vadd.f32 %v12830_v18, %v7753_v36 }
 0x6e3   : > { %10571 = vrsqrt.f32 %v7717_v24  ;;  %v7695_v49 = vsel %vm323_vm0, %v7630_v38, 0.0  ;;  %v7696_v62 = vsel %vm323_vm0, %v7631_v48, 0.0  ;;  %v7790_v24 = vsub.s32 2, %v12684_v34 }
 0x6e4   : > { %v7710_v27 = vmul.f32 0.0625, %v7694_v11  ;;  %v7697_v13 = vadd.f32 %v7696_v62, %v7695_v49  ;;  %10160 = vmatprep.mubr.msk.f32.mxu0 %vm323_vm0, %v12900_v31 }
 0x6e5   : > { %v10568_v55 = vpop.eup %10567  ;;  %10161 = vmatmul.mubr.msk.f32.gmra.mxu0 %vm323_vm0, %v12903_v19  ;;  %v7791_v38 = vrot.slane %v12803_v17, %v7790_v24 }
 0x6e6   : > { %v7734_v29 = vmul.f32 %v10568_v55, %v12781_v28  ;;  %v7735_v57 = vmul.f32 %v10568_v55, %v12784_v35  ;;  %v7718_v46 = vadd.f32 1e-05, %v7710_v27  ;;  %v7698_v21 = vrot.slane %v7697_v13, 4 }
 0x6e8   : > { %v7754_v16 = vmul.f32 %v12817_v61, %v7734_v29  ;;  %v7755_v0 = vmul.f32 %v12817_v61, %v7735_v57  ;;  %10573 = vrsqrt.f32 %v7718_v46  ;;  %v7699_v2 = vadd.f32 %v7698_v21, %v7697_v13 }
 0x6ea   : > { %v7700_v22 = vrot.slane %v7699_v2, 2  ;;  %v12916_v58 = vadd.f32 %v12830_v18, %v7754_v16  ;;  %v12919_v26 = vadd.f32 %v12830_v18, %v7755_v0 }
 0x6ec   : > { %v10570_v5 = vpop.eup %10569  ;;  %v7701_v23 = vadd.f32 %v7700_v22, %v7699_v2  ;;  %10163 = vmatprep.mubr.msk.f32.mxu0 %vm323_vm0, %v12916_v58 }
 0x6ed   : > { %v7736_v28 = vmul.f32 %v10570_v5, %v12798_v50  ;;  %v7737_v35 = vmul.f32 %v10570_v5, %v12806_v43  ;;  %10164 = vmatmul.mubr.msk.f32.gmra.mxu0 %vm323_vm0, %v12919_v26 }
 0x6ee   : > { %v7702_v40 = vrot.slane %v7701_v23, 1 }
 0x6ef   : > { %v7756_v39 = vmul.f32 %v12817_v61, %v7736_v28  ;;  %v7757_v25 = vmul.f32 %v12817_v61, %v7737_v35 }
 0x6f0   : > { %v10572_v12 = vpop.eup %10571  ;;  %v7703_v3 = vadd.f32 %v7702_v40, %v7701_v23 }
 0x6f1   : > { %v7738_v51 = vmul.f32 %v10572_v12, %v12822_v44  ;;  %v7739_v37 = vmul.f32 %v10572_v12, %v12825_v33  ;;  %v12932_v42 = vadd.f32 %v12830_v18, %v7756_v39  ;;  %v12935_v50 = vadd.f32 %v12830_v18, %v7757_v25 }
 0x6f2   : > { %v7711_v43 = vmul.f32 0.0625, %v7703_v3 }
 0x6f3   : > { %v7758_v59 = vmul.f32 %v12817_v61, %v7738_v51  ;;  %v7759_v10 = vmul.f32 %v12817_v61, %v7739_v37  ;;  %10166 = vmatprep.mubr.msk.f32.mxu0 %vm323_vm0, %v12932_v42 }
 0x6f4   : > { %v7719_v1 = vadd.f32 1e-05, %v7711_v43  ;;  %10167 = vmatmul.mubr.msk.f32.gmra.mxu0 %vm323_vm0, %v12935_v50 }
 0x6f5   : > { %v10574_v44 = vpop.eup %10573  ;;  %v12944_v33 = vadd.f32 %v12830_v18, %v7758_v59  ;;  %v12947_v9 = vadd.f32 %v12830_v18, %v7759_v10 }
 0x6f6   : > { %v7740_v14 = vmul.f32 %v10574_v44, %v12843_v54  ;;  %v7741_v6 = vmul.f32 %v10574_v44, %v12846_v20  ;;  %10575 = vrsqrt.f32 %v7719_v1 }
 0x6f7   : > { %10169 = vmatprep.mubr.msk.f32.mxu0 %vm323_vm0, %v12944_v33 }
 0x6f8   : > { %v7760_v15 = vmul.f32 %v12817_v61, %v7740_v14  ;;  %v7761_v30 = vmul.f32 %v12817_v61, %v7741_v6  ;;  %10170 = vmatmul.mubr.msk.f32.gmra.mxu0 %vm323_vm0, %v12947_v9 }
 0x6fa   : > { %v12958_v7 = vadd.f32 %v12830_v18, %v7760_v15  ;;  %v12961_v45 = vadd.f32 %v12830_v18, %v7761_v30 }
 0x6fc   : > { %10172 = vmatprep.mubr.msk.f32.mxu0 %vm323_vm0, %v12958_v7 }
 0x6fd   : > { %10173 = vmatmul.mubr.msk.f32.gmra.mxu0 %vm323_vm0, %v12961_v45 }
 0x703   : > { %v10576_v54 = vpop.eup %10575 }
 0x704   : > { %v7742_v20 = vmul.f32 %v10576_v54, %v12888_v63  ;;  %v7743_v53 = vmul.f32 %v10576_v54, %v12891_v47  ;;  %v8004_v63 = vld [vmem:[%s13299_s4 + $0x18] sm:$0xff]  ;;  %v8001_v47 = vld [vmem:[%s13299_s4] sm:$0xff] }
 0x705   : > { %10186 = vmatprep.subr.mxu0 %v8004_v63  ;;  %10222 = vmatprep.subr.mxu1 %v8004_v63 }
 0x706   : > { %v7762_v60 = vmul.f32 %v12817_v61, %v7742_v20  ;;  %v7763_v56 = vmul.f32 %v12817_v61, %v7743_v53  ;;  %10187 = vmatpush3.msra.mxu0 %v8004_v63  ;;  %v8003_v61 = vld [vmem:[%s13299_s4 + $0x10] sm:$0xff]  ;;  %10230 = vmatpush3.msra.mxu1 %v8004_v63 }
 0x707   : > { %10188 = vmatprep.subr.mxu0 %v8003_v61  ;;  %10223 = vmatprep.subr.mxu1 %v8003_v61 }
 0x708   : > { %v12972_v36 = vadd.f32 %v12830_v18, %v7762_v60  ;;  %v12975_v52 = vadd.f32 %v12830_v18, %v7763_v56  ;;  %v8002_v18 = vld [vmem:[%s13299_s4 + $0x8] sm:$0xff]  ;;  %10189 = vmatpush3.msra.mxu0 %v8003_v61  ;;  %10231 = vmatpush3.msra.mxu1 %v8003_v61 }
 0x709   : > { %10190 = vmatprep.subr.mxu0 %v8002_v18  ;;  %10224 = vmatprep.subr.mxu1 %v8002_v18 }
 0x70a   : > { %10175 = vmatprep.mubr.msk.f32.mxu0 %vm323_vm0, %v12972_v36  ;;  %10191 = vmatpush3.msra.mxu0 %v8002_v18 }
 0x70b   : > { %10176 = vmatmul.mubr.msk.f32.gmra.mxu0 %vm323_vm0, %v12975_v52  ;;  %10232 = vmatpush3.msra.mxu1 %v8002_v18 }
 0x70c   : > { %10192 = vmatprep.subr.mxu0 %v8001_v47  ;;  %10225 = vmatprep.subr.mxu1 %v8001_v47 }
 0x70d   : > { %10193 = vmatpush3.msra.mxu0 %v8001_v47  ;;  %10233 = vmatpush3.msra.mxu1 %v8001_v47 }
 0x795   : > { %v10156_v48 = vpop.f32.mrf.mxu0 }
 0x796   : > { %v7912_v11 = vadd.f32 %v10156_v48, %v7791_v38 }
 0x797   : > { %v7906_v49 = vpop.f32.mrf.mxu0 }
 0x798   : > { %v7907_v62 = vadd.f32 %v7906_v49, %v7791_v38  ;;  %v7986_v13 = vmax.f32 %v7912_v11, 0.0 }
 0x79a   : > { %v7985_v27 = vmax.f32 %v7907_v62, 0.0 }
 0x79c   : > { %10194 = vmatprep.mubr.msk.f32.mxu0 %vm8009_vm2, %v7985_v27 }
 0x79d   : > { %v10159_v55 = vpop.f32.mrf.mxu0  ;;  %10195 = vmatmul.mubr.msk.f32.vlgmr.msra.gmra.mxu0 %vm8009_vm2, %v7986_v13 }
 0x79e   : > { %v7922_v29 = vadd.f32 %v10159_v55, %v7791_v38 }
 0x79f   : > { %v7916_v57 = vpop.f32.mrf.mxu0 }
 0x7a0   : > { %v7917_v46 = vadd.f32 %v7916_v57, %v7791_v38  ;;  %v7988_v16 = vmax.f32 %v7922_v29, 0.0 }
 0x7a2   : > { %v7987_v21 = vmax.f32 %v7917_v46, 0.0 }
 0x7a4   : > { %10197 = vmatprep.mubr.msk.f32.mxu1 %vm8009_vm2, %v7987_v21 }
 0x7a5   : > { %v10162_v0 = vpop.f32.mrf.mxu0  ;;  %10198 = vmatmul.mubr.msk.f32.vlgmr.msra.gmra.mxu1 %vm8009_vm2, %v7988_v16 }
 0x7a6   : > { %v7932_v2 = vadd.f32 %v10162_v0, %v7791_v38 }
 0x7a7   : > { %v7926_v22 = vpop.f32.mrf.mxu0 }
 0x7a8   : > { %v7927_v5 = vadd.f32 %v7926_v22, %v7791_v38  ;;  %v7990_v28 = vmax.f32 %v7932_v2, 0.0 }
 0x7aa   : > { %v7989_v23 = vmax.f32 %v7927_v5, 0.0 }
 0x7ac   : > { %10200 = vmatprep.mubr.msk.f32.mxu1 %vm8009_vm2, %v7989_v23 }
 0x7ad   : > { %v10165_v35 = vpop.f32.mrf.mxu0  ;;  %10201 = vmatmul.mubr.msk.f32.gmra.mxu1 %vm8009_vm2, %v7990_v28 }
 0x7ae   : > { %v7942_v40 = vadd.f32 %v10165_v35, %v7791_v38 }
 0x7af   : > { %v7936_v39 = vpop.f32.mrf.mxu0 }
 0x7b0   : > { %v7937_v25 = vadd.f32 %v7936_v39, %v7791_v38  ;;  %v7992_v3 = vmax.f32 %v7942_v40, 0.0 }
 0x7b2   : > { %v7991_v12 = vmax.f32 %v7937_v25, 0.0 }
 0x7b4   : > { %v10168_v51 = vpop.f32.mrf.mxu0  ;;  %10203 = vmatprep.mubr.msk.f32.mxu1 %vm8009_vm2, %v7991_v12 }
 0x7b5   : > { %10204 = vmatmul.mubr.msk.f32.gmra.mxu1 %vm8009_vm2, %v7992_v3  ;;  %v7952_v37 = vadd.f32 %v10168_v51, %v7791_v38 }
 0x7b6   : > { %v7946_v43 = vpop.f32.mrf.mxu0 }
 0x7b7   : > { %v7947_v59 = vadd.f32 %v7946_v43, %v7791_v38  ;;  %v7994_v44 = vmax.f32 %v7952_v37, 0.0 }
 0x7b8   : > { %v10171_v10 = vpop.f32.mrf.mxu0 }
 0x7b9   : > { %v7993_v1 = vmax.f32 %v7947_v59, 0.0  ;;  %v7962_v14 = vadd.f32 %v10171_v10, %v7791_v38 }
 0x7ba   : > { %v7956_v6 = vpop.f32.mrf.mxu0 }
 0x7bb   : > { %v7957_v15 = vadd.f32 %v7956_v6, %v7791_v38  ;;  %10206 = vmatprep.mubr.msk.f32.mxu1 %vm8009_vm2, %v7993_v1  ;;  %v7996_v20 = vmax.f32 %v7962_v14, 0.0 }
 0x7bc   : > { %10207 = vmatmul.mubr.msk.f32.gmra.mxu1 %vm8009_vm2, %v7994_v44 }
 0x7bd   : > { %v7995_v30 = vmax.f32 %v7957_v15, 0.0  ;;  %v10174_v54 = vpop.f32.mrf.mxu0 }
 0x7be   : > { %v7972_v53 = vadd.f32 %v10174_v54, %v7791_v38 }
 0x7bf   : > { %v7966_v60 = vpop.f32.mrf.mxu0  ;;  %10209 = vmatprep.mubr.msk.f32.mxu1 %vm8009_vm2, %v7995_v30 }
 0x7c0   : > { %v7967_v56 = vadd.f32 %v7966_v60, %v7791_v38  ;;  %10210 = vmatmul.mubr.msk.f32.gmra.mxu1 %vm8009_vm2, %v7996_v20  ;;  %v7998_v61 = vmax.f32 %v7972_v53, 0.0 }
 0x7c2   : > { %v7997_v63 = vmax.f32 %v7967_v56, 0.0 }
 0x7c4   : > { %10212 = vmatprep.mubr.msk.f32.mxu1 %vm8009_vm2, %v7997_v63 }
 0x7c5   : > { %10213 = vmatmul.mubr.msk.f32.gmra.mxu1 %vm8009_vm2, %v7998_v61 }
 0x7cb   : > { %v10177_v18 = vpop.f32.mrf.mxu0 }
 0x7cc   : > { %v7982_v47 = vadd.f32 %v10177_v18, %v7791_v38 }
 0x7cd   : > { %v7976_v24 = vpop.f32.mrf.mxu0 }
 0x7ce   : > { %v7977_v48 = vadd.f32 %v7976_v24, %v7791_v38  ;;  %v8000_v49 = vmax.f32 %v7982_v47, 0.0 }
 0x7d0   : > { %v7999_v11 = vmax.f32 %v7977_v48, 0.0 }
 0x7d2   : > { %10215 = vmatprep.mubr.msk.f32.mxu1 %vm8009_vm2, %v7999_v11 }
 0x7d3   : > { %10216 = vmatmul.mubr.msk.f32.gmra.mxu1 %vm8009_vm2, %v8000_v49 }
 0x85d   : > { %v10196_v62 = vpop.f32.mrf.mxu0 }
 0x85e   : > { %v8204_v27 = vadd.f32 %v10196_v62, %v12849_v4 }
 0x85f   : > { %v8124_v13 = vpop.f32.mrf.mxu0 }
 0x860   : > { %v8203_v55 = vadd.f32 %v8124_v13, %v12852_v8  ;;  %v8220_v29 = vsel %vm323_vm0, %v8204_v27, 0.0 }
 0x862   : > { %v8219_v57 = vsel %vm323_vm0, %v8203_v55, 0.0 }
 0x863   : > { %v8221_v46 = vadd.f32 %v8220_v29, %v8219_v57 }
 0x865   : > { %v8222_v21 = vrot.slane %v8221_v46, 4  ;;  %v10199_v16 = vpop.f32.mrf.mxu1 }
 0x866   : > { %v8206_v38 = vadd.f32 %v10199_v16, %v12876_v41 }
 0x867   : > { %v8223_v0 = vadd.f32 %v8222_v21, %v8221_v46  ;;  %v8134_v2 = vpop.f32.mrf.mxu1 }
 0x868   : > { %v8205_v22 = vadd.f32 %v8134_v2, %v12873_v32  ;;  %v8229_v23 = vsel %vm323_vm0, %v8206_v38, 0.0 }
 0x869   : > { %v8224_v5 = vrot.slane %v8223_v0, 2 }
 0x86a   : > { %v8228_v4 = vsel %vm323_vm0, %v8205_v22, 0.0 }
 0x86b   : > { %v8225_v28 = vadd.f32 %v8224_v5, %v8223_v0  ;;  %v8230_v8 = vadd.f32 %v8229_v23, %v8228_v4 }
 0x86d   : > { %v8226_v35 = vrot.slane %v8225_v28, 1  ;;  %v8231_v40 = vrot.slane %v8230_v8, 4  ;;  %v10202_v39 = vpop.f32.mrf.mxu1 }
 0x86e   : > { %v8208_v25 = vadd.f32 %v10202_v39, %v12903_v19 }
 0x86f   : > { %v8227_v12 = vadd.f32 %v8226_v35, %v8225_v28  ;;  %v8232_v3 = vadd.f32 %v8231_v40, %v8230_v8  ;;  %v8144_v51 = vpop.f32.mrf.mxu1 }
 0x870   : > { %v8207_v41 = vadd.f32 %v8144_v51, %v12900_v31  ;;  %v8238_v32 = vsel %vm323_vm0, %v8208_v25, 0.0 }
 0x871   : > { %v8291_v37 = vmul.f32 0.0625, %v8227_v12  ;;  %v8233_v43 = vrot.slane %v8232_v3, 2 }
 0x872   : > { %v8237_v59 = vsel %vm323_vm0, %v8207_v41, 0.0 }
 0x873   : > { %v13023_v10 = vsub.f32 %v8203_v55, %v8291_v37  ;;  %v13025_v1 = vsub.f32 %v8204_v27, %v8291_v37  ;;  %v8234_v44 = vadd.f32 %v8233_v43, %v8232_v3  ;;  %v8239_v14 = vadd.f32 %v8238_v32, %v8237_v59 }
 0x875   : > { %v8315_v19 = vmul.f32 %v13023_v10, %v13023_v10  ;;  %v8316_v6 = vmul.f32 %v13025_v1, %v13025_v1  ;;  %v8235_v15 = vrot.slane %v8234_v44, 1  ;;  %v8240_v31 = vrot.slane %v8239_v14, 4  ;;  %v10205_v30 = vpop.f32.mrf.mxu1 }
 0x876   : > { %v13032_v54 = vadd.f32 %v10205_v30, %v12919_v26 }
 0x877   : > { %v8331_v20 = vsel %vm323_vm0, %v8315_v19, 0.0  ;;  %v8332_v53 = vsel %vm323_vm0, %v8316_v6, 0.0  ;;  %v8236_v60 = vadd.f32 %v8235_v15, %v8234_v44  ;;  %v8241_v56 = vadd.f32 %v8240_v31, %v8239_v14  ;;  %v8154_v63 = vpop.f32.mrf.mxu1 }
 0x878   : > { %v8333_v61 = vadd.f32 %v8332_v53, %v8331_v20  ;;  %v13037_v18 = vadd.f32 %v8154_v63, %v12916_v58  ;;  %v8247_v11 = vsel %vm323_vm0, %v13032_v54, 0.0 }
 0x879   : > { %v8292_v47 = vmul.f32 0.0625, %v8236_v60  ;;  %v8242_v24 = vrot.slane %v8241_v56, 2 }
 0x87a   : > { %v8334_v48 = vrot.slane %v8333_v61, 4  ;;  %v8246_v26 = vsel %vm323_vm0, %v13037_v18, 0.0 }
 0x87b   : > { %v13043_v49 = vsub.f32 %v8205_v22, %v8292_v47  ;;  %v13045_v62 = vsub.f32 %v8206_v38, %v8292_v47  ;;  %v8243_v27 = vadd.f32 %v8242_v24, %v8241_v56  ;;  %v8248_v13 = vadd.f32 %v8247_v11, %v8246_v26 }
 0x87c   : > { %v8335_v55 = vadd.f32 %v8334_v48, %v8333_v61  ;;  %v10208_v29 = vpop.f32.mrf.mxu1 }
 0x87d   : > { %v8317_v58 = vmul.f32 %v13043_v49, %v13043_v49  ;;  %v8318_v57 = vmul.f32 %v13045_v62, %v13045_v62  ;;  %v8244_v46 = vrot.slane %v8243_v27, 1  ;;  %v8249_v21 = vrot.slane %v8248_v13, 4 }
 0x87e   : > { %v8336_v16 = vrot.slane %v8335_v55, 2  ;;  %v13052_v0 = vadd.f32 %v10208_v29, %v12935_v50  ;;  %v8164_v2 = vpop.f32.mrf.mxu1 }
 0x87f   : > { %v8340_v38 = vsel %vm323_vm0, %v8317_v58, 0.0  ;;  %v8341_v22 = vsel %vm323_vm0, %v8318_v57, 0.0  ;;  %v8245_v5 = vadd.f32 %v8244_v46, %v8243_v27  ;;  %v8250_v23 = vadd.f32 %v8249_v21, %v8248_v13 }
 0x880   : > { %v8337_v4 = vadd.f32 %v8336_v16, %v8335_v55  ;;  %v8342_v28 = vadd.f32 %v8341_v22, %v8340_v38  ;;  %v13057_v8 = vadd.f32 %v8164_v2, %v12932_v42  ;;  %v10211_v35 = vpop.f32.mrf.mxu1  ;;  %v8256_v51 = vsel %vm323_vm0, %v13052_v0, 0.0 }
 0x881   : > { %v8293_v40 = vmul.f32 0.0625, %v8245_v5  ;;  %v8251_v39 = vrot.slane %v8250_v23, 2  ;;  %v13060_v12 = vadd.f32 %v10211_v35, %v12947_v9 }
 0x882   : > { %v8338_v50 = vrot.slane %v8337_v4, 1  ;;  %v8343_v3 = vrot.slane %v8342_v28, 4  ;;  %v8255_v37 = vsel %vm323_vm0, %v13057_v8, 0.0  ;;  %v8174_v43 = vpop.f32.mrf.mxu1 }
 0x883   : > { %v13066_v32 = vsub.f32 %v8207_v41, %v8293_v40  ;;  %v13068_v59 = vsub.f32 %v8208_v25, %v8293_v40  ;;  %v8252_v42 = vadd.f32 %v8251_v39, %v8250_v23  ;;  %v8257_v44 = vadd.f32 %v8256_v51, %v8255_v37 }
 0x884   : > { %v8339_v14 = vadd.f32 %v8338_v50, %v8337_v4  ;;  %v8344_v19 = vadd.f32 %v8343_v3, %v8342_v28  ;;  %v8265_v9 = vsel %vm323_vm0, %v13060_v12, 0.0  ;;  %v13073_v6 = vadd.f32 %v8174_v43, %v12944_v33 }
 0x885   : > { %v8319_v15 = vmul.f32 %v13066_v32, %v13066_v32  ;;  %v8320_v31 = vmul.f32 %v13068_v59, %v13068_v59  ;;  %v8253_v41 = vrot.slane %v8252_v42, 1  ;;  %v8258_v30 = vrot.slane %v8257_v44, 4  ;;  %v10214_v25 = vpop.f32.mrf.mxu1 }
 0x886   : > { %v8403_v20 = vmul.f32 0.0625, %v8339_v14  ;;  %v8345_v53 = vrot.slane %v8344_v19, 2  ;;  %v8264_v60 = vsel %vm323_vm0, %v13073_v6, 0.0  ;;  %v13082_v56 = vadd.f32 %v10214_v25, %v12961_v45 }
 0x887   : > { %v8349_v33 = vsel %vm323_vm0, %v8319_v15, 0.0  ;;  %v8350_v63 = vsel %vm323_vm0, %v8320_v31, 0.0  ;;  %v8254_v61 = vadd.f32 %v8253_v41, %v8252_v42  ;;  %v8259_v47 = vadd.f32 %v8258_v30, %v8257_v44  ;;  %v8184_v24 = vpop.f32.mrf.mxu1 }
 0x888   : > { %v8411_v48 = vadd.f32 1e-05, %v8403_v20  ;;  %v8346_v11 = vadd.f32 %v8345_v53, %v8344_v19  ;;  %v8351_v26 = vadd.f32 %v8350_v63, %v8349_v33  ;;  %v8266_v27 = vadd.f32 %v8265_v9, %v8264_v60 }
 0x889   : > { %v8294_v13 = vmul.f32 0.0625, %v8254_v61  ;;  %v8260_v55 = vrot.slane %v8259_v47, 2  ;;  %v8274_v29 = vsel %vm323_vm0, %v13082_v56, 0.0  ;;  %v13089_v58 = vadd.f32 %v8184_v24, %v12958_v7 }
 0x88a   : > { %10577 = vrsqrt.f32 %v8411_v48  ;;  %v8347_v45 = vrot.slane %v8346_v11, 1  ;;  %v8352_v57 = vrot.slane %v8351_v26, 4  ;;  %v8267_v46 = vrot.slane %v8266_v27, 4 }
 0x88b   : > { %v13092_v21 = vsub.f32 %v13037_v18, %v8294_v13  ;;  %v13095_v16 = vsub.f32 %v13032_v54, %v8294_v13  ;;  %v8261_v2 = vadd.f32 %v8260_v55, %v8259_v47  ;;  %v8273_v38 = vsel %vm323_vm0, %v13089_v58, 0.0 }
 0x88c   : > { %v8348_v22 = vadd.f32 %v8347_v45, %v8346_v11  ;;  %v8353_v5 = vadd.f32 %v8352_v57, %v8351_v26  ;;  %v8268_v23 = vadd.f32 %v8267_v46, %v8266_v27  ;;  %v8275_v4 = vadd.f32 %v8274_v29, %v8273_v38 }
 0x88d   : > { %v8321_v7 = vmul.f32 %v13092_v21, %v13092_v21  ;;  %v8322_v28 = vmul.f32 %v13095_v16, %v13095_v16  ;;  %v8262_v35 = vrot.slane %v8261_v2, 1  ;;  %v8445_v50 = vsub.s32 3, %v12684_v34 }
 0x88e   : > { %v8404_v18 = vmul.f32 0.0625, %v8348_v22  ;;  %v8354_v40 = vrot.slane %v8353_v5, 2  ;;  %v8269_v39 = vrot.slane %v8268_v23, 2  ;;  %v8276_v54 = vrot.slane %v8275_v4, 4 }
 0x88f   : > { %v8358_v3 = vsel %vm323_vm0, %v8321_v7, 0.0  ;;  %v8359_v51 = vsel %vm323_vm0, %v8322_v28, 0.0  ;;  %v8263_v37 = vadd.f32 %v8262_v35, %v8261_v2  ;;  %v8465_v19 = vsub.s32 4, %v12684_v34 }
 0x890   : > { %v8412_v43 = vadd.f32 1e-05, %v8404_v18  ;;  %v8355_v42 = vadd.f32 %v8354_v40, %v8353_v5  ;;  %v8360_v44 = vadd.f32 %v8359_v51, %v8358_v3  ;;  %v8270_v14 = vadd.f32 %v8269_v39, %v8268_v23 }
 0x891   : > { %v8295_v9 = vmul.f32 0.0625, %v8263_v37  ;;  %v8277_v15 = vadd.f32 %v8276_v54, %v8275_v4  ;;  %v13108_v25 = vrot.slane %v12803_v17, %v8445_v50  ;;  %v13120_v24 = vrot.slane %v12803_v17, %v8465_v19 }
 0x892   : > { %10579 = vrsqrt.f32 %v8412_v43  ;;  %v8356_v31 = vrot.slane %v8355_v42, 1  ;;  %v8361_v41 = vrot.slane %v8360_v44, 4  ;;  %v8271_v30 = vrot.slane %v8270_v14, 1 }
 0x893   : > { %v13111_v20 = vsub.f32 %v13057_v8, %v8295_v9  ;;  %v13114_v53 = vsub.f32 %v13052_v0, %v8295_v9  ;;  %v8278_v60 = vrot.slane %v8277_v15, 2  ;;  %v10217_v33 = vpop.f32.mrf.mxu1 }
 0x894   : > { %v8357_v63 = vadd.f32 %v8356_v31, %v8355_v42  ;;  %v8362_v61 = vadd.f32 %v8361_v41, %v8360_v44  ;;  %v8272_v34 = vadd.f32 %v8271_v30, %v8270_v14  ;;  %v13117_v47 = vadd.f32 %v10217_v33, %v12975_v52 }
 0x895   : > { %v8323_v48 = vmul.f32 %v13111_v20, %v13111_v20  ;;  %v8324_v8 = vmul.f32 %v13114_v53, %v13114_v53  ;;  %v8279_v11 = vadd.f32 %v8278_v60, %v8277_v15  ;;  %v8194_v0 = vpop.f32.mrf.mxu1 }
 0x896   : > { %v8405_v26 = vmul.f32 0.0625, %v8357_v63  ;;  %v8363_v27 = vrot.slane %v8362_v61, 2  ;;  %v8296_v13 = vmul.f32 0.0625, %v8272_v34  ;;  %v8283_v55 = vsel %vm323_vm0, %v13117_v47, 0.0 }
 0x897   : > { %v10578_v29 = vpop.eup %10577  ;;  %v8367_v52 = vsel %vm323_vm0, %v8323_v48, 0.0  ;;  %v8368_v17 = vsel %vm323_vm0, %v8324_v8, 0.0  ;;  %v8280_v45 = vrot.slane %v8279_v11, 1  ;;  %v13131_v57 = vadd.f32 %v8194_v0, %v12972_v36 }
 0x898   : > { %v8427_v46 = vmul.f32 %v10578_v29, %v13023_v10  ;;  %v8428_v2 = vmul.f32 %v10578_v29, %v13025_v1  ;;  %v8413_v38 = vadd.f32 1e-05, %v8405_v26  ;;  %v8364_v22 = vadd.f32 %v8363_v27, %v8362_v61 }
 0x899   : > { %v8369_v5 = vadd.f32 %v8368_v17, %v8367_v52  ;;  %v13136_v23 = vsub.f32 %v13073_v6, %v8296_v13  ;;  %v13139_v4 = vsub.f32 %v13060_v12, %v8296_v13  ;;  %v8281_v7 = vadd.f32 %v8280_v45, %v8279_v11 }
 0x89a   : > { %v8447_v28 = vmul.f32 %v13108_v25, %v8427_v46  ;;  %v8448_v36 = vmul.f32 %v13108_v25, %v8428_v2  ;;  %10581 = vrsqrt.f32 %v8413_v38  ;;  %v8365_v35 = vrot.slane %v8364_v22, 1 }
 0x89b   : > { %v8370_v10 = vrot.slane %v8369_v5, 4  ;;  %v8325_v1 = vmul.f32 %v13136_v23, %v13136_v23  ;;  %v8326_v18 = vmul.f32 %v13139_v4, %v13139_v4  ;;  %v8297_v6 = vmul.f32 0.0625, %v8281_v7 }
 0x89c   : > { %v8467_v40 = vadd.f32 %v13120_v24, %v8447_v28  ;;  %v8468_v12 = vadd.f32 %v13120_v24, %v8448_v36  ;;  %v8366_v39 = vadd.f32 %v8365_v35, %v8364_v22  ;;  %v8282_v54 = vsel %vm323_vm0, %v13131_v57, 0.0 }
 0x89d   : > { %v8371_v50 = vadd.f32 %v8370_v10, %v8369_v5  ;;  %v8376_v3 = vsel %vm323_vm0, %v8325_v1, 0.0  ;;  %v8377_v51 = vsel %vm323_vm0, %v8326_v18, 0.0  ;;  %v13154_v37 = vsub.f32 %v13089_v58, %v8297_v6 }
 0x89e   : > { %8483 = vst.msk [vmem:[%s13158_s29] sm:$0xff] %vm323_vm0, %v8467_v40  ;;  %8484 = vst.msk [vmem:[%s13158_s29 + $0x8] sm:$0xff] %vm323_vm0, %v8468_v12  ;;  %v8406_v43 = vmul.f32 0.0625, %v8366_v39  ;;  %v8378_v42 = vadd.f32 %v8377_v51, %v8376_v3  ;;  %v13165_v44 = vsub.f32 %v13082_v56, %v8297_v6  ;;  %v8284_v14 = vadd.f32 %v8283_v55, %v8282_v54 }
 0x89f   : > { %v10580_v19 = vpop.eup %10579  ;;  %v8372_v9 = vrot.slane %v8371_v50, 2  ;;  %v8327_v58 = vmul.f32 %v13154_v37, %v13154_v37 }
 0x8a0   : > { %v8429_v15 = vmul.f32 %v10580_v19, %v13043_v49  ;;  %v8430_v31 = vmul.f32 %v10580_v19, %v13045_v62  ;;  %v8414_v41 = vadd.f32 1e-05, %v8406_v43  ;;  %v8379_v30 = vrot.slane %v8378_v42, 4 }
 0x8a1   : > { %v8373_v60 = vadd.f32 %v8372_v9, %v8371_v50  ;;  %v8328_v33 = vmul.f32 %v13165_v44, %v13165_v44  ;;  %v8385_v56 = vsel %vm323_vm0, %v8327_v58, 0.0  ;;  %v8285_v63 = vrot.slane %v8284_v14, 4 }
 0x8a2   : > { %v8449_v61 = vmul.f32 %v13108_v25, %v8429_v15  ;;  %v8450_v34 = vmul.f32 %v13108_v25, %v8430_v31  ;;  %10583 = vrsqrt.f32 %v8414_v41  ;;  %v8380_v48 = vadd.f32 %v8379_v30, %v8378_v42 }
 0x8a3   : > { %v8374_v49 = vrot.slane %v8373_v60, 1  ;;  %v8386_v62 = vsel %vm323_vm0, %v8328_v33, 0.0  ;;  %v8286_v8 = vadd.f32 %v8285_v63, %v8284_v14 }
 0x8a4   : > { %v8469_v11 = vadd.f32 %v13120_v24, %v8449_v61  ;;  %v8470_v0 = vadd.f32 %v13120_v24, %v8450_v34  ;;  %v8381_v26 = vrot.slane %v8380_v48, 2  ;;  %v8387_v27 = vadd.f32 %v8386_v62, %v8385_v56 }
 0x8a5   : > { %v8375_v13 = vadd.f32 %v8374_v49, %v8373_v60  ;;  %v8287_v55 = vrot.slane %v8286_v8, 2 }
 0x8a6   : > { %8485 = vst.msk [vmem:[%s13158_s29 + $0x10] sm:$0xff] %vm323_vm0, %v8469_v11  ;;  %8486 = vst.msk [vmem:[%s13158_s29 + $0x18] sm:$0xff] %vm323_vm0, %v8470_v0  ;;  %v8382_v29 = vadd.f32 %v8381_v26, %v8380_v48  ;;  %v8388_v52 = vrot.slane %v8387_v27, 4 }
 0x8a7   : > { %v10582_v17 = vpop.eup %10581  ;;  %v8407_v45 = vmul.f32 0.0625, %v8375_v13  ;;  %v8288_v46 = vadd.f32 %v8287_v55, %v8286_v8 }
 0x8a8   : > { %v8431_v2 = vmul.f32 %v10582_v17, %v13066_v32  ;;  %v8432_v38 = vmul.f32 %v10582_v17, %v13068_v59  ;;  %v8383_v22 = vrot.slane %v8382_v29, 1  ;;  %v8389_v5 = vadd.f32 %v8388_v52, %v8387_v27 }
 0x8a9   : > { %v8415_v7 = vadd.f32 1e-05, %v8407_v45  ;;  %v8289_v28 = vrot.slane %v8288_v46, 1 }
 0x8aa   : > { %v8451_v36 = vmul.f32 %v13108_v25, %v8431_v2  ;;  %v8452_v35 = vmul.f32 %v13108_v25, %v8432_v38  ;;  %v8384_v10 = vadd.f32 %v8383_v22, %v8382_v29  ;;  %v8390_v1 = vrot.slane %v8389_v5, 2 }
 0x8ab   : > { %10585 = vrsqrt.f32 %v8415_v7  ;;  %v8290_v18 = vadd.f32 %v8289_v28, %v8288_v46 }
 0x8ac   : > { %v8471_v6 = vadd.f32 %v13120_v24, %v8451_v36  ;;  %v8472_v32 = vadd.f32 %v13120_v24, %v8452_v35  ;;  %v8408_v40 = vmul.f32 0.0625, %v8384_v10  ;;  %v8391_v59 = vadd.f32 %v8390_v1, %v8389_v5 }
 0x8ad   : > { %v8298_v12 = vmul.f32 0.0625, %v8290_v18 }
 0x8ae   : > { %8487 = vst.msk [vmem:[%s13158_s29 + $0x20] sm:$0xff] %vm323_vm0, %v8471_v6  ;;  %8488 = vst.msk [vmem:[%s13158_s29 + $0x28] sm:$0xff] %vm323_vm0, %v8472_v32  ;;  %v8416_v39 = vadd.f32 1e-05, %v8408_v40  ;;  %v8392_v54 = vrot.slane %v8391_v59, 1 }
 0x8af   : > { %v10584_v50 = vpop.eup %10583  ;;  %v8313_v3 = vsub.f32 %v13131_v57, %v8298_v12  ;;  %v8314_v51 = vsub.f32 %v13117_v47, %v8298_v12 }
 0x8b0   : > { %v8433_v43 = vmul.f32 %v10584_v50, %v13092_v21  ;;  %v8434_v42 = vmul.f32 %v10584_v50, %v13095_v16  ;;  %10587 = vrsqrt.f32 %v8416_v39  ;;  %v8393_v14 = vadd.f32 %v8392_v54, %v8391_v59 }
 0x8b1   : > { %v8329_v19 = vmul.f32 %v8313_v3, %v8313_v3  ;;  %v8330_v9 = vmul.f32 %v8314_v51, %v8314_v51 }
 0x8b2   : > { %v8453_v58 = vmul.f32 %v13108_v25, %v8433_v43  ;;  %v8454_v15 = vmul.f32 %v13108_v25, %v8434_v42  ;;  %v8409_v31 = vmul.f32 0.0625, %v8393_v14 }
 0x8b3   : > { %v8394_v41 = vsel %vm323_vm0, %v8329_v19, 0.0  ;;  %v8395_v57 = vsel %vm323_vm0, %v8330_v9, 0.0 }
 0x8b4   : > { %v8473_v47 = vadd.f32 %v13120_v24, %v8453_v58  ;;  %v8474_v21 = vadd.f32 %v13120_v24, %v8454_v15  ;;  %v8417_v30 = vadd.f32 1e-05, %v8409_v31  ;;  %v8396_v60 = vadd.f32 %v8395_v57, %v8394_v41 }
 0x8b6   : > { %8489 = vst.msk [vmem:[%s13158_s29 + $0x30] sm:$0xff] %vm323_vm0, %v8473_v47  ;;  %8490 = vst.msk [vmem:[%s13158_s29 + $0x38] sm:$0xff] %vm323_vm0, %v8474_v21  ;;  %10589 = vrsqrt.f32 %v8417_v30  ;;  %v8397_v16 = vrot.slane %v8396_v60, 4 }
 0x8b8   : > { %v10586_v33 = vpop.eup %10585  ;;  %v8398_v56 = vadd.f32 %v8397_v16, %v8396_v60 }
 0x8b9   : > { %v8435_v63 = vmul.f32 %v10586_v33, %v13111_v20  ;;  %v8436_v61 = vmul.f32 %v10586_v33, %v13114_v53 }
 0x8ba   : > { %v8399_v34 = vrot.slane %v8398_v56, 2 }
 0x8bb   : > { %v8455_v48 = vmul.f32 %v13108_v25, %v8435_v63  ;;  %v8456_v49 = vmul.f32 %v13108_v25, %v8436_v61 }
 0x8bc   : > { %v8400_v62 = vadd.f32 %v8399_v34, %v8398_v56 }
 0x8bd   : > { %v10588_v8 = vpop.eup %10587  ;;  %v8475_v11 = vadd.f32 %v13120_v24, %v8455_v48  ;;  %v8476_v0 = vadd.f32 %v13120_v24, %v8456_v49 }
 0x8be   : > { %v8437_v26 = vmul.f32 %v10588_v8, %v13136_v23  ;;  %v8438_v27 = vmul.f32 %v10588_v8, %v13139_v4  ;;  %v8401_v20 = vrot.slane %v8400_v62, 1 }
 0x8bf   : > { %8491 = vst.msk [vmem:[%s13158_s29 + $0x40] sm:$0xff] %vm323_vm0, %v8475_v11  ;;  %8492 = vst.msk [vmem:[%s13158_s29 + $0x48] sm:$0xff] %vm323_vm0, %v8476_v0 }
 0x8c0   : > { %v8457_v53 = vmul.f32 %v13108_v25, %v8437_v26  ;;  %v8458_v13 = vmul.f32 %v13108_v25, %v8438_v27  ;;  %v8402_v55 = vadd.f32 %v8401_v20, %v8400_v62 }
 0x8c2   : > { %v8477_v29 = vadd.f32 %v13120_v24, %v8457_v53  ;;  %v8478_v52 = vadd.f32 %v13120_v24, %v8458_v13  ;;  %v8410_v17 = vmul.f32 0.0625, %v8402_v55 }
 0x8c3   : > { %v10590_v23 = vpop.eup %10589 }
 0x8c4   : > { %8493 = vst.msk [vmem:[%s13158_s29 + $0x50] sm:$0xff] %vm323_vm0, %v8477_v29  ;;  %8494 = vst.msk [vmem:[%s13158_s29 + $0x58] sm:$0xff] %vm323_vm0, %v8478_v52  ;;  %v8439_v4 = vmul.f32 %v10590_v23, %v13154_v37  ;;  %v8440_v45 = vmul.f32 %v10590_v23, %v13165_v44  ;;  %v8418_v46 = vadd.f32 1e-05, %v8410_v17 }
 0x8c6   : > { %v8459_v2 = vmul.f32 %v13108_v25, %v8439_v4  ;;  %v8460_v38 = vmul.f32 %v13108_v25, %v8440_v45  ;;  %10591 = vrsqrt.f32 %v8418_v46 }
 0x8c8   : > { %v8479_v22 = vadd.f32 %v13120_v24, %v8459_v2  ;;  %v8480_v5 = vadd.f32 %v13120_v24, %v8460_v38 }
 0x8ca   : > { %8495 = vst.msk [vmem:[%s13158_s29 + $0x60] sm:$0xff] %vm323_vm0, %v8479_v22  ;;  %8496 = vst.msk [vmem:[%s13158_s29 + $0x68] sm:$0xff] %vm323_vm0, %v8480_v5 }
 0x8d3   : > { %v10592_v37 = vpop.eup %10591 }
 0x8d4   : > { %v8441_v44 = vmul.f32 %v10592_v37, %v8313_v3  ;;  %v8442_v7 = vmul.f32 %v10592_v37, %v8314_v51 }
 0x8d6   : > { %v8461_v28 = vmul.f32 %v13108_v25, %v8441_v44  ;;  %v8462_v36 = vmul.f32 %v13108_v25, %v8442_v7 }
 0x8d8   : > { %v8481_v35 = vadd.f32 %v13120_v24, %v8461_v28  ;;  %v8482_v10 = vadd.f32 %v13120_v24, %v8462_v36 }
 0x8da   : > { %8497 = vst.msk [vmem:[%s13158_s29 + $0x70] sm:$0xff] %vm323_vm0, %v8481_v35  ;;  %8498 = vst.msk [vmem:[%s13158_s29 + $0x78] sm:$0xff] %vm323_vm0, %v8482_v10 }
 0x8db   : > { %10718 = shalt.err (!%p10715_p3)
}
 0x8dc   : > { %s10719_s26 = scalar_lea.hbm %s13244_s20, 2048  ;;  %s10723_s27 = scalar_lea.hbm %s13301_s6, 4096 }
 0x8dd   : > { %p10720_p11 = scmp.ne.s32.totalorder %s13244_s20, %s10719_s26  ;;  %p10724_p4 = scmp.lt.s32.totalorder %s13244_s20, %s13301_s6 }
 0x8de   : > { %p10725_p6 = scmp.lt.s32.totalorder %s10723_s27, %s10719_s26 }
 0x8df   : > { %p10721_p9 = pnand %p10720_p11, %p13407_p2 }
 0x8e0   : > { %p10726_p8 = por %p10725_p6, %p10724_p4 }
 0x8e1   : > { %p10722_p1 = pneg %p10721_p9 }
 0x8e3   : > { %p10727_p5 = pnand %p10726_p8, %p10722_p1 }
 0x8e5   : > { %10730 = shalt.err (!%p10727_p5)
}
 0x8e6   : > { %s10781_s17 = smov 128   ;;  %s10782_s18 = smov 8  }
 0x8e7   : > { %10244 = dma.vmem_to_hbm [thread:$0]  (%p13407_p2), %s13246_s15, 2048, %s13244_s20, %s8500_s25, %s10781_s17, %s10781_s17, %s10782_s18  }
 0x8e8 PF: > { %s8529_s14 = sand.u32 1, %s10761_s21   ;;  %p13408_p7 = scmp.ne.s32.totalorder %s13338_s28, 0 }
 0x8e9   : > { %p13409_p12 = scmp.ge.s32.totalorder %s10773_s24, 2  ;;  %s8530_s16 = scalar_lea.sflag [#allocation4], %s8529_s14 }
 0x8eb   : > { %p10258_p13 = pnand %p13409_p12, %p13408_p7 }
 0x8ed   : > { %p10259_p0 = pneg %p10258_p13 }
 0x8ef   : > { %10756 = dma.done.wait (%p10259_p0), %s8530_s16, 2048  }
 0x8f0   : > { %10758 = vsyncadd (%p10259_p0), %s8530_s16, 4294965248  ;;  %p20_p10 = scmp.ge.s32.totalorder %s10896_s19, 4   ;;  %s13410_s21 = smov %s10765_s22 }
 0x8f1   : > { %s13411_s22 = smov %s10769_s23  ;;  %s13412_s23 = smov %s10912_s7 }
 0x8f2   : > { %s13413_s24 = smov %s10896_s19  ;;  %22 = sbr.rel (!%p20_p10) target bundleno = 6 (0x6), region = 103 }
 0x8f7   :  { %8535 = vsyncpa [#allocation3], 1 }
 0x8f8   :  { %8537 = vsyncpa [#allocation3 + $0x1], 1 }
 0x8f9   :  { %8538 = vsyncpa [#allocation6], 1 }
 0x8fa   :  { %8539 = vsyncpa [#allocation4], 1 }
 0x8fb   :  { %8541 = vsyncpa [#allocation4 + $0x1], 1 }

</bundles_post_ra>
